<compile_context>
chip_gen: v7x
topology: tpu7x:2x2x1
jax: 0.10.0
libtpu: 0.0.40
codegen_flags: <defaults>
</compile_context>

<pallas_src>
import functools
import math

import jax
import jax.numpy as jnp
from jax import lax
from jax.experimental import pallas as pl
from jax.experimental.pallas import tpu as pltpu  # noqa: F401  (kept for TPU-specific params if needed)

D_MODEL = 32
N_HEADS = 4
D_FF = 64
E_LAYERS = 2
LN_EPS = 1e-5  # PyTorch nn.LayerNorm default


# ----------------------------- fused Pallas kernel -----------------------------

def _layer_norm(z, g, b):
    mu = jnp.mean(z, axis=-1, keepdims=True)
    zc = z - mu
    var = jnp.mean(zc * zc, axis=-1, keepdims=True)
    return zc * lax.rsqrt(var + LN_EPS) * g + b


def _softmax_last(s):
    m = jnp.max(s, axis=-1, keepdims=True)
    e = jnp.exp(s - m)
    return e / jnp.sum(e, axis=-1, keepdims=True)   # exact division (EUP has slack)


def _encoder_kernel(x_ref, cross_ref,
                    sa_wqkv_ref, sa_bqkv_ref, sa_wo_ref, sa_bo_ref,
                    ca_wqkv_ref, ca_bqkv_ref, ca_wo_ref, ca_bo_ref,
                    w1_ref, b1_ref, w2_ref, b2_ref,
                    ln1_g_ref, ln1_b_ref, ln2_g_ref, ln2_b_ref,
                    ln3_g_ref, ln3_b_ref,
                    nf_g_ref, nf_b_ref,
                    o_ref,
                    *, n_layers, n_heads, batch, seq_len, cross_len):
    """Whole TimeXer Encoder forward for the full batch, resident in VMEM/vregs.

    x_ref:     (B*Lx, D) activations (batch collapsed onto sublanes)
    cross_ref: (B*Lc, D) flattened exogenous/cross tokens
    o_ref:     (B*Lx, D) output; written exactly once at the end.
    """
    BL, D = o_ref.shape
    BLc = batch * cross_len
    dh = D // n_heads
    scale = 1.0 / math.sqrt(dh)
    NEG = -1e9

    # ---- in-kernel constants from iota (no HBM inputs / DMAs), computed once ----
    # block-diagonal self-attention mask: 0 within a batch element, -1e9 across
    ri = lax.broadcasted_iota(jnp.int32, (BL, BL), 0).astype(jnp.float32)
    ci = lax.broadcasted_iota(jnp.int32, (BL, BL), 1).astype(jnp.float32)
    rbid = jnp.floor((ri + 0.5) / seq_len)
    cbid = jnp.floor((ci + 0.5) / seq_len)
    self_mask = jnp.where(rbid == cbid, 0.0, NEG)                       # (BL, BL)

    # cross-attention mask: query row b may only attend to cross tokens of batch b
    qb = lax.broadcasted_iota(jnp.int32, (batch, BLc), 0).astype(jnp.float32)
    kj = lax.broadcasted_iota(jnp.int32, (batch, BLc), 1).astype(jnp.float32)
    kbid = jnp.floor((kj + 0.5) / cross_len)
    cross_mask = jnp.where(qb == kbid, 0.0, NEG)                        # (B, B*Lc)

    # gather / scatter selectors for the B global-token rows (row b*L + L-1)
    ii = lax.broadcasted_iota(jnp.int32, (BL, batch), 0)
    bb = lax.broadcasted_iota(jnp.int32, (BL, batch), 1)
    selT = (ii == bb * seq_len + (seq_len - 1)).astype(jnp.float32)     # (BL, B) scatter
    jb = lax.broadcasted_iota(jnp.int32, (batch, BL), 0)
    jj = lax.broadcasted_iota(jnp.int32, (batch, BL), 1)
    sel = (jj == jb * seq_len + (seq_len - 1)).astype(jnp.float32)      # (B, BL) gather
    keep = 1.0 - jnp.sum(selT, axis=-1, keepdims=True)                  # (BL, 1)

    x = x_ref[...].astype(jnp.float32)            # activations stay as values (vregs)
    cross = cross_ref[...].astype(jnp.float32)    # (B*Lc, D)

    for l in range(n_layers):
        # ---- per-layer weights hoisted to locals (read once, loop-invariant) ----
        sa_wqkv = sa_wqkv_ref[l]
        sa_bqkv = sa_bqkv_ref[l]
        sa_wo = sa_wo_ref[l]
        sa_bo = sa_bo_ref[l]
        ca_wqkv = ca_wqkv_ref[l]
        ca_bqkv = ca_bqkv_ref[l]
        ca_wo = ca_wo_ref[l]
        ca_bo = ca_bo_ref[l]
        w1 = w1_ref[l]
        b1 = b1_ref[l]
        w2 = w2_ref[l]
        b2 = b2_ref[l]
        ln1_g = ln1_g_ref[l]
        ln1_b = ln1_b_ref[l]
        ln2_g = ln2_g_ref[l]
        ln2_b = ln2_b_ref[l]
        ln3_g = ln3_g_ref[l]
        ln3_b = ln3_b_ref[l]

        # ---------------- self-attention over the (B*L, D) slab + norm1 ----------------
        qkv = jnp.dot(x, sa_wqkv, preferred_element_type=jnp.float32) + sa_bqkv
        q = qkv[:, 0:D]
        k = qkv[:, D:2 * D]
        v = qkv[:, 2 * D:3 * D]
        heads = []
        for h in range(n_heads):
            lo = h * dh
            hi = lo + dh
            s = lax.dot_general(q[:, lo:hi], k[:, lo:hi], (((1,), (1,)), ((), ())),
                                preferred_element_type=jnp.float32) * scale + self_mask
            heads.append(jnp.dot(_softmax_last(s), v[:, lo:hi],
                                 preferred_element_type=jnp.float32))
        # fused output projection: one (BL, D)@(D, D) matmul instead of H small dots
        attn = jnp.dot(jnp.concatenate(heads, axis=-1), sa_wo,
                       preferred_element_type=jnp.float32) + sa_bo
        x = _layer_norm(x + attn, ln1_g, ln1_b)

        # ------ global-token cross-attention (Lq=1 per batch, batched over B) + norm2 ------
        g = jnp.dot(sel, x, preferred_element_type=jnp.float32)          # (B, D) gather
        qg = jnp.dot(g, ca_wqkv[:, 0:D],
                     preferred_element_type=jnp.float32) + ca_bqkv[:, 0:D]
        kc = jnp.dot(cross, ca_wqkv[:, D:2 * D],
                     preferred_element_type=jnp.float32) + ca_bqkv[:, D:2 * D]
        vc = jnp.dot(cross, ca_wqkv[:, 2 * D:3 * D],
                     preferred_element_type=jnp.float32) + ca_bqkv[:, 2 * D:3 * D]
        cheads = []
        for h in range(n_heads):
            lo = h * dh
            hi = lo + dh
            s = lax.dot_general(qg[:, lo:hi], kc[:, lo:hi], (((1,), (1,)), ((), ())),
                                preferred_element_type=jnp.float32) * scale + cross_mask
            cheads.append(jnp.dot(_softmax_last(s), vc[:, lo:hi],
                                  preferred_element_type=jnp.float32))
        gout = jnp.dot(jnp.concatenate(cheads, axis=-1), ca_wo,
                       preferred_element_type=jnp.float32) + ca_bo
        g_new = _layer_norm(g + gout, ln2_g, ln2_b)                       # (B, D)
        # scatter updated global rows back (zero out old rows, add new)
        x = x * keep + jnp.dot(selT, g_new, preferred_element_type=jnp.float32)

        # ---------------- FFN (Conv1d k=1 == per-token linear) + norm3 ----------------
        hdn = jnp.maximum(jnp.dot(x, w1, preferred_element_type=jnp.float32) + b1, 0.0)
        y = jnp.dot(hdn, w2, preferred_element_type=jnp.float32) + b2
        x = _layer_norm(x + y, ln3_g, ln3_b)

    # ---------------- final Encoder.norm — the single output store ----------------
    o_ref[...] = _layer_norm(x, nf_g_ref[...], nf_b_ref[...]).astype(o_ref.dtype)
    # TODO(synk): Encoder.projection is None in TimeXer's construction; not implemented.


# ----------------------------- wrapper -----------------------------

def _pack_params(params):
    layers = params["layers"]

    def cat_qkv_w(ap):
        return jnp.concatenate([ap["wq"], ap["wk"], ap["wv"]], axis=1)   # (D, 3D)

    def cat_qkv_b(ap):
        return jnp.concatenate([ap["bq"], ap["bk"], ap["bv"]], axis=1)   # (1, 3D)

    def stack(fn):
        return jnp.stack([fn(p) for p in layers], axis=0)

    return (
        stack(lambda p: cat_qkv_w(p["self_attn"])),   # sa_wqkv (E, D, 3D)
        stack(lambda p: cat_qkv_b(p["self_attn"])),   # sa_bqkv (E, 1, 3D)
        stack(lambda p: p["self_attn"]["wo"]),        # sa_wo   (E, D, D)
        stack(lambda p: p["self_attn"]["bo"]),        # sa_bo   (E, 1, D)
        stack(lambda p: cat_qkv_w(p["cross_attn"])),  # ca_wqkv
        stack(lambda p: cat_qkv_b(p["cross_attn"])),  # ca_bqkv
        stack(lambda p: p["cross_attn"]["wo"]),       # ca_wo
        stack(lambda p: p["cross_attn"]["bo"]),       # ca_bo
        stack(lambda p: p["w1"]), stack(lambda p: p["b1"]),
        stack(lambda p: p["w2"]), stack(lambda p: p["b2"]),
        stack(lambda p: p["ln1_g"]), stack(lambda p: p["ln1_b"]),
        stack(lambda p: p["ln2_g"]), stack(lambda p: p["ln2_b"]),
        stack(lambda p: p["ln3_g"]), stack(lambda p: p["ln3_b"]),
        params["norm_g"], params["norm_b"],
    )


def encoder_forward(x, cross, params):
    B, L, D = x.shape
    _, Lc, _ = cross.shape
    BL = B * L
    x2d = x.reshape(BL, D)
    cross2d = cross.reshape(B * Lc, D)
    packed = _pack_params(params)
    kernel = functools.partial(_encoder_kernel,
                               n_layers=len(params["layers"]),
                               n_heads=N_HEADS, batch=B, seq_len=L, cross_len=Lc)
    out2d = pl.pallas_call(
        kernel,
        out_shape=jax.ShapeDtypeStruct((BL, D), jnp.float32),
    )(x2d, cross2d, *packed)
    return out2d.reshape(B, L, D)


# ----------------------------- pure-JAX reference -----------------------------

def _mha_ref(q, kv, p):
    B, Lq, D = q.shape
    dh = D // N_HEADS
    Q = (q @ p["wq"] + p["bq"]).reshape(B, Lq, N_HEADS, dh)
    K = (kv @ p["wk"] + p["bk"]).reshape(B, -1, N_HEADS, dh)
    V = (kv @ p["wv"] + p["bv"]).reshape(B, -1, N_HEADS, dh)
    s = jnp.einsum("blhe,bshe->bhls", Q, K) / math.sqrt(dh)
    a = jax.nn.softmax(s, axis=-1)
    o = jnp.einsum("bhls,bshd->blhd", a, V).reshape(B, Lq, D)
    return o @ p["wo"] + p["bo"]


def _ln_ref(z, g, b):
    mu = jnp.mean(z, axis=-1, keepdims=True)
    var = jnp.mean((z - mu) ** 2, axis=-1, keepdims=True)
    return (z - mu) * lax.rsqrt(var + LN_EPS) * g + b


def encoder_forward_ref(x, cross, params):
    for p in params["layers"]:
        x = _ln_ref(x + _mha_ref(x, x, p["self_attn"]), p["ln1_g"], p["ln1_b"])
        x_glb_ori = x[:, -1:, :]
        x_glb = _ln_ref(x_glb_ori + _mha_ref(x_glb_ori, cross, p["cross_attn"]),
                        p["ln2_g"], p["ln2_b"])
        x = jnp.concatenate([x[:, :-1, :], x_glb], axis=1)
        h = jnp.maximum(x @ p["w1"] + p["b1"], 0.0)
        y = h @ p["w2"] + p["b2"]
        x = _ln_ref(x + y, p["ln3_g"], p["ln3_b"])
    return _ln_ref(x, params["norm_g"], params["norm_b"])


# ----------------------------- deterministic params -----------------------------

def init_params(key):
    def dense(k, i, o, scale=0.05):
        kw, kb = jax.random.split(k)
        return (jax.random.normal(kw, (i, o), jnp.float32) * scale,
                jax.random.normal(kb, (1, o), jnp.float32) * scale)

    def attn_params(k):
        ks = jax.random.split(k, 4)
        wq, bq = dense(ks[0], D_MODEL, D_MODEL)
        wk, bk = dense(ks[1], D_MODEL, D_MODEL)
        wv, bv = dense(ks[2], D_MODEL, D_MODEL)
        wo, bo = dense(ks[3], D_MODEL, D_MODEL)
        return dict(wq=wq, bq=bq, wk=wk, bk=bk, wv=wv, bv=bv, wo=wo, bo=bo)

    layers = []
    for l in range(E_LAYERS):
        ks = jax.random.split(jax.random.fold_in(key, l), 4)
        w1, b1 = dense(ks[2], D_MODEL, D_FF)
        w2, b2 = dense(ks[3], D_FF, D_MODEL)
        layers.append(dict(
            self_attn=attn_params(ks[0]),
            cross_attn=attn_params(ks[1]),
            w1=w1, b1=b1, w2=w2, b2=b2,
            ln1_g=jnp.ones((1, D_MODEL), jnp.float32), ln1_b=jnp.zeros((1, D_MODEL), jnp.float32),
            ln2_g=jnp.ones((1, D_MODEL), jnp.float32), ln2_b=jnp.zeros((1, D_MODEL), jnp.float32),
            ln3_g=jnp.ones((1, D_MODEL), jnp.float32), ln3_b=jnp.zeros((1, D_MODEL), jnp.float32),
        ))
    return dict(layers=layers,
                norm_g=jnp.ones((1, D_MODEL), jnp.float32),
                norm_b=jnp.zeros((1, D_MODEL), jnp.float32))


if __name__ == "__main__":
    key = jax.random.PRNGKey(0)
    kx, kc, kp = jax.random.split(key, 3)
    B, Lx, Lc = 2, 6, 8  # Lx = 5 patch tokens + 1 global token
    x = jax.random.normal(kx, (B, Lx, D_MODEL), jnp.float32)
    cross = jax.random.normal(kc, (B, Lc, D_MODEL), jnp.float32)
    params = init_params(kp)

    out = jax.block_until_ready(encoder_forward(x, cross, params))
    ref = encoder_forward_ref(x, cross, params)

    assert out.shape == (B, Lx, D_MODEL)
    max_err = float(jnp.max(jnp.abs(out - ref)))
    # exact softmax division -> tight tolerance
    assert jnp.allclose(out, ref, rtol=1e-4, atol=1e-4), f"max_err={max_err}"
    print("KERNEL_OK")
</pallas_src>

<mosaic_0001>
module attributes {stable_mosaic.version = 11 : i64} {
  func.func @_encoder_kernel(%arg0: memref<12x32xf32, #tpu.memory_space<vmem>>, %arg1: memref<16x32xf32, #tpu.memory_space<vmem>>, %arg2: memref<2x32x96xf32, #tpu.memory_space<vmem>>, %arg3: memref<2x1x96xf32, #tpu.memory_space<vmem>>, %arg4: memref<2x32x32xf32, #tpu.memory_space<vmem>>, %arg5: memref<2x1x32xf32, #tpu.memory_space<vmem>>, %arg6: memref<2x32x96xf32, #tpu.memory_space<vmem>>, %arg7: memref<2x1x96xf32, #tpu.memory_space<vmem>>, %arg8: memref<2x32x32xf32, #tpu.memory_space<vmem>>, %arg9: memref<2x1x32xf32, #tpu.memory_space<vmem>>, %arg10: memref<2x32x64xf32, #tpu.memory_space<vmem>>, %arg11: memref<2x1x64xf32, #tpu.memory_space<vmem>>, %arg12: memref<2x64x32xf32, #tpu.memory_space<vmem>>, %arg13: memref<2x1x32xf32, #tpu.memory_space<vmem>>, %arg14: memref<2x1x32xf32, #tpu.memory_space<vmem>>, %arg15: memref<2x1x32xf32, #tpu.memory_space<vmem>>, %arg16: memref<2x1x32xf32, #tpu.memory_space<vmem>>, %arg17: memref<2x1x32xf32, #tpu.memory_space<vmem>>, %arg18: memref<2x1x32xf32, #tpu.memory_space<vmem>>, %arg19: memref<2x1x32xf32, #tpu.memory_space<vmem>>, %arg20: memref<1x32xf32, #tpu.memory_space<vmem>>, %arg21: memref<1x32xf32, #tpu.memory_space<vmem>>, %arg22: memref<12x32xf32, #tpu.memory_space<vmem>>) attributes {dimension_semantics = [], scalar_prefetch = 0 : i64, scratch_operands = 0 : i64, tpu.core_type = #tpu.core_type<tc>} {
    %0 = tpu.iota {dimensions = array<i32: 0>} : vector<12x12xi32>
    %1 = arith.sitofp %0 : vector<12x12xi32> to vector<12x12xf32>
    %2 = tpu.iota {dimensions = array<i32: 1>} : vector<12x12xi32>
    %3 = arith.sitofp %2 : vector<12x12xi32> to vector<12x12xf32>
    %cst = arith.constant 5.000000e-01 : f32
    %4 = vector.broadcast %cst : f32 to vector<12x12xf32>
    %5 = arith.addf %1, %4 : vector<12x12xf32>
    %cst_0 = arith.constant 6.000000e+00 : f32
    %6 = vector.broadcast %cst_0 : f32 to vector<12x12xf32>
    %7 = arith.divf %5, %6 : vector<12x12xf32>
    %8 = math.floor %7 : vector<12x12xf32>
    %cst_1 = arith.constant 5.000000e-01 : f32
    %9 = vector.broadcast %cst_1 : f32 to vector<12x12xf32>
    %10 = arith.addf %3, %9 : vector<12x12xf32>
    %cst_2 = arith.constant 6.000000e+00 : f32
    %11 = vector.broadcast %cst_2 : f32 to vector<12x12xf32>
    %12 = arith.divf %10, %11 : vector<12x12xf32>
    %13 = math.floor %12 : vector<12x12xf32>
    %14 = arith.cmpf oeq, %8, %13 : vector<12x12xf32>
    %cst_3 = arith.constant 0.000000e+00 : f32
    %cst_4 = arith.constant -1.000000e+09 : f32
    %15 = vector.broadcast %cst_3 : f32 to vector<12x12xf32>
    %16 = vector.broadcast %cst_4 : f32 to vector<12x12xf32>
    %17 = arith.select %14, %15, %16 : vector<12x12xi1>, vector<12x12xf32>
    %18 = tpu.iota {dimensions = array<i32: 0>} : vector<2x16xi32>
    %19 = arith.sitofp %18 : vector<2x16xi32> to vector<2x16xf32>
    %20 = tpu.iota {dimensions = array<i32: 1>} : vector<2x16xi32>
    %21 = arith.sitofp %20 : vector<2x16xi32> to vector<2x16xf32>
    %cst_5 = arith.constant 5.000000e-01 : f32
    %22 = vector.broadcast %cst_5 : f32 to vector<2x16xf32>
    %23 = arith.addf %21, %22 : vector<2x16xf32>
    %cst_6 = arith.constant 8.000000e+00 : f32
    %24 = vector.broadcast %cst_6 : f32 to vector<2x16xf32>
    %25 = arith.divf %23, %24 : vector<2x16xf32>
    %26 = math.floor %25 : vector<2x16xf32>
    %27 = arith.cmpf oeq, %19, %26 : vector<2x16xf32>
    %cst_7 = arith.constant 0.000000e+00 : f32
    %cst_8 = arith.constant -1.000000e+09 : f32
    %28 = vector.broadcast %cst_7 : f32 to vector<2x16xf32>
    %29 = vector.broadcast %cst_8 : f32 to vector<2x16xf32>
    %30 = arith.select %27, %28, %29 : vector<2x16xi1>, vector<2x16xf32>
    %31 = tpu.iota {dimensions = array<i32: 0>} : vector<12x2xi32>
    %32 = tpu.iota {dimensions = array<i32: 1>} : vector<12x2xi32>
    %c6_i32 = arith.constant 6 : i32
    %33 = vector.broadcast %c6_i32 : i32 to vector<12x2xi32>
    %34 = arith.muli %32, %33 : vector<12x2xi32>
    %c5_i32 = arith.constant 5 : i32
    %35 = vector.broadcast %c5_i32 : i32 to vector<12x2xi32>
    %36 = arith.addi %34, %35 : vector<12x2xi32>
    %37 = arith.cmpi eq, %31, %36 : vector<12x2xi32>
    %38 = arith.extui %37 : vector<12x2xi1> to vector<12x2xi32>
    %39 = arith.sitofp %38 : vector<12x2xi32> to vector<12x2xf32>
    %40 = tpu.iota {dimensions = array<i32: 0>} : vector<2x12xi32>
    %41 = tpu.iota {dimensions = array<i32: 1>} : vector<2x12xi32>
    %c6_i32_9 = arith.constant 6 : i32
    %42 = vector.broadcast %c6_i32_9 : i32 to vector<2x12xi32>
    %43 = arith.muli %40, %42 : vector<2x12xi32>
    %c5_i32_10 = arith.constant 5 : i32
    %44 = vector.broadcast %c5_i32_10 : i32 to vector<2x12xi32>
    %45 = arith.addi %43, %44 : vector<2x12xi32>
    %46 = arith.cmpi eq, %41, %45 : vector<2x12xi32>
    %47 = arith.extui %46 : vector<2x12xi1> to vector<2x12xi32>
    %48 = arith.sitofp %47 : vector<2x12xi32> to vector<2x12xf32>
    %cst_11 = arith.constant dense<0.000000e+00> : vector<12xf32>
    %49 = vector.multi_reduction <add>, %39, %cst_11 [1] : vector<12x2xf32> to vector<12xf32>
    %50 = vector.shape_cast %49 : vector<12xf32> to vector<12x1xf32>
    %cst_12 = arith.constant 1.000000e+00 : f32
    %51 = vector.broadcast %cst_12 : f32 to vector<12x1xf32>
    %52 = arith.subf %51, %50 : vector<12x1xf32>
    %c0 = arith.constant 0 : index
    %c0_13 = arith.constant 0 : index
    %53 = vector.load %arg0[%c0, %c0_13] : memref<12x32xf32, #tpu.memory_space<vmem>>, vector<12x32xf32>
    %c0_14 = arith.constant 0 : index
    %c0_15 = arith.constant 0 : index
    %54 = vector.load %arg1[%c0_14, %c0_15] : memref<16x32xf32, #tpu.memory_space<vmem>>, vector<16x32xf32>
    %c0_16 = arith.constant 0 : index
    %c0_17 = arith.constant 0 : index
    %c0_18 = arith.constant 0 : index
    %55 = vector.load %arg2[%c0_16, %c0_17, %c0_18] : memref<2x32x96xf32, #tpu.memory_space<vmem>>, vector<1x32x96xf32>
    %56 = vector.shape_cast %55 : vector<1x32x96xf32> to vector<32x96xf32>
    %c0_19 = arith.constant 0 : index
    %c0_20 = arith.constant 0 : index
    %c0_21 = arith.constant 0 : index
    %57 = vector.load %arg3[%c0_19, %c0_20, %c0_21] : memref<2x1x96xf32, #tpu.memory_space<vmem>>, vector<1x1x96xf32>
    %58 = vector.shape_cast %57 : vector<1x1x96xf32> to vector<1x96xf32>
    %c0_22 = arith.constant 0 : index
    %c0_23 = arith.constant 0 : index
    %c0_24 = arith.constant 0 : index
    %59 = vector.load %arg4[%c0_22, %c0_23, %c0_24] : memref<2x32x32xf32, #tpu.memory_space<vmem>>, vector<1x32x32xf32>
    %60 = vector.shape_cast %59 : vector<1x32x32xf32> to vector<32x32xf32>
    %c0_25 = arith.constant 0 : index
    %c0_26 = arith.constant 0 : index
    %c0_27 = arith.constant 0 : index
    %61 = vector.load %arg5[%c0_25, %c0_26, %c0_27] : memref<2x1x32xf32, #tpu.memory_space<vmem>>, vector<1x1x32xf32>
    %62 = vector.shape_cast %61 : vector<1x1x32xf32> to vector<1x32xf32>
    %c0_28 = arith.constant 0 : index
    %c0_29 = arith.constant 0 : index
    %c0_30 = arith.constant 0 : index
    %63 = vector.load %arg6[%c0_28, %c0_29, %c0_30] : memref<2x32x96xf32, #tpu.memory_space<vmem>>, vector<1x32x96xf32>
    %64 = vector.shape_cast %63 : vector<1x32x96xf32> to vector<32x96xf32>
    %c0_31 = arith.constant 0 : index
    %c0_32 = arith.constant 0 : index
    %c0_33 = arith.constant 0 : index
    %65 = vector.load %arg7[%c0_31, %c0_32, %c0_33] : memref<2x1x96xf32, #tpu.memory_space<vmem>>, vector<1x1x96xf32>
    %66 = vector.shape_cast %65 : vector<1x1x96xf32> to vector<1x96xf32>
    %c0_34 = arith.constant 0 : index
    %c0_35 = arith.constant 0 : index
    %c0_36 = arith.constant 0 : index
    %67 = vector.load %arg8[%c0_34, %c0_35, %c0_36] : memref<2x32x32xf32, #tpu.memory_space<vmem>>, vector<1x32x32xf32>
    %68 = vector.shape_cast %67 : vector<1x32x32xf32> to vector<32x32xf32>
    %c0_37 = arith.constant 0 : index
    %c0_38 = arith.constant 0 : index
    %c0_39 = arith.constant 0 : index
    %69 = vector.load %arg9[%c0_37, %c0_38, %c0_39] : memref<2x1x32xf32, #tpu.memory_space<vmem>>, vector<1x1x32xf32>
    %70 = vector.shape_cast %69 : vector<1x1x32xf32> to vector<1x32xf32>
    %c0_40 = arith.constant 0 : index
    %c0_41 = arith.constant 0 : index
    %c0_42 = arith.constant 0 : index
    %71 = vector.load %arg10[%c0_40, %c0_41, %c0_42] : memref<2x32x64xf32, #tpu.memory_space<vmem>>, vector<1x32x64xf32>
    %72 = vector.shape_cast %71 : vector<1x32x64xf32> to vector<32x64xf32>
    %c0_43 = arith.constant 0 : index
    %c0_44 = arith.constant 0 : index
    %c0_45 = arith.constant 0 : index
    %73 = vector.load %arg11[%c0_43, %c0_44, %c0_45] : memref<2x1x64xf32, #tpu.memory_space<vmem>>, vector<1x1x64xf32>
    %74 = vector.shape_cast %73 : vector<1x1x64xf32> to vector<1x64xf32>
    %c0_46 = arith.constant 0 : index
    %c0_47 = arith.constant 0 : index
    %c0_48 = arith.constant 0 : index
    %75 = vector.load %arg12[%c0_46, %c0_47, %c0_48] : memref<2x64x32xf32, #tpu.memory_space<vmem>>, vector<1x64x32xf32>
    %76 = vector.shape_cast %75 : vector<1x64x32xf32> to vector<64x32xf32>
    %c0_49 = arith.constant 0 : index
    %c0_50 = arith.constant 0 : index
    %c0_51 = arith.constant 0 : index
    %77 = vector.load %arg13[%c0_49, %c0_50, %c0_51] : memref<2x1x32xf32, #tpu.memory_space<vmem>>, vector<1x1x32xf32>
    %78 = vector.shape_cast %77 : vector<1x1x32xf32> to vector<1x32xf32>
    %c0_52 = arith.constant 0 : index
    %c0_53 = arith.constant 0 : index
    %c0_54 = arith.constant 0 : index
    %79 = vector.load %arg14[%c0_52, %c0_53, %c0_54] : memref<2x1x32xf32, #tpu.memory_space<vmem>>, vector<1x1x32xf32>
    %80 = vector.shape_cast %79 : vector<1x1x32xf32> to vector<1x32xf32>
    %c0_55 = arith.constant 0 : index
    %c0_56 = arith.constant 0 : index
    %c0_57 = arith.constant 0 : index
    %81 = vector.load %arg15[%c0_55, %c0_56, %c0_57] : memref<2x1x32xf32, #tpu.memory_space<vmem>>, vector<1x1x32xf32>
    %82 = vector.shape_cast %81 : vector<1x1x32xf32> to vector<1x32xf32>
    %c0_58 = arith.constant 0 : index
    %c0_59 = arith.constant 0 : index
    %c0_60 = arith.constant 0 : index
    %83 = vector.load %arg16[%c0_58, %c0_59, %c0_60] : memref<2x1x32xf32, #tpu.memory_space<vmem>>, vector<1x1x32xf32>
    %84 = vector.shape_cast %83 : vector<1x1x32xf32> to vector<1x32xf32>
    %c0_61 = arith.constant 0 : index
    %c0_62 = arith.constant 0 : index
    %c0_63 = arith.constant 0 : index
    %85 = vector.load %arg17[%c0_61, %c0_62, %c0_63] : memref<2x1x32xf32, #tpu.memory_space<vmem>>, vector<1x1x32xf32>
    %86 = vector.shape_cast %85 : vector<1x1x32xf32> to vector<1x32xf32>
    %c0_64 = arith.constant 0 : index
    %c0_65 = arith.constant 0 : index
    %c0_66 = arith.constant 0 : index
    %87 = vector.load %arg18[%c0_64, %c0_65, %c0_66] : memref<2x1x32xf32, #tpu.memory_space<vmem>>, vector<1x1x32xf32>
    %88 = vector.shape_cast %87 : vector<1x1x32xf32> to vector<1x32xf32>
    %c0_67 = arith.constant 0 : index
    %c0_68 = arith.constant 0 : index
    %c0_69 = arith.constant 0 : index
    %89 = vector.load %arg19[%c0_67, %c0_68, %c0_69] : memref<2x1x32xf32, #tpu.memory_space<vmem>>, vector<1x1x32xf32>
    %90 = vector.shape_cast %89 : vector<1x1x32xf32> to vector<1x32xf32>
    %cst_70 = arith.constant dense<0.000000e+00> : vector<12x96xf32>
    %91 = tpu.matmul %53, %56, %cst_70 {dimension_numbers = #tpu.dot_dimension_numbers<[1], [0], [0], [1], [0, 0, 1, 1], [], []>} : vector<12x32xf32>, vector<32x96xf32>, vector<12x96xf32> -> vector<12x96xf32>
    %92 = vector.broadcast %58 : vector<1x96xf32> to vector<12x96xf32>
    %93 = arith.addf %91, %92 : vector<12x96xf32>
    %94 = vector.extract_strided_slice %93 {offsets = [0, 0], sizes = [12, 32], strides = [1, 1]} : vector<12x96xf32> to vector<12x32xf32>
    %95 = vector.extract_strided_slice %93 {offsets = [0, 32], sizes = [12, 32], strides = [1, 1]} : vector<12x96xf32> to vector<12x32xf32>
    %96 = vector.extract_strided_slice %93 {offsets = [0, 64], sizes = [12, 32], strides = [1, 1]} : vector<12x96xf32> to vector<12x32xf32>
    %97 = vector.extract_strided_slice %94 {offsets = [0, 0], sizes = [12, 8], strides = [1, 1]} : vector<12x32xf32> to vector<12x8xf32>
    %98 = vector.extract_strided_slice %95 {offsets = [0, 0], sizes = [12, 8], strides = [1, 1]} : vector<12x32xf32> to vector<12x8xf32>
    %cst_71 = arith.constant dense<0.000000e+00> : vector<12x12xf32>
    %99 = tpu.matmul %97, %98, %cst_71 {dimension_numbers = #tpu.dot_dimension_numbers<[1], [1], [0], [0], [0, 0, 1, 0], [], []>} : vector<12x8xf32>, vector<12x8xf32>, vector<12x12xf32> -> vector<12x12xf32>
    %cst_72 = arith.constant 0.353553385 : f32
    %100 = vector.broadcast %cst_72 : f32 to vector<12x12xf32>
    %101 = arith.mulf %99, %100 : vector<12x12xf32>
    %102 = arith.addf %101, %17 : vector<12x12xf32>
    %cst_73 = arith.constant dense<0xFF800000> : vector<12xf32>
    %103 = vector.multi_reduction <maximumf>, %102, %cst_73 [1] : vector<12x12xf32> to vector<12xf32>
    %104 = vector.shape_cast %103 : vector<12xf32> to vector<12x1xf32>
    %105 = vector.broadcast %104 : vector<12x1xf32> to vector<12x12xf32>
    %106 = arith.subf %102, %105 : vector<12x12xf32>
    %107 = math.exp %106 : vector<12x12xf32>
    %cst_74 = arith.constant dense<0.000000e+00> : vector<12xf32>
    %108 = vector.multi_reduction <add>, %107, %cst_74 [1] : vector<12x12xf32> to vector<12xf32>
    %109 = vector.shape_cast %108 : vector<12xf32> to vector<12x1xf32>
    %110 = vector.broadcast %109 : vector<12x1xf32> to vector<12x12xf32>
    %111 = arith.divf %107, %110 : vector<12x12xf32>
    %112 = vector.extract_strided_slice %96 {offsets = [0, 0], sizes = [12, 8], strides = [1, 1]} : vector<12x32xf32> to vector<12x8xf32>
    %cst_75 = arith.constant dense<0.000000e+00> : vector<12x8xf32>
    %113 = tpu.matmul %111, %112, %cst_75 {dimension_numbers = #tpu.dot_dimension_numbers<[1], [0], [0], [1], [0, 0, 1, 1], [], []>} : vector<12x12xf32>, vector<12x8xf32>, vector<12x8xf32> -> vector<12x8xf32>
    %114 = vector.extract_strided_slice %94 {offsets = [0, 8], sizes = [12, 8], strides = [1, 1]} : vector<12x32xf32> to vector<12x8xf32>
    %115 = vector.extract_strided_slice %95 {offsets = [0, 8], sizes = [12, 8], strides = [1, 1]} : vector<12x32xf32> to vector<12x8xf32>
    %cst_76 = arith.constant dense<0.000000e+00> : vector<12x12xf32>
    %116 = tpu.matmul %114, %115, %cst_76 {dimension_numbers = #tpu.dot_dimension_numbers<[1], [1], [0], [0], [0, 0, 1, 0], [], []>} : vector<12x8xf32>, vector<12x8xf32>, vector<12x12xf32> -> vector<12x12xf32>
    %cst_77 = arith.constant 0.353553385 : f32
    %117 = vector.broadcast %cst_77 : f32 to vector<12x12xf32>
    %118 = arith.mulf %116, %117 : vector<12x12xf32>
    %119 = arith.addf %118, %17 : vector<12x12xf32>
    %cst_78 = arith.constant dense<0xFF800000> : vector<12xf32>
    %120 = vector.multi_reduction <maximumf>, %119, %cst_78 [1] : vector<12x12xf32> to vector<12xf32>
    %121 = vector.shape_cast %120 : vector<12xf32> to vector<12x1xf32>
    %122 = vector.broadcast %121 : vector<12x1xf32> to vector<12x12xf32>
    %123 = arith.subf %119, %122 : vector<12x12xf32>
    %124 = math.exp %123 : vector<12x12xf32>
    %cst_79 = arith.constant dense<0.000000e+00> : vector<12xf32>
    %125 = vector.multi_reduction <add>, %124, %cst_79 [1] : vector<12x12xf32> to vector<12xf32>
    %126 = vector.shape_cast %125 : vector<12xf32> to vector<12x1xf32>
    %127 = vector.broadcast %126 : vector<12x1xf32> to vector<12x12xf32>
    %128 = arith.divf %124, %127 : vector<12x12xf32>
    %129 = vector.extract_strided_slice %96 {offsets = [0, 8], sizes = [12, 8], strides = [1, 1]} : vector<12x32xf32> to vector<12x8xf32>
    %cst_80 = arith.constant dense<0.000000e+00> : vector<12x8xf32>
    %130 = tpu.matmul %128, %129, %cst_80 {dimension_numbers = #tpu.dot_dimension_numbers<[1], [0], [0], [1], [0, 0, 1, 1], [], []>} : vector<12x12xf32>, vector<12x8xf32>, vector<12x8xf32> -> vector<12x8xf32>
    %131 = vector.extract_strided_slice %94 {offsets = [0, 16], sizes = [12, 8], strides = [1, 1]} : vector<12x32xf32> to vector<12x8xf32>
    %132 = vector.extract_strided_slice %95 {offsets = [0, 16], sizes = [12, 8], strides = [1, 1]} : vector<12x32xf32> to vector<12x8xf32>
    %cst_81 = arith.constant dense<0.000000e+00> : vector<12x12xf32>
    %133 = tpu.matmul %131, %132, %cst_81 {dimension_numbers = #tpu.dot_dimension_numbers<[1], [1], [0], [0], [0, 0, 1, 0], [], []>} : vector<12x8xf32>, vector<12x8xf32>, vector<12x12xf32> -> vector<12x12xf32>
    %cst_82 = arith.constant 0.353553385 : f32
    %134 = vector.broadcast %cst_82 : f32 to vector<12x12xf32>
    %135 = arith.mulf %133, %134 : vector<12x12xf32>
    %136 = arith.addf %135, %17 : vector<12x12xf32>
    %cst_83 = arith.constant dense<0xFF800000> : vector<12xf32>
    %137 = vector.multi_reduction <maximumf>, %136, %cst_83 [1] : vector<12x12xf32> to vector<12xf32>
    %138 = vector.shape_cast %137 : vector<12xf32> to vector<12x1xf32>
    %139 = vector.broadcast %138 : vector<12x1xf32> to vector<12x12xf32>
    %140 = arith.subf %136, %139 : vector<12x12xf32>
    %141 = math.exp %140 : vector<12x12xf32>
    %cst_84 = arith.constant dense<0.000000e+00> : vector<12xf32>
    %142 = vector.multi_reduction <add>, %141, %cst_84 [1] : vector<12x12xf32> to vector<12xf32>
    %143 = vector.shape_cast %142 : vector<12xf32> to vector<12x1xf32>
    %144 = vector.broadcast %143 : vector<12x1xf32> to vector<12x12xf32>
    %145 = arith.divf %141, %144 : vector<12x12xf32>
    %146 = vector.extract_strided_slice %96 {offsets = [0, 16], sizes = [12, 8], strides = [1, 1]} : vector<12x32xf32> to vector<12x8xf32>
    %cst_85 = arith.constant dense<0.000000e+00> : vector<12x8xf32>
    %147 = tpu.matmul %145, %146, %cst_85 {dimension_numbers = #tpu.dot_dimension_numbers<[1], [0], [0], [1], [0, 0, 1, 1], [], []>} : vector<12x12xf32>, vector<12x8xf32>, vector<12x8xf32> -> vector<12x8xf32>
    %148 = vector.extract_strided_slice %94 {offsets = [0, 24], sizes = [12, 8], strides = [1, 1]} : vector<12x32xf32> to vector<12x8xf32>
    %149 = vector.extract_strided_slice %95 {offsets = [0, 24], sizes = [12, 8], strides = [1, 1]} : vector<12x32xf32> to vector<12x8xf32>
    %cst_86 = arith.constant dense<0.000000e+00> : vector<12x12xf32>
    %150 = tpu.matmul %148, %149, %cst_86 {dimension_numbers = #tpu.dot_dimension_numbers<[1], [1], [0], [0], [0, 0, 1, 0], [], []>} : vector<12x8xf32>, vector<12x8xf32>, vector<12x12xf32> -> vector<12x12xf32>
    %cst_87 = arith.constant 0.353553385 : f32
    %151 = vector.broadcast %cst_87 : f32 to vector<12x12xf32>
    %152 = arith.mulf %150, %151 : vector<12x12xf32>
    %153 = arith.addf %152, %17 : vector<12x12xf32>
    %cst_88 = arith.constant dense<0xFF800000> : vector<12xf32>
    %154 = vector.multi_reduction <maximumf>, %153, %cst_88 [1] : vector<12x12xf32> to vector<12xf32>
    %155 = vector.shape_cast %154 : vector<12xf32> to vector<12x1xf32>
    %156 = vector.broadcast %155 : vector<12x1xf32> to vector<12x12xf32>
    %157 = arith.subf %153, %156 : vector<12x12xf32>
    %158 = math.exp %157 : vector<12x12xf32>
    %cst_89 = arith.constant dense<0.000000e+00> : vector<12xf32>
    %159 = vector.multi_reduction <add>, %158, %cst_89 [1] : vector<12x12xf32> to vector<12xf32>
    %160 = vector.shape_cast %159 : vector<12xf32> to vector<12x1xf32>
    %161 = vector.broadcast %160 : vector<12x1xf32> to vector<12x12xf32>
    %162 = arith.divf %158, %161 : vector<12x12xf32>
    %163 = vector.extract_strided_slice %96 {offsets = [0, 24], sizes = [12, 8], strides = [1, 1]} : vector<12x32xf32> to vector<12x8xf32>
    %cst_90 = arith.constant dense<0.000000e+00> : vector<12x8xf32>
    %164 = tpu.matmul %162, %163, %cst_90 {dimension_numbers = #tpu.dot_dimension_numbers<[1], [0], [0], [1], [0, 0, 1, 1], [], []>} : vector<12x12xf32>, vector<12x8xf32>, vector<12x8xf32> -> vector<12x8xf32>
    %165 = tpu.concatenate %113, %130, %147, %164 in 1 : vector<12x8xf32>, vector<12x8xf32>, vector<12x8xf32>, vector<12x8xf32> -> vector<12x32xf32>
    %cst_91 = arith.constant dense<0.000000e+00> : vector<12x32xf32>
    %166 = tpu.matmul %165, %60, %cst_91 {dimension_numbers = #tpu.dot_dimension_numbers<[1], [0], [0], [1], [0, 0, 1, 1], [], []>} : vector<12x32xf32>, vector<32x32xf32>, vector<12x32xf32> -> vector<12x32xf32>
    %167 = vector.broadcast %62 : vector<1x32xf32> to vector<12x32xf32>
    %168 = arith.addf %166, %167 : vector<12x32xf32>
    %169 = arith.addf %53, %168 : vector<12x32xf32>
    %cst_92 = arith.constant dense<0.000000e+00> : vector<12xf32>
    %170 = vector.multi_reduction <add>, %169, %cst_92 [1] : vector<12x32xf32> to vector<12xf32>
    %171 = vector.shape_cast %170 : vector<12xf32> to vector<12x1xf32>
    %cst_93 = arith.constant 3.200000e+01 : f32
    %172 = vector.broadcast %cst_93 : f32 to vector<12x1xf32>
    %173 = arith.divf %171, %172 : vector<12x1xf32>
    %174 = vector.broadcast %173 : vector<12x1xf32> to vector<12x32xf32>
    %175 = arith.subf %169, %174 : vector<12x32xf32>
    %176 = arith.mulf %175, %175 : vector<12x32xf32>
    %cst_94 = arith.constant dense<0.000000e+00> : vector<12xf32>
    %177 = vector.multi_reduction <add>, %176, %cst_94 [1] : vector<12x32xf32> to vector<12xf32>
    %178 = vector.shape_cast %177 : vector<12xf32> to vector<12x1xf32>
    %cst_95 = arith.constant 3.200000e+01 : f32
    %179 = vector.broadcast %cst_95 : f32 to vector<12x1xf32>
    %180 = arith.divf %178, %179 : vector<12x1xf32>
    %cst_96 = arith.constant 9.99999974E-6 : f32
    %181 = vector.broadcast %cst_96 : f32 to vector<12x1xf32>
    %182 = arith.addf %180, %181 : vector<12x1xf32>
    %183 = math.rsqrt %182 : vector<12x1xf32>
    %184 = vector.broadcast %183 : vector<12x1xf32> to vector<12x32xf32>
    %185 = arith.mulf %175, %184 : vector<12x32xf32>
    %186 = vector.broadcast %80 : vector<1x32xf32> to vector<12x32xf32>
    %187 = arith.mulf %185, %186 : vector<12x32xf32>
    %188 = vector.broadcast %82 : vector<1x32xf32> to vector<12x32xf32>
    %189 = arith.addf %187, %188 : vector<12x32xf32>
    %cst_97 = arith.constant dense<0.000000e+00> : vector<2x32xf32>
    %190 = tpu.matmul %48, %189, %cst_97 {dimension_numbers = #tpu.dot_dimension_numbers<[1], [0], [0], [1], [0, 0, 1, 1], [], []>} : vector<2x12xf32>, vector<12x32xf32>, vector<2x32xf32> -> vector<2x32xf32>
    %191 = vector.extract_strided_slice %64 {offsets = [0, 0], sizes = [32, 32], strides = [1, 1]} : vector<32x96xf32> to vector<32x32xf32>
    %cst_98 = arith.constant dense<0.000000e+00> : vector<2x32xf32>
    %192 = tpu.matmul %190, %191, %cst_98 {dimension_numbers = #tpu.dot_dimension_numbers<[1], [0], [0], [1], [0, 0, 1, 1], [], []>} : vector<2x32xf32>, vector<32x32xf32>, vector<2x32xf32> -> vector<2x32xf32>
    %193 = vector.extract_strided_slice %66 {offsets = [0, 0], sizes = [1, 32], strides = [1, 1]} : vector<1x96xf32> to vector<1x32xf32>
    %194 = vector.broadcast %193 : vector<1x32xf32> to vector<2x32xf32>
    %195 = arith.addf %192, %194 : vector<2x32xf32>
    %196 = vector.extract_strided_slice %64 {offsets = [0, 32], sizes = [32, 32], strides = [1, 1]} : vector<32x96xf32> to vector<32x32xf32>
    %cst_99 = arith.constant dense<0.000000e+00> : vector<16x32xf32>
    %197 = tpu.matmul %54, %196, %cst_99 {dimension_numbers = #tpu.dot_dimension_numbers<[1], [0], [0], [1], [0, 0, 1, 1], [], []>} : vector<16x32xf32>, vector<32x32xf32>, vector<16x32xf32> -> vector<16x32xf32>
    %198 = vector.extract_strided_slice %66 {offsets = [0, 32], sizes = [1, 32], strides = [1, 1]} : vector<1x96xf32> to vector<1x32xf32>
    %199 = vector.broadcast %198 : vector<1x32xf32> to vector<16x32xf32>
    %200 = arith.addf %197, %199 : vector<16x32xf32>
    %201 = vector.extract_strided_slice %64 {offsets = [0, 64], sizes = [32, 32], strides = [1, 1]} : vector<32x96xf32> to vector<32x32xf32>
    %cst_100 = arith.constant dense<0.000000e+00> : vector<16x32xf32>
    %202 = tpu.matmul %54, %201, %cst_100 {dimension_numbers = #tpu.dot_dimension_numbers<[1], [0], [0], [1], [0, 0, 1, 1], [], []>} : vector<16x32xf32>, vector<32x32xf32>, vector<16x32xf32> -> vector<16x32xf32>
    %203 = vector.extract_strided_slice %66 {offsets = [0, 64], sizes = [1, 32], strides = [1, 1]} : vector<1x96xf32> to vector<1x32xf32>
    %204 = vector.broadcast %203 : vector<1x32xf32> to vector<16x32xf32>
    %205 = arith.addf %202, %204 : vector<16x32xf32>
    %206 = vector.extract_strided_slice %195 {offsets = [0, 0], sizes = [2, 8], strides = [1, 1]} : vector<2x32xf32> to vector<2x8xf32>
    %207 = vector.extract_strided_slice %200 {offsets = [0, 0], sizes = [16, 8], strides = [1, 1]} : vector<16x32xf32> to vector<16x8xf32>
    %cst_101 = arith.constant dense<0.000000e+00> : vector<2x16xf32>
    %208 = tpu.matmul %206, %207, %cst_101 {dimension_numbers = #tpu.dot_dimension_numbers<[1], [1], [0], [0], [0, 0, 1, 0], [], []>} : vector<2x8xf32>, vector<16x8xf32>, vector<2x16xf32> -> vector<2x16xf32>
    %cst_102 = arith.constant 0.353553385 : f32
    %209 = vector.broadcast %cst_102 : f32 to vector<2x16xf32>
    %210 = arith.mulf %208, %209 : vector<2x16xf32>
    %211 = arith.addf %210, %30 : vector<2x16xf32>
    %cst_103 = arith.constant dense<0xFF800000> : vector<2xf32>
    %212 = vector.multi_reduction <maximumf>, %211, %cst_103 [1] : vector<2x16xf32> to vector<2xf32>
    %213 = vector.shape_cast %212 : vector<2xf32> to vector<2x1xf32>
    %214 = vector.broadcast %213 : vector<2x1xf32> to vector<2x16xf32>
    %215 = arith.subf %211, %214 : vector<2x16xf32>
    %216 = math.exp %215 : vector<2x16xf32>
    %cst_104 = arith.constant dense<0.000000e+00> : vector<2xf32>
    %217 = vector.multi_reduction <add>, %216, %cst_104 [1] : vector<2x16xf32> to vector<2xf32>
    %218 = vector.shape_cast %217 : vector<2xf32> to vector<2x1xf32>
    %219 = vector.broadcast %218 : vector<2x1xf32> to vector<2x16xf32>
    %220 = arith.divf %216, %219 : vector<2x16xf32>
    %221 = vector.extract_strided_slice %205 {offsets = [0, 0], sizes = [16, 8], strides = [1, 1]} : vector<16x32xf32> to vector<16x8xf32>
    %cst_105 = arith.constant dense<0.000000e+00> : vector<2x8xf32>
    %222 = tpu.matmul %220, %221, %cst_105 {dimension_numbers = #tpu.dot_dimension_numbers<[1], [0], [0], [1], [0, 0, 1, 1], [], []>} : vector<2x16xf32>, vector<16x8xf32>, vector<2x8xf32> -> vector<2x8xf32>
    %223 = vector.extract_strided_slice %195 {offsets = [0, 8], sizes = [2, 8], strides = [1, 1]} : vector<2x32xf32> to vector<2x8xf32>
    %224 = vector.extract_strided_slice %200 {offsets = [0, 8], sizes = [16, 8], strides = [1, 1]} : vector<16x32xf32> to vector<16x8xf32>
    %cst_106 = arith.constant dense<0.000000e+00> : vector<2x16xf32>
    %225 = tpu.matmul %223, %224, %cst_106 {dimension_numbers = #tpu.dot_dimension_numbers<[1], [1], [0], [0], [0, 0, 1, 0], [], []>} : vector<2x8xf32>, vector<16x8xf32>, vector<2x16xf32> -> vector<2x16xf32>
    %cst_107 = arith.constant 0.353553385 : f32
    %226 = vector.broadcast %cst_107 : f32 to vector<2x16xf32>
    %227 = arith.mulf %225, %226 : vector<2x16xf32>
    %228 = arith.addf %227, %30 : vector<2x16xf32>
    %cst_108 = arith.constant dense<0xFF800000> : vector<2xf32>
    %229 = vector.multi_reduction <maximumf>, %228, %cst_108 [1] : vector<2x16xf32> to vector<2xf32>
    %230 = vector.shape_cast %229 : vector<2xf32> to vector<2x1xf32>
    %231 = vector.broadcast %230 : vector<2x1xf32> to vector<2x16xf32>
    %232 = arith.subf %228, %231 : vector<2x16xf32>
    %233 = math.exp %232 : vector<2x16xf32>
    %cst_109 = arith.constant dense<0.000000e+00> : vector<2xf32>
    %234 = vector.multi_reduction <add>, %233, %cst_109 [1] : vector<2x16xf32> to vector<2xf32>
    %235 = vector.shape_cast %234 : vector<2xf32> to vector<2x1xf32>
    %236 = vector.broadcast %235 : vector<2x1xf32> to vector<2x16xf32>
    %237 = arith.divf %233, %236 : vector<2x16xf32>
    %238 = vector.extract_strided_slice %205 {offsets = [0, 8], sizes = [16, 8], strides = [1, 1]} : vector<16x32xf32> to vector<16x8xf32>
    %cst_110 = arith.constant dense<0.000000e+00> : vector<2x8xf32>
    %239 = tpu.matmul %237, %238, %cst_110 {dimension_numbers = #tpu.dot_dimension_numbers<[1], [0], [0], [1], [0, 0, 1, 1], [], []>} : vector<2x16xf32>, vector<16x8xf32>, vector<2x8xf32> -> vector<2x8xf32>
    %240 = vector.extract_strided_slice %195 {offsets = [0, 16], sizes = [2, 8], strides = [1, 1]} : vector<2x32xf32> to vector<2x8xf32>
    %241 = vector.extract_strided_slice %200 {offsets = [0, 16], sizes = [16, 8], strides = [1, 1]} : vector<16x32xf32> to vector<16x8xf32>
    %cst_111 = arith.constant dense<0.000000e+00> : vector<2x16xf32>
    %242 = tpu.matmul %240, %241, %cst_111 {dimension_numbers = #tpu.dot_dimension_numbers<[1], [1], [0], [0], [0, 0, 1, 0], [], []>} : vector<2x8xf32>, vector<16x8xf32>, vector<2x16xf32> -> vector<2x16xf32>
    %cst_112 = arith.constant 0.353553385 : f32
    %243 = vector.broadcast %cst_112 : f32 to vector<2x16xf32>
    %244 = arith.mulf %242, %243 : vector<2x16xf32>
    %245 = arith.addf %244, %30 : vector<2x16xf32>
    %cst_113 = arith.constant dense<0xFF800000> : vector<2xf32>
    %246 = vector.multi_reduction <maximumf>, %245, %cst_113 [1] : vector<2x16xf32> to vector<2xf32>
    %247 = vector.shape_cast %246 : vector<2xf32> to vector<2x1xf32>
    %248 = vector.broadcast %247 : vector<2x1xf32> to vector<2x16xf32>
    %249 = arith.subf %245, %248 : vector<2x16xf32>
    %250 = math.exp %249 : vector<2x16xf32>
    %cst_114 = arith.constant dense<0.000000e+00> : vector<2xf32>
    %251 = vector.multi_reduction <add>, %250, %cst_114 [1] : vector<2x16xf32> to vector<2xf32>
    %252 = vector.shape_cast %251 : vector<2xf32> to vector<2x1xf32>
    %253 = vector.broadcast %252 : vector<2x1xf32> to vector<2x16xf32>
    %254 = arith.divf %250, %253 : vector<2x16xf32>
    %255 = vector.extract_strided_slice %205 {offsets = [0, 16], sizes = [16, 8], strides = [1, 1]} : vector<16x32xf32> to vector<16x8xf32>
    %cst_115 = arith.constant dense<0.000000e+00> : vector<2x8xf32>
    %256 = tpu.matmul %254, %255, %cst_115 {dimension_numbers = #tpu.dot_dimension_numbers<[1], [0], [0], [1], [0, 0, 1, 1], [], []>} : vector<2x16xf32>, vector<16x8xf32>, vector<2x8xf32> -> vector<2x8xf32>
    %257 = vector.extract_strided_slice %195 {offsets = [0, 24], sizes = [2, 8], strides = [1, 1]} : vector<2x32xf32> to vector<2x8xf32>
    %258 = vector.extract_strided_slice %200 {offsets = [0, 24], sizes = [16, 8], strides = [1, 1]} : vector<16x32xf32> to vector<16x8xf32>
    %cst_116 = arith.constant dense<0.000000e+00> : vector<2x16xf32>
    %259 = tpu.matmul %257, %258, %cst_116 {dimension_numbers = #tpu.dot_dimension_numbers<[1], [1], [0], [0], [0, 0, 1, 0], [], []>} : vector<2x8xf32>, vector<16x8xf32>, vector<2x16xf32> -> vector<2x16xf32>
    %cst_117 = arith.constant 0.353553385 : f32
    %260 = vector.broadcast %cst_117 : f32 to vector<2x16xf32>
    %261 = arith.mulf %259, %260 : vector<2x16xf32>
    %262 = arith.addf %261, %30 : vector<2x16xf32>
    %cst_118 = arith.constant dense<0xFF800000> : vector<2xf32>
    %263 = vector.multi_reduction <maximumf>, %262, %cst_118 [1] : vector<2x16xf32> to vector<2xf32>
    %264 = vector.shape_cast %263 : vector<2xf32> to vector<2x1xf32>
    %265 = vector.broadcast %264 : vector<2x1xf32> to vector<2x16xf32>
    %266 = arith.subf %262, %265 : vector<2x16xf32>
    %267 = math.exp %266 : vector<2x16xf32>
    %cst_119 = arith.constant dense<0.000000e+00> : vector<2xf32>
    %268 = vector.multi_reduction <add>, %267, %cst_119 [1] : vector<2x16xf32> to vector<2xf32>
    %269 = vector.shape_cast %268 : vector<2xf32> to vector<2x1xf32>
    %270 = vector.broadcast %269 : vector<2x1xf32> to vector<2x16xf32>
    %271 = arith.divf %267, %270 : vector<2x16xf32>
    %272 = vector.extract_strided_slice %205 {offsets = [0, 24], sizes = [16, 8], strides = [1, 1]} : vector<16x32xf32> to vector<16x8xf32>
    %cst_120 = arith.constant dense<0.000000e+00> : vector<2x8xf32>
    %273 = tpu.matmul %271, %272, %cst_120 {dimension_numbers = #tpu.dot_dimension_numbers<[1], [0], [0], [1], [0, 0, 1, 1], [], []>} : vector<2x16xf32>, vector<16x8xf32>, vector<2x8xf32> -> vector<2x8xf32>
    %274 = tpu.concatenate %222, %239, %256, %273 in 1 : vector<2x8xf32>, vector<2x8xf32>, vector<2x8xf32>, vector<2x8xf32> -> vector<2x32xf32>
    %cst_121 = arith.constant dense<0.000000e+00> : vector<2x32xf32>
    %275 = tpu.matmul %274, %68, %cst_121 {dimension_numbers = #tpu.dot_dimension_numbers<[1], [0], [0], [1], [0, 0, 1, 1], [], []>} : vector<2x32xf32>, vector<32x32xf32>, vector<2x32xf32> -> vector<2x32xf32>
    %276 = vector.broadcast %70 : vector<1x32xf32> to vector<2x32xf32>
    %277 = arith.addf %275, %276 : vector<2x32xf32>
    %278 = arith.addf %190, %277 : vector<2x32xf32>
    %cst_122 = arith.constant dense<0.000000e+00> : vector<2xf32>
    %279 = vector.multi_reduction <add>, %278, %cst_122 [1] : vector<2x32xf32> to vector<2xf32>
    %280 = vector.shape_cast %279 : vector<2xf32> to vector<2x1xf32>
    %cst_123 = arith.constant 3.200000e+01 : f32
    %281 = vector.broadcast %cst_123 : f32 to vector<2x1xf32>
    %282 = arith.divf %280, %281 : vector<2x1xf32>
    %283 = vector.broadcast %282 : vector<2x1xf32> to vector<2x32xf32>
    %284 = arith.subf %278, %283 : vector<2x32xf32>
    %285 = arith.mulf %284, %284 : vector<2x32xf32>
    %cst_124 = arith.constant dense<0.000000e+00> : vector<2xf32>
    %286 = vector.multi_reduction <add>, %285, %cst_124 [1] : vector<2x32xf32> to vector<2xf32>
    %287 = vector.shape_cast %286 : vector<2xf32> to vector<2x1xf32>
    %cst_125 = arith.constant 3.200000e+01 : f32
    %288 = vector.broadcast %cst_125 : f32 to vector<2x1xf32>
    %289 = arith.divf %287, %288 : vector<2x1xf32>
    %cst_126 = arith.constant 9.99999974E-6 : f32
    %290 = vector.broadcast %cst_126 : f32 to vector<2x1xf32>
    %291 = arith.addf %289, %290 : vector<2x1xf32>
    %292 = math.rsqrt %291 : vector<2x1xf32>
    %293 = vector.broadcast %292 : vector<2x1xf32> to vector<2x32xf32>
    %294 = arith.mulf %284, %293 : vector<2x32xf32>
    %295 = vector.broadcast %84 : vector<1x32xf32> to vector<2x32xf32>
    %296 = arith.mulf %294, %295 : vector<2x32xf32>
    %297 = vector.broadcast %86 : vector<1x32xf32> to vector<2x32xf32>
    %298 = arith.addf %296, %297 : vector<2x32xf32>
    %299 = vector.broadcast %52 : vector<12x1xf32> to vector<12x32xf32>
    %300 = arith.mulf %189, %299 : vector<12x32xf32>
    %cst_127 = arith.constant dense<0.000000e+00> : vector<12x32xf32>
    %301 = tpu.matmul %39, %298, %cst_127 {dimension_numbers = #tpu.dot_dimension_numbers<[1], [0], [0], [1], [0, 0, 1, 1], [], []>} : vector<12x2xf32>, vector<2x32xf32>, vector<12x32xf32> -> vector<12x32xf32>
    %302 = arith.addf %300, %301 : vector<12x32xf32>
    %cst_128 = arith.constant dense<0.000000e+00> : vector<12x64xf32>
    %303 = tpu.matmul %302, %72, %cst_128 {dimension_numbers = #tpu.dot_dimension_numbers<[1], [0], [0], [1], [0, 0, 1, 1], [], []>} : vector<12x32xf32>, vector<32x64xf32>, vector<12x64xf32> -> vector<12x64xf32>
    %304 = vector.broadcast %74 : vector<1x64xf32> to vector<12x64xf32>
    %305 = arith.addf %303, %304 : vector<12x64xf32>
    %cst_129 = arith.constant 0.000000e+00 : f32
    %306 = vector.broadcast %cst_129 : f32 to vector<12x64xf32>
    %307 = arith.maximumf %305, %306 : vector<12x64xf32>
    %cst_130 = arith.constant dense<0.000000e+00> : vector<12x32xf32>
    %308 = tpu.matmul %307, %76, %cst_130 {dimension_numbers = #tpu.dot_dimension_numbers<[1], [0], [0], [1], [0, 0, 1, 1], [], []>} : vector<12x64xf32>, vector<64x32xf32>, vector<12x32xf32> -> vector<12x32xf32>
    %309 = vector.broadcast %78 : vector<1x32xf32> to vector<12x32xf32>
    %310 = arith.addf %308, %309 : vector<12x32xf32>
    %311 = arith.addf %302, %310 : vector<12x32xf32>
    %cst_131 = arith.constant dense<0.000000e+00> : vector<12xf32>
    %312 = vector.multi_reduction <add>, %311, %cst_131 [1] : vector<12x32xf32> to vector<12xf32>
    %313 = vector.shape_cast %312 : vector<12xf32> to vector<12x1xf32>
    %cst_132 = arith.constant 3.200000e+01 : f32
    %314 = vector.broadcast %cst_132 : f32 to vector<12x1xf32>
    %315 = arith.divf %313, %314 : vector<12x1xf32>
    %316 = vector.broadcast %315 : vector<12x1xf32> to vector<12x32xf32>
    %317 = arith.subf %311, %316 : vector<12x32xf32>
    %318 = arith.mulf %317, %317 : vector<12x32xf32>
    %cst_133 = arith.constant dense<0.000000e+00> : vector<12xf32>
    %319 = vector.multi_reduction <add>, %318, %cst_133 [1] : vector<12x32xf32> to vector<12xf32>
    %320 = vector.shape_cast %319 : vector<12xf32> to vector<12x1xf32>
    %cst_134 = arith.constant 3.200000e+01 : f32
    %321 = vector.broadcast %cst_134 : f32 to vector<12x1xf32>
    %322 = arith.divf %320, %321 : vector<12x1xf32>
    %cst_135 = arith.constant 9.99999974E-6 : f32
    %323 = vector.broadcast %cst_135 : f32 to vector<12x1xf32>
    %324 = arith.addf %322, %323 : vector<12x1xf32>
    %325 = math.rsqrt %324 : vector<12x1xf32>
    %326 = vector.broadcast %325 : vector<12x1xf32> to vector<12x32xf32>
    %327 = arith.mulf %317, %326 : vector<12x32xf32>
    %328 = vector.broadcast %88 : vector<1x32xf32> to vector<12x32xf32>
    %329 = arith.mulf %327, %328 : vector<12x32xf32>
    %330 = vector.broadcast %90 : vector<1x32xf32> to vector<12x32xf32>
    %331 = arith.addf %329, %330 : vector<12x32xf32>
    %c1 = arith.constant 1 : index
    %c0_136 = arith.constant 0 : index
    %c0_137 = arith.constant 0 : index
    %332 = vector.load %arg2[%c1, %c0_136, %c0_137] : memref<2x32x96xf32, #tpu.memory_space<vmem>>, vector<1x32x96xf32>
    %333 = vector.shape_cast %332 : vector<1x32x96xf32> to vector<32x96xf32>
    %c1_138 = arith.constant 1 : index
    %c0_139 = arith.constant 0 : index
    %c0_140 = arith.constant 0 : index
    %334 = vector.load %arg3[%c1_138, %c0_139, %c0_140] : memref<2x1x96xf32, #tpu.memory_space<vmem>>, vector<1x1x96xf32>
    %335 = vector.shape_cast %334 : vector<1x1x96xf32> to vector<1x96xf32>
    %c1_141 = arith.constant 1 : index
    %c0_142 = arith.constant 0 : index
    %c0_143 = arith.constant 0 : index
    %336 = vector.load %arg4[%c1_141, %c0_142, %c0_143] : memref<2x32x32xf32, #tpu.memory_space<vmem>>, vector<1x32x32xf32>
    %337 = vector.shape_cast %336 : vector<1x32x32xf32> to vector<32x32xf32>
    %c1_144 = arith.constant 1 : index
    %c0_145 = arith.constant 0 : index
    %c0_146 = arith.constant 0 : index
    %338 = vector.load %arg5[%c1_144, %c0_145, %c0_146] : memref<2x1x32xf32, #tpu.memory_space<vmem>>, vector<1x1x32xf32>
    %339 = vector.shape_cast %338 : vector<1x1x32xf32> to vector<1x32xf32>
    %c1_147 = arith.constant 1 : index
    %c0_148 = arith.constant 0 : index
    %c0_149 = arith.constant 0 : index
    %340 = vector.load %arg6[%c1_147, %c0_148, %c0_149] : memref<2x32x96xf32, #tpu.memory_space<vmem>>, vector<1x32x96xf32>
    %341 = vector.shape_cast %340 : vector<1x32x96xf32> to vector<32x96xf32>
    %c1_150 = arith.constant 1 : index
    %c0_151 = arith.constant 0 : index
    %c0_152 = arith.constant 0 : index
    %342 = vector.load %arg7[%c1_150, %c0_151, %c0_152] : memref<2x1x96xf32, #tpu.memory_space<vmem>>, vector<1x1x96xf32>
    %343 = vector.shape_cast %342 : vector<1x1x96xf32> to vector<1x96xf32>
    %c1_153 = arith.constant 1 : index
    %c0_154 = arith.constant 0 : index
    %c0_155 = arith.constant 0 : index
    %344 = vector.load %arg8[%c1_153, %c0_154, %c0_155] : memref<2x32x32xf32, #tpu.memory_space<vmem>>, vector<1x32x32xf32>
    %345 = vector.shape_cast %344 : vector<1x32x32xf32> to vector<32x32xf32>
    %c1_156 = arith.constant 1 : index
    %c0_157 = arith.constant 0 : index
    %c0_158 = arith.constant 0 : index
    %346 = vector.load %arg9[%c1_156, %c0_157, %c0_158] : memref<2x1x32xf32, #tpu.memory_space<vmem>>, vector<1x1x32xf32>
    %347 = vector.shape_cast %346 : vector<1x1x32xf32> to vector<1x32xf32>
    %c1_159 = arith.constant 1 : index
    %c0_160 = arith.constant 0 : index
    %c0_161 = arith.constant 0 : index
    %348 = vector.load %arg10[%c1_159, %c0_160, %c0_161] : memref<2x32x64xf32, #tpu.memory_space<vmem>>, vector<1x32x64xf32>
    %349 = vector.shape_cast %348 : vector<1x32x64xf32> to vector<32x64xf32>
    %c1_162 = arith.constant 1 : index
    %c0_163 = arith.constant 0 : index
    %c0_164 = arith.constant 0 : index
    %350 = vector.load %arg11[%c1_162, %c0_163, %c0_164] : memref<2x1x64xf32, #tpu.memory_space<vmem>>, vector<1x1x64xf32>
    %351 = vector.shape_cast %350 : vector<1x1x64xf32> to vector<1x64xf32>
    %c1_165 = arith.constant 1 : index
    %c0_166 = arith.constant 0 : index
    %c0_167 = arith.constant 0 : index
    %352 = vector.load %arg12[%c1_165, %c0_166, %c0_167] : memref<2x64x32xf32, #tpu.memory_space<vmem>>, vector<1x64x32xf32>
    %353 = vector.shape_cast %352 : vector<1x64x32xf32> to vector<64x32xf32>
    %c1_168 = arith.constant 1 : index
    %c0_169 = arith.constant 0 : index
    %c0_170 = arith.constant 0 : index
    %354 = vector.load %arg13[%c1_168, %c0_169, %c0_170] : memref<2x1x32xf32, #tpu.memory_space<vmem>>, vector<1x1x32xf32>
    %355 = vector.shape_cast %354 : vector<1x1x32xf32> to vector<1x32xf32>
    %c1_171 = arith.constant 1 : index
    %c0_172 = arith.constant 0 : index
    %c0_173 = arith.constant 0 : index
    %356 = vector.load %arg14[%c1_171, %c0_172, %c0_173] : memref<2x1x32xf32, #tpu.memory_space<vmem>>, vector<1x1x32xf32>
    %357 = vector.shape_cast %356 : vector<1x1x32xf32> to vector<1x32xf32>
    %c1_174 = arith.constant 1 : index
    %c0_175 = arith.constant 0 : index
    %c0_176 = arith.constant 0 : index
    %358 = vector.load %arg15[%c1_174, %c0_175, %c0_176] : memref<2x1x32xf32, #tpu.memory_space<vmem>>, vector<1x1x32xf32>
    %359 = vector.shape_cast %358 : vector<1x1x32xf32> to vector<1x32xf32>
    %c1_177 = arith.constant 1 : index
    %c0_178 = arith.constant 0 : index
    %c0_179 = arith.constant 0 : index
    %360 = vector.load %arg16[%c1_177, %c0_178, %c0_179] : memref<2x1x32xf32, #tpu.memory_space<vmem>>, vector<1x1x32xf32>
    %361 = vector.shape_cast %360 : vector<1x1x32xf32> to vector<1x32xf32>
    %c1_180 = arith.constant 1 : index
    %c0_181 = arith.constant 0 : index
    %c0_182 = arith.constant 0 : index
    %362 = vector.load %arg17[%c1_180, %c0_181, %c0_182] : memref<2x1x32xf32, #tpu.memory_space<vmem>>, vector<1x1x32xf32>
    %363 = vector.shape_cast %362 : vector<1x1x32xf32> to vector<1x32xf32>
    %c1_183 = arith.constant 1 : index
    %c0_184 = arith.constant 0 : index
    %c0_185 = arith.constant 0 : index
    %364 = vector.load %arg18[%c1_183, %c0_184, %c0_185] : memref<2x1x32xf32, #tpu.memory_space<vmem>>, vector<1x1x32xf32>
    %365 = vector.shape_cast %364 : vector<1x1x32xf32> to vector<1x32xf32>
    %c1_186 = arith.constant 1 : index
    %c0_187 = arith.constant 0 : index
    %c0_188 = arith.constant 0 : index
    %366 = vector.load %arg19[%c1_186, %c0_187, %c0_188] : memref<2x1x32xf32, #tpu.memory_space<vmem>>, vector<1x1x32xf32>
    %367 = vector.shape_cast %366 : vector<1x1x32xf32> to vector<1x32xf32>
    %cst_189 = arith.constant dense<0.000000e+00> : vector<12x96xf32>
    %368 = tpu.matmul %331, %333, %cst_189 {dimension_numbers = #tpu.dot_dimension_numbers<[1], [0], [0], [1], [0, 0, 1, 1], [], []>} : vector<12x32xf32>, vector<32x96xf32>, vector<12x96xf32> -> vector<12x96xf32>
    %369 = vector.broadcast %335 : vector<1x96xf32> to vector<12x96xf32>
    %370 = arith.addf %368, %369 : vector<12x96xf32>
    %371 = vector.extract_strided_slice %370 {offsets = [0, 0], sizes = [12, 32], strides = [1, 1]} : vector<12x96xf32> to vector<12x32xf32>
    %372 = vector.extract_strided_slice %370 {offsets = [0, 32], sizes = [12, 32], strides = [1, 1]} : vector<12x96xf32> to vector<12x32xf32>
    %373 = vector.extract_strided_slice %370 {offsets = [0, 64], sizes = [12, 32], strides = [1, 1]} : vector<12x96xf32> to vector<12x32xf32>
    %374 = vector.extract_strided_slice %371 {offsets = [0, 0], sizes = [12, 8], strides = [1, 1]} : vector<12x32xf32> to vector<12x8xf32>
    %375 = vector.extract_strided_slice %372 {offsets = [0, 0], sizes = [12, 8], strides = [1, 1]} : vector<12x32xf32> to vector<12x8xf32>
    %cst_190 = arith.constant dense<0.000000e+00> : vector<12x12xf32>
    %376 = tpu.matmul %374, %375, %cst_190 {dimension_numbers = #tpu.dot_dimension_numbers<[1], [1], [0], [0], [0, 0, 1, 0], [], []>} : vector<12x8xf32>, vector<12x8xf32>, vector<12x12xf32> -> vector<12x12xf32>
    %cst_191 = arith.constant 0.353553385 : f32
    %377 = vector.broadcast %cst_191 : f32 to vector<12x12xf32>
    %378 = arith.mulf %376, %377 : vector<12x12xf32>
    %379 = arith.addf %378, %17 : vector<12x12xf32>
    %cst_192 = arith.constant dense<0xFF800000> : vector<12xf32>
    %380 = vector.multi_reduction <maximumf>, %379, %cst_192 [1] : vector<12x12xf32> to vector<12xf32>
    %381 = vector.shape_cast %380 : vector<12xf32> to vector<12x1xf32>
    %382 = vector.broadcast %381 : vector<12x1xf32> to vector<12x12xf32>
    %383 = arith.subf %379, %382 : vector<12x12xf32>
    %384 = math.exp %383 : vector<12x12xf32>
    %cst_193 = arith.constant dense<0.000000e+00> : vector<12xf32>
    %385 = vector.multi_reduction <add>, %384, %cst_193 [1] : vector<12x12xf32> to vector<12xf32>
    %386 = vector.shape_cast %385 : vector<12xf32> to vector<12x1xf32>
    %387 = vector.broadcast %386 : vector<12x1xf32> to vector<12x12xf32>
    %388 = arith.divf %384, %387 : vector<12x12xf32>
    %389 = vector.extract_strided_slice %373 {offsets = [0, 0], sizes = [12, 8], strides = [1, 1]} : vector<12x32xf32> to vector<12x8xf32>
    %cst_194 = arith.constant dense<0.000000e+00> : vector<12x8xf32>
    %390 = tpu.matmul %388, %389, %cst_194 {dimension_numbers = #tpu.dot_dimension_numbers<[1], [0], [0], [1], [0, 0, 1, 1], [], []>} : vector<12x12xf32>, vector<12x8xf32>, vector<12x8xf32> -> vector<12x8xf32>
    %391 = vector.extract_strided_slice %371 {offsets = [0, 8], sizes = [12, 8], strides = [1, 1]} : vector<12x32xf32> to vector<12x8xf32>
    %392 = vector.extract_strided_slice %372 {offsets = [0, 8], sizes = [12, 8], strides = [1, 1]} : vector<12x32xf32> to vector<12x8xf32>
    %cst_195 = arith.constant dense<0.000000e+00> : vector<12x12xf32>
    %393 = tpu.matmul %391, %392, %cst_195 {dimension_numbers = #tpu.dot_dimension_numbers<[1], [1], [0], [0], [0, 0, 1, 0], [], []>} : vector<12x8xf32>, vector<12x8xf32>, vector<12x12xf32> -> vector<12x12xf32>
    %cst_196 = arith.constant 0.353553385 : f32
    %394 = vector.broadcast %cst_196 : f32 to vector<12x12xf32>
    %395 = arith.mulf %393, %394 : vector<12x12xf32>
    %396 = arith.addf %395, %17 : vector<12x12xf32>
    %cst_197 = arith.constant dense<0xFF800000> : vector<12xf32>
    %397 = vector.multi_reduction <maximumf>, %396, %cst_197 [1] : vector<12x12xf32> to vector<12xf32>
    %398 = vector.shape_cast %397 : vector<12xf32> to vector<12x1xf32>
    %399 = vector.broadcast %398 : vector<12x1xf32> to vector<12x12xf32>
    %400 = arith.subf %396, %399 : vector<12x12xf32>
    %401 = math.exp %400 : vector<12x12xf32>
    %cst_198 = arith.constant dense<0.000000e+00> : vector<12xf32>
    %402 = vector.multi_reduction <add>, %401, %cst_198 [1] : vector<12x12xf32> to vector<12xf32>
    %403 = vector.shape_cast %402 : vector<12xf32> to vector<12x1xf32>
    %404 = vector.broadcast %403 : vector<12x1xf32> to vector<12x12xf32>
    %405 = arith.divf %401, %404 : vector<12x12xf32>
    %406 = vector.extract_strided_slice %373 {offsets = [0, 8], sizes = [12, 8], strides = [1, 1]} : vector<12x32xf32> to vector<12x8xf32>
    %cst_199 = arith.constant dense<0.000000e+00> : vector<12x8xf32>
    %407 = tpu.matmul %405, %406, %cst_199 {dimension_numbers = #tpu.dot_dimension_numbers<[1], [0], [0], [1], [0, 0, 1, 1], [], []>} : vector<12x12xf32>, vector<12x8xf32>, vector<12x8xf32> -> vector<12x8xf32>
    %408 = vector.extract_strided_slice %371 {offsets = [0, 16], sizes = [12, 8], strides = [1, 1]} : vector<12x32xf32> to vector<12x8xf32>
    %409 = vector.extract_strided_slice %372 {offsets = [0, 16], sizes = [12, 8], strides = [1, 1]} : vector<12x32xf32> to vector<12x8xf32>
    %cst_200 = arith.constant dense<0.000000e+00> : vector<12x12xf32>
    %410 = tpu.matmul %408, %409, %cst_200 {dimension_numbers = #tpu.dot_dimension_numbers<[1], [1], [0], [0], [0, 0, 1, 0], [], []>} : vector<12x8xf32>, vector<12x8xf32>, vector<12x12xf32> -> vector<12x12xf32>
    %cst_201 = arith.constant 0.353553385 : f32
    %411 = vector.broadcast %cst_201 : f32 to vector<12x12xf32>
    %412 = arith.mulf %410, %411 : vector<12x12xf32>
    %413 = arith.addf %412, %17 : vector<12x12xf32>
    %cst_202 = arith.constant dense<0xFF800000> : vector<12xf32>
    %414 = vector.multi_reduction <maximumf>, %413, %cst_202 [1] : vector<12x12xf32> to vector<12xf32>
    %415 = vector.shape_cast %414 : vector<12xf32> to vector<12x1xf32>
    %416 = vector.broadcast %415 : vector<12x1xf32> to vector<12x12xf32>
    %417 = arith.subf %413, %416 : vector<12x12xf32>
    %418 = math.exp %417 : vector<12x12xf32>
    %cst_203 = arith.constant dense<0.000000e+00> : vector<12xf32>
    %419 = vector.multi_reduction <add>, %418, %cst_203 [1] : vector<12x12xf32> to vector<12xf32>
    %420 = vector.shape_cast %419 : vector<12xf32> to vector<12x1xf32>
    %421 = vector.broadcast %420 : vector<12x1xf32> to vector<12x12xf32>
    %422 = arith.divf %418, %421 : vector<12x12xf32>
    %423 = vector.extract_strided_slice %373 {offsets = [0, 16], sizes = [12, 8], strides = [1, 1]} : vector<12x32xf32> to vector<12x8xf32>
    %cst_204 = arith.constant dense<0.000000e+00> : vector<12x8xf32>
    %424 = tpu.matmul %422, %423, %cst_204 {dimension_numbers = #tpu.dot_dimension_numbers<[1], [0], [0], [1], [0, 0, 1, 1], [], []>} : vector<12x12xf32>, vector<12x8xf32>, vector<12x8xf32> -> vector<12x8xf32>
    %425 = vector.extract_strided_slice %371 {offsets = [0, 24], sizes = [12, 8], strides = [1, 1]} : vector<12x32xf32> to vector<12x8xf32>
    %426 = vector.extract_strided_slice %372 {offsets = [0, 24], sizes = [12, 8], strides = [1, 1]} : vector<12x32xf32> to vector<12x8xf32>
    %cst_205 = arith.constant dense<0.000000e+00> : vector<12x12xf32>
    %427 = tpu.matmul %425, %426, %cst_205 {dimension_numbers = #tpu.dot_dimension_numbers<[1], [1], [0], [0], [0, 0, 1, 0], [], []>} : vector<12x8xf32>, vector<12x8xf32>, vector<12x12xf32> -> vector<12x12xf32>
    %cst_206 = arith.constant 0.353553385 : f32
    %428 = vector.broadcast %cst_206 : f32 to vector<12x12xf32>
    %429 = arith.mulf %427, %428 : vector<12x12xf32>
    %430 = arith.addf %429, %17 : vector<12x12xf32>
    %cst_207 = arith.constant dense<0xFF800000> : vector<12xf32>
    %431 = vector.multi_reduction <maximumf>, %430, %cst_207 [1] : vector<12x12xf32> to vector<12xf32>
    %432 = vector.shape_cast %431 : vector<12xf32> to vector<12x1xf32>
    %433 = vector.broadcast %432 : vector<12x1xf32> to vector<12x12xf32>
    %434 = arith.subf %430, %433 : vector<12x12xf32>
    %435 = math.exp %434 : vector<12x12xf32>
    %cst_208 = arith.constant dense<0.000000e+00> : vector<12xf32>
    %436 = vector.multi_reduction <add>, %435, %cst_208 [1] : vector<12x12xf32> to vector<12xf32>
    %437 = vector.shape_cast %436 : vector<12xf32> to vector<12x1xf32>
    %438 = vector.broadcast %437 : vector<12x1xf32> to vector<12x12xf32>
    %439 = arith.divf %435, %438 : vector<12x12xf32>
    %440 = vector.extract_strided_slice %373 {offsets = [0, 24], sizes = [12, 8], strides = [1, 1]} : vector<12x32xf32> to vector<12x8xf32>
    %cst_209 = arith.constant dense<0.000000e+00> : vector<12x8xf32>
    %441 = tpu.matmul %439, %440, %cst_209 {dimension_numbers = #tpu.dot_dimension_numbers<[1], [0], [0], [1], [0, 0, 1, 1], [], []>} : vector<12x12xf32>, vector<12x8xf32>, vector<12x8xf32> -> vector<12x8xf32>
    %442 = tpu.concatenate %390, %407, %424, %441 in 1 : vector<12x8xf32>, vector<12x8xf32>, vector<12x8xf32>, vector<12x8xf32> -> vector<12x32xf32>
    %cst_210 = arith.constant dense<0.000000e+00> : vector<12x32xf32>
    %443 = tpu.matmul %442, %337, %cst_210 {dimension_numbers = #tpu.dot_dimension_numbers<[1], [0], [0], [1], [0, 0, 1, 1], [], []>} : vector<12x32xf32>, vector<32x32xf32>, vector<12x32xf32> -> vector<12x32xf32>
    %444 = vector.broadcast %339 : vector<1x32xf32> to vector<12x32xf32>
    %445 = arith.addf %443, %444 : vector<12x32xf32>
    %446 = arith.addf %331, %445 : vector<12x32xf32>
    %cst_211 = arith.constant dense<0.000000e+00> : vector<12xf32>
    %447 = vector.multi_reduction <add>, %446, %cst_211 [1] : vector<12x32xf32> to vector<12xf32>
    %448 = vector.shape_cast %447 : vector<12xf32> to vector<12x1xf32>
    %cst_212 = arith.constant 3.200000e+01 : f32
    %449 = vector.broadcast %cst_212 : f32 to vector<12x1xf32>
    %450 = arith.divf %448, %449 : vector<12x1xf32>
    %451 = vector.broadcast %450 : vector<12x1xf32> to vector<12x32xf32>
    %452 = arith.subf %446, %451 : vector<12x32xf32>
    %453 = arith.mulf %452, %452 : vector<12x32xf32>
    %cst_213 = arith.constant dense<0.000000e+00> : vector<12xf32>
    %454 = vector.multi_reduction <add>, %453, %cst_213 [1] : vector<12x32xf32> to vector<12xf32>
    %455 = vector.shape_cast %454 : vector<12xf32> to vector<12x1xf32>
    %cst_214 = arith.constant 3.200000e+01 : f32
    %456 = vector.broadcast %cst_214 : f32 to vector<12x1xf32>
    %457 = arith.divf %455, %456 : vector<12x1xf32>
    %cst_215 = arith.constant 9.99999974E-6 : f32
    %458 = vector.broadcast %cst_215 : f32 to vector<12x1xf32>
    %459 = arith.addf %457, %458 : vector<12x1xf32>
    %460 = math.rsqrt %459 : vector<12x1xf32>
    %461 = vector.broadcast %460 : vector<12x1xf32> to vector<12x32xf32>
    %462 = arith.mulf %452, %461 : vector<12x32xf32>
    %463 = vector.broadcast %357 : vector<1x32xf32> to vector<12x32xf32>
    %464 = arith.mulf %462, %463 : vector<12x32xf32>
    %465 = vector.broadcast %359 : vector<1x32xf32> to vector<12x32xf32>
    %466 = arith.addf %464, %465 : vector<12x32xf32>
    %cst_216 = arith.constant dense<0.000000e+00> : vector<2x32xf32>
    %467 = tpu.matmul %48, %466, %cst_216 {dimension_numbers = #tpu.dot_dimension_numbers<[1], [0], [0], [1], [0, 0, 1, 1], [], []>} : vector<2x12xf32>, vector<12x32xf32>, vector<2x32xf32> -> vector<2x32xf32>
    %468 = vector.extract_strided_slice %341 {offsets = [0, 0], sizes = [32, 32], strides = [1, 1]} : vector<32x96xf32> to vector<32x32xf32>
    %cst_217 = arith.constant dense<0.000000e+00> : vector<2x32xf32>
    %469 = tpu.matmul %467, %468, %cst_217 {dimension_numbers = #tpu.dot_dimension_numbers<[1], [0], [0], [1], [0, 0, 1, 1], [], []>} : vector<2x32xf32>, vector<32x32xf32>, vector<2x32xf32> -> vector<2x32xf32>
    %470 = vector.extract_strided_slice %343 {offsets = [0, 0], sizes = [1, 32], strides = [1, 1]} : vector<1x96xf32> to vector<1x32xf32>
    %471 = vector.broadcast %470 : vector<1x32xf32> to vector<2x32xf32>
    %472 = arith.addf %469, %471 : vector<2x32xf32>
    %473 = vector.extract_strided_slice %341 {offsets = [0, 32], sizes = [32, 32], strides = [1, 1]} : vector<32x96xf32> to vector<32x32xf32>
    %cst_218 = arith.constant dense<0.000000e+00> : vector<16x32xf32>
    %474 = tpu.matmul %54, %473, %cst_218 {dimension_numbers = #tpu.dot_dimension_numbers<[1], [0], [0], [1], [0, 0, 1, 1], [], []>} : vector<16x32xf32>, vector<32x32xf32>, vector<16x32xf32> -> vector<16x32xf32>
    %475 = vector.extract_strided_slice %343 {offsets = [0, 32], sizes = [1, 32], strides = [1, 1]} : vector<1x96xf32> to vector<1x32xf32>
    %476 = vector.broadcast %475 : vector<1x32xf32> to vector<16x32xf32>
    %477 = arith.addf %474, %476 : vector<16x32xf32>
    %478 = vector.extract_strided_slice %341 {offsets = [0, 64], sizes = [32, 32], strides = [1, 1]} : vector<32x96xf32> to vector<32x32xf32>
    %cst_219 = arith.constant dense<0.000000e+00> : vector<16x32xf32>
    %479 = tpu.matmul %54, %478, %cst_219 {dimension_numbers = #tpu.dot_dimension_numbers<[1], [0], [0], [1], [0, 0, 1, 1], [], []>} : vector<16x32xf32>, vector<32x32xf32>, vector<16x32xf32> -> vector<16x32xf32>
    %480 = vector.extract_strided_slice %343 {offsets = [0, 64], sizes = [1, 32], strides = [1, 1]} : vector<1x96xf32> to vector<1x32xf32>
    %481 = vector.broadcast %480 : vector<1x32xf32> to vector<16x32xf32>
    %482 = arith.addf %479, %481 : vector<16x32xf32>
    %483 = vector.extract_strided_slice %472 {offsets = [0, 0], sizes = [2, 8], strides = [1, 1]} : vector<2x32xf32> to vector<2x8xf32>
    %484 = vector.extract_strided_slice %477 {offsets = [0, 0], sizes = [16, 8], strides = [1, 1]} : vector<16x32xf32> to vector<16x8xf32>
    %cst_220 = arith.constant dense<0.000000e+00> : vector<2x16xf32>
    %485 = tpu.matmul %483, %484, %cst_220 {dimension_numbers = #tpu.dot_dimension_numbers<[1], [1], [0], [0], [0, 0, 1, 0], [], []>} : vector<2x8xf32>, vector<16x8xf32>, vector<2x16xf32> -> vector<2x16xf32>
    %cst_221 = arith.constant 0.353553385 : f32
    %486 = vector.broadcast %cst_221 : f32 to vector<2x16xf32>
    %487 = arith.mulf %485, %486 : vector<2x16xf32>
    %488 = arith.addf %487, %30 : vector<2x16xf32>
    %cst_222 = arith.constant dense<0xFF800000> : vector<2xf32>
    %489 = vector.multi_reduction <maximumf>, %488, %cst_222 [1] : vector<2x16xf32> to vector<2xf32>
    %490 = vector.shape_cast %489 : vector<2xf32> to vector<2x1xf32>
    %491 = vector.broadcast %490 : vector<2x1xf32> to vector<2x16xf32>
    %492 = arith.subf %488, %491 : vector<2x16xf32>
    %493 = math.exp %492 : vector<2x16xf32>
    %cst_223 = arith.constant dense<0.000000e+00> : vector<2xf32>
    %494 = vector.multi_reduction <add>, %493, %cst_223 [1] : vector<2x16xf32> to vector<2xf32>
    %495 = vector.shape_cast %494 : vector<2xf32> to vector<2x1xf32>
    %496 = vector.broadcast %495 : vector<2x1xf32> to vector<2x16xf32>
    %497 = arith.divf %493, %496 : vector<2x16xf32>
    %498 = vector.extract_strided_slice %482 {offsets = [0, 0], sizes = [16, 8], strides = [1, 1]} : vector<16x32xf32> to vector<16x8xf32>
    %cst_224 = arith.constant dense<0.000000e+00> : vector<2x8xf32>
    %499 = tpu.matmul %497, %498, %cst_224 {dimension_numbers = #tpu.dot_dimension_numbers<[1], [0], [0], [1], [0, 0, 1, 1], [], []>} : vector<2x16xf32>, vector<16x8xf32>, vector<2x8xf32> -> vector<2x8xf32>
    %500 = vector.extract_strided_slice %472 {offsets = [0, 8], sizes = [2, 8], strides = [1, 1]} : vector<2x32xf32> to vector<2x8xf32>
    %501 = vector.extract_strided_slice %477 {offsets = [0, 8], sizes = [16, 8], strides = [1, 1]} : vector<16x32xf32> to vector<16x8xf32>
    %cst_225 = arith.constant dense<0.000000e+00> : vector<2x16xf32>
    %502 = tpu.matmul %500, %501, %cst_225 {dimension_numbers = #tpu.dot_dimension_numbers<[1], [1], [0], [0], [0, 0, 1, 0], [], []>} : vector<2x8xf32>, vector<16x8xf32>, vector<2x16xf32> -> vector<2x16xf32>
    %cst_226 = arith.constant 0.353553385 : f32
    %503 = vector.broadcast %cst_226 : f32 to vector<2x16xf32>
    %504 = arith.mulf %502, %503 : vector<2x16xf32>
    %505 = arith.addf %504, %30 : vector<2x16xf32>
    %cst_227 = arith.constant dense<0xFF800000> : vector<2xf32>
    %506 = vector.multi_reduction <maximumf>, %505, %cst_227 [1] : vector<2x16xf32> to vector<2xf32>
    %507 = vector.shape_cast %506 : vector<2xf32> to vector<2x1xf32>
    %508 = vector.broadcast %507 : vector<2x1xf32> to vector<2x16xf32>
    %509 = arith.subf %505, %508 : vector<2x16xf32>
    %510 = math.exp %509 : vector<2x16xf32>
    %cst_228 = arith.constant dense<0.000000e+00> : vector<2xf32>
    %511 = vector.multi_reduction <add>, %510, %cst_228 [1] : vector<2x16xf32> to vector<2xf32>
    %512 = vector.shape_cast %511 : vector<2xf32> to vector<2x1xf32>
    %513 = vector.broadcast %512 : vector<2x1xf32> to vector<2x16xf32>
    %514 = arith.divf %510, %513 : vector<2x16xf32>
    %515 = vector.extract_strided_slice %482 {offsets = [0, 8], sizes = [16, 8], strides = [1, 1]} : vector<16x32xf32> to vector<16x8xf32>
    %cst_229 = arith.constant dense<0.000000e+00> : vector<2x8xf32>
    %516 = tpu.matmul %514, %515, %cst_229 {dimension_numbers = #tpu.dot_dimension_numbers<[1], [0], [0], [1], [0, 0, 1, 1], [], []>} : vector<2x16xf32>, vector<16x8xf32>, vector<2x8xf32> -> vector<2x8xf32>
    %517 = vector.extract_strided_slice %472 {offsets = [0, 16], sizes = [2, 8], strides = [1, 1]} : vector<2x32xf32> to vector<2x8xf32>
    %518 = vector.extract_strided_slice %477 {offsets = [0, 16], sizes = [16, 8], strides = [1, 1]} : vector<16x32xf32> to vector<16x8xf32>
    %cst_230 = arith.constant dense<0.000000e+00> : vector<2x16xf32>
    %519 = tpu.matmul %517, %518, %cst_230 {dimension_numbers = #tpu.dot_dimension_numbers<[1], [1], [0], [0], [0, 0, 1, 0], [], []>} : vector<2x8xf32>, vector<16x8xf32>, vector<2x16xf32> -> vector<2x16xf32>
    %cst_231 = arith.constant 0.353553385 : f32
    %520 = vector.broadcast %cst_231 : f32 to vector<2x16xf32>
    %521 = arith.mulf %519, %520 : vector<2x16xf32>
    %522 = arith.addf %521, %30 : vector<2x16xf32>
    %cst_232 = arith.constant dense<0xFF800000> : vector<2xf32>
    %523 = vector.multi_reduction <maximumf>, %522, %cst_232 [1] : vector<2x16xf32> to vector<2xf32>
    %524 = vector.shape_cast %523 : vector<2xf32> to vector<2x1xf32>
    %525 = vector.broadcast %524 : vector<2x1xf32> to vector<2x16xf32>
    %526 = arith.subf %522, %525 : vector<2x16xf32>
    %527 = math.exp %526 : vector<2x16xf32>
    %cst_233 = arith.constant dense<0.000000e+00> : vector<2xf32>
    %528 = vector.multi_reduction <add>, %527, %cst_233 [1] : vector<2x16xf32> to vector<2xf32>
    %529 = vector.shape_cast %528 : vector<2xf32> to vector<2x1xf32>
    %530 = vector.broadcast %529 : vector<2x1xf32> to vector<2x16xf32>
    %531 = arith.divf %527, %530 : vector<2x16xf32>
    %532 = vector.extract_strided_slice %482 {offsets = [0, 16], sizes = [16, 8], strides = [1, 1]} : vector<16x32xf32> to vector<16x8xf32>
    %cst_234 = arith.constant dense<0.000000e+00> : vector<2x8xf32>
    %533 = tpu.matmul %531, %532, %cst_234 {dimension_numbers = #tpu.dot_dimension_numbers<[1], [0], [0], [1], [0, 0, 1, 1], [], []>} : vector<2x16xf32>, vector<16x8xf32>, vector<2x8xf32> -> vector<2x8xf32>
    %534 = vector.extract_strided_slice %472 {offsets = [0, 24], sizes = [2, 8], strides = [1, 1]} : vector<2x32xf32> to vector<2x8xf32>
    %535 = vector.extract_strided_slice %477 {offsets = [0, 24], sizes = [16, 8], strides = [1, 1]} : vector<16x32xf32> to vector<16x8xf32>
    %cst_235 = arith.constant dense<0.000000e+00> : vector<2x16xf32>
    %536 = tpu.matmul %534, %535, %cst_235 {dimension_numbers = #tpu.dot_dimension_numbers<[1], [1], [0], [0], [0, 0, 1, 0], [], []>} : vector<2x8xf32>, vector<16x8xf32>, vector<2x16xf32> -> vector<2x16xf32>
    %cst_236 = arith.constant 0.353553385 : f32
    %537 = vector.broadcast %cst_236 : f32 to vector<2x16xf32>
    %538 = arith.mulf %536, %537 : vector<2x16xf32>
    %539 = arith.addf %538, %30 : vector<2x16xf32>
    %cst_237 = arith.constant dense<0xFF800000> : vector<2xf32>
    %540 = vector.multi_reduction <maximumf>, %539, %cst_237 [1] : vector<2x16xf32> to vector<2xf32>
    %541 = vector.shape_cast %540 : vector<2xf32> to vector<2x1xf32>
    %542 = vector.broadcast %541 : vector<2x1xf32> to vector<2x16xf32>
    %543 = arith.subf %539, %542 : vector<2x16xf32>
    %544 = math.exp %543 : vector<2x16xf32>
    %cst_238 = arith.constant dense<0.000000e+00> : vector<2xf32>
    %545 = vector.multi_reduction <add>, %544, %cst_238 [1] : vector<2x16xf32> to vector<2xf32>
    %546 = vector.shape_cast %545 : vector<2xf32> to vector<2x1xf32>
    %547 = vector.broadcast %546 : vector<2x1xf32> to vector<2x16xf32>
    %548 = arith.divf %544, %547 : vector<2x16xf32>
    %549 = vector.extract_strided_slice %482 {offsets = [0, 24], sizes = [16, 8], strides = [1, 1]} : vector<16x32xf32> to vector<16x8xf32>
    %cst_239 = arith.constant dense<0.000000e+00> : vector<2x8xf32>
    %550 = tpu.matmul %548, %549, %cst_239 {dimension_numbers = #tpu.dot_dimension_numbers<[1], [0], [0], [1], [0, 0, 1, 1], [], []>} : vector<2x16xf32>, vector<16x8xf32>, vector<2x8xf32> -> vector<2x8xf32>
    %551 = tpu.concatenate %499, %516, %533, %550 in 1 : vector<2x8xf32>, vector<2x8xf32>, vector<2x8xf32>, vector<2x8xf32> -> vector<2x32xf32>
    %cst_240 = arith.constant dense<0.000000e+00> : vector<2x32xf32>
    %552 = tpu.matmul %551, %345, %cst_240 {dimension_numbers = #tpu.dot_dimension_numbers<[1], [0], [0], [1], [0, 0, 1, 1], [], []>} : vector<2x32xf32>, vector<32x32xf32>, vector<2x32xf32> -> vector<2x32xf32>
    %553 = vector.broadcast %347 : vector<1x32xf32> to vector<2x32xf32>
    %554 = arith.addf %552, %553 : vector<2x32xf32>
    %555 = arith.addf %467, %554 : vector<2x32xf32>
    %cst_241 = arith.constant dense<0.000000e+00> : vector<2xf32>
    %556 = vector.multi_reduction <add>, %555, %cst_241 [1] : vector<2x32xf32> to vector<2xf32>
    %557 = vector.shape_cast %556 : vector<2xf32> to vector<2x1xf32>
    %cst_242 = arith.constant 3.200000e+01 : f32
    %558 = vector.broadcast %cst_242 : f32 to vector<2x1xf32>
    %559 = arith.divf %557, %558 : vector<2x1xf32>
    %560 = vector.broadcast %559 : vector<2x1xf32> to vector<2x32xf32>
    %561 = arith.subf %555, %560 : vector<2x32xf32>
    %562 = arith.mulf %561, %561 : vector<2x32xf32>
    %cst_243 = arith.constant dense<0.000000e+00> : vector<2xf32>
    %563 = vector.multi_reduction <add>, %562, %cst_243 [1] : vector<2x32xf32> to vector<2xf32>
    %564 = vector.shape_cast %563 : vector<2xf32> to vector<2x1xf32>
    %cst_244 = arith.constant 3.200000e+01 : f32
    %565 = vector.broadcast %cst_244 : f32 to vector<2x1xf32>
    %566 = arith.divf %564, %565 : vector<2x1xf32>
    %cst_245 = arith.constant 9.99999974E-6 : f32
    %567 = vector.broadcast %cst_245 : f32 to vector<2x1xf32>
    %568 = arith.addf %566, %567 : vector<2x1xf32>
    %569 = math.rsqrt %568 : vector<2x1xf32>
    %570 = vector.broadcast %569 : vector<2x1xf32> to vector<2x32xf32>
    %571 = arith.mulf %561, %570 : vector<2x32xf32>
    %572 = vector.broadcast %361 : vector<1x32xf32> to vector<2x32xf32>
    %573 = arith.mulf %571, %572 : vector<2x32xf32>
    %574 = vector.broadcast %363 : vector<1x32xf32> to vector<2x32xf32>
    %575 = arith.addf %573, %574 : vector<2x32xf32>
    %576 = vector.broadcast %52 : vector<12x1xf32> to vector<12x32xf32>
    %577 = arith.mulf %466, %576 : vector<12x32xf32>
    %cst_246 = arith.constant dense<0.000000e+00> : vector<12x32xf32>
    %578 = tpu.matmul %39, %575, %cst_246 {dimension_numbers = #tpu.dot_dimension_numbers<[1], [0], [0], [1], [0, 0, 1, 1], [], []>} : vector<12x2xf32>, vector<2x32xf32>, vector<12x32xf32> -> vector<12x32xf32>
    %579 = arith.addf %577, %578 : vector<12x32xf32>
    %cst_247 = arith.constant dense<0.000000e+00> : vector<12x64xf32>
    %580 = tpu.matmul %579, %349, %cst_247 {dimension_numbers = #tpu.dot_dimension_numbers<[1], [0], [0], [1], [0, 0, 1, 1], [], []>} : vector<12x32xf32>, vector<32x64xf32>, vector<12x64xf32> -> vector<12x64xf32>
    %581 = vector.broadcast %351 : vector<1x64xf32> to vector<12x64xf32>
    %582 = arith.addf %580, %581 : vector<12x64xf32>
    %cst_248 = arith.constant 0.000000e+00 : f32
    %583 = vector.broadcast %cst_248 : f32 to vector<12x64xf32>
    %584 = arith.maximumf %582, %583 : vector<12x64xf32>
    %cst_249 = arith.constant dense<0.000000e+00> : vector<12x32xf32>
    %585 = tpu.matmul %584, %353, %cst_249 {dimension_numbers = #tpu.dot_dimension_numbers<[1], [0], [0], [1], [0, 0, 1, 1], [], []>} : vector<12x64xf32>, vector<64x32xf32>, vector<12x32xf32> -> vector<12x32xf32>
    %586 = vector.broadcast %355 : vector<1x32xf32> to vector<12x32xf32>
    %587 = arith.addf %585, %586 : vector<12x32xf32>
    %588 = arith.addf %579, %587 : vector<12x32xf32>
    %cst_250 = arith.constant dense<0.000000e+00> : vector<12xf32>
    %589 = vector.multi_reduction <add>, %588, %cst_250 [1] : vector<12x32xf32> to vector<12xf32>
    %590 = vector.shape_cast %589 : vector<12xf32> to vector<12x1xf32>
    %cst_251 = arith.constant 3.200000e+01 : f32
    %591 = vector.broadcast %cst_251 : f32 to vector<12x1xf32>
    %592 = arith.divf %590, %591 : vector<12x1xf32>
    %593 = vector.broadcast %592 : vector<12x1xf32> to vector<12x32xf32>
    %594 = arith.subf %588, %593 : vector<12x32xf32>
    %595 = arith.mulf %594, %594 : vector<12x32xf32>
    %cst_252 = arith.constant dense<0.000000e+00> : vector<12xf32>
    %596 = vector.multi_reduction <add>, %595, %cst_252 [1] : vector<12x32xf32> to vector<12xf32>
    %597 = vector.shape_cast %596 : vector<12xf32> to vector<12x1xf32>
    %cst_253 = arith.constant 3.200000e+01 : f32
    %598 = vector.broadcast %cst_253 : f32 to vector<12x1xf32>
    %599 = arith.divf %597, %598 : vector<12x1xf32>
    %cst_254 = arith.constant 9.99999974E-6 : f32
    %600 = vector.broadcast %cst_254 : f32 to vector<12x1xf32>
    %601 = arith.addf %599, %600 : vector<12x1xf32>
    %602 = math.rsqrt %601 : vector<12x1xf32>
    %603 = vector.broadcast %602 : vector<12x1xf32> to vector<12x32xf32>
    %604 = arith.mulf %594, %603 : vector<12x32xf32>
    %605 = vector.broadcast %365 : vector<1x32xf32> to vector<12x32xf32>
    %606 = arith.mulf %604, %605 : vector<12x32xf32>
    %607 = vector.broadcast %367 : vector<1x32xf32> to vector<12x32xf32>
    %608 = arith.addf %606, %607 : vector<12x32xf32>
    %c0_255 = arith.constant 0 : index
    %c0_256 = arith.constant 0 : index
    %609 = vector.load %arg20[%c0_255, %c0_256] : memref<1x32xf32, #tpu.memory_space<vmem>>, vector<1x32xf32>
    %c0_257 = arith.constant 0 : index
    %c0_258 = arith.constant 0 : index
    %610 = vector.load %arg21[%c0_257, %c0_258] : memref<1x32xf32, #tpu.memory_space<vmem>>, vector<1x32xf32>
    %cst_259 = arith.constant dense<0.000000e+00> : vector<12xf32>
    %611 = vector.multi_reduction <add>, %608, %cst_259 [1] : vector<12x32xf32> to vector<12xf32>
    %612 = vector.shape_cast %611 : vector<12xf32> to vector<12x1xf32>
    %cst_260 = arith.constant 3.200000e+01 : f32
    %613 = vector.broadcast %cst_260 : f32 to vector<12x1xf32>
    %614 = arith.divf %612, %613 : vector<12x1xf32>
    %615 = vector.broadcast %614 : vector<12x1xf32> to vector<12x32xf32>
    %616 = arith.subf %608, %615 : vector<12x32xf32>
    %617 = arith.mulf %616, %616 : vector<12x32xf32>
    %cst_261 = arith.constant dense<0.000000e+00> : vector<12xf32>
    %618 = vector.multi_reduction <add>, %617, %cst_261 [1] : vector<12x32xf32> to vector<12xf32>
    %619 = vector.shape_cast %618 : vector<12xf32> to vector<12x1xf32>
    %cst_262 = arith.constant 3.200000e+01 : f32
    %620 = vector.broadcast %cst_262 : f32 to vector<12x1xf32>
    %621 = arith.divf %619, %620 : vector<12x1xf32>
    %cst_263 = arith.constant 9.99999974E-6 : f32
    %622 = vector.broadcast %cst_263 : f32 to vector<12x1xf32>
    %623 = arith.addf %621, %622 : vector<12x1xf32>
    %624 = math.rsqrt %623 : vector<12x1xf32>
    %625 = vector.broadcast %624 : vector<12x1xf32> to vector<12x32xf32>
    %626 = arith.mulf %616, %625 : vector<12x32xf32>
    %627 = vector.broadcast %609 : vector<1x32xf32> to vector<12x32xf32>
    %628 = arith.mulf %626, %627 : vector<12x32xf32>
    %629 = vector.broadcast %610 : vector<1x32xf32> to vector<12x32xf32>
    %630 = arith.addf %628, %629 : vector<12x32xf32>
    %c0_264 = arith.constant 0 : index
    %c0_265 = arith.constant 0 : index
    %631 = vector.load %arg22[%c0_264, %c0_265] : memref<12x32xf32, #tpu.memory_space<vmem>>, vector<12x32xf32>
    tpu.vector_store %arg22[%c0_264, %c0_265], %630 {strides = array<i32>} : memref<12x32xf32, #tpu.memory_space<vmem>>, vector<12x32xf32>,
    return
  }
}

</mosaic_0001>

<bundles_post_ra>
// kernel: tpu_custom_call.1
= control target key start
LH: loop header
LB: loop body
LE: loop exit
PB: predicated region body
PF: predicated region fallthrough
CT: control target
= control target key end

     0   :  { %s8096_s0 = inlined_call_operand.hbm [shape: f32[12,32], index: 0, kind: input, shape index: {}]   ;;  %s8097_s1 = inlined_call_operand.hbm [shape: f32[16,32], index: 1, kind: input, shape index: {}]   ;;  %s8098_s2 = inlined_call_operand.vmem [shape: f32[2,32,96], index: 2, kind: input, shape index: {}]   ;;  %s8099_s3 = inlined_call_operand.vmem [shape: f32[2,1,96], index: 3, kind: input, shape index: {}]   ;;  %s8100_s4 = inlined_call_operand.vmem [shape: f32[2,32,32], index: 4, kind: input, shape index: {}]   ;;  %s8101_s5 = inlined_call_operand.vmem [shape: f32[2,1,32], index: 5, kind: input, shape index: {}]   ;;  %s8102_s6 = inlined_call_operand.vmem [shape: f32[2,32,96], index: 6, kind: input, shape index: {}]   ;;  %s8103_s7 = inlined_call_operand.vmem [shape: f32[2,1,96], index: 7, kind: input, shape index: {}]   ;;  %s8104_s8 = inlined_call_operand.hbm [shape: f32[2,32,32], index: 8, kind: input, shape index: {}]   ;;  %s8105_s9 = inlined_call_operand.vmem [shape: f32[2,1,32], index: 9, kind: input, shape index: {}]   ;;  %s8106_s10 = inlined_call_operand.hbm [shape: f32[2,32,64], index: 10, kind: input, shape index: {}]   ;;  %s8107_s11 = inlined_call_operand.vmem [shape: f32[2,1,64], index: 11, kind: input, shape index: {}]   ;;  %s8108_s12 = inlined_call_operand.vmem [shape: f32[2,64,32], index: 12, kind: input, shape index: {}]   ;;  %s8109_s13 = inlined_call_operand.vmem [shape: f32[2,1,32], index: 13, kind: input, shape index: {}]   ;;  %s8110_s14 = inlined_call_operand.vmem [shape: f32[2,1,32], index: 14, kind: input, shape index: {}]   ;;  %s8111_s15 = inlined_call_operand.vmem [shape: f32[2,1,32], index: 15, kind: input, shape index: {}]   ;;  %s8112_s16 = inlined_call_operand.vmem [shape: f32[2,1,32], index: 16, kind: input, shape index: {}]   ;;  %s8113_s17 = inlined_call_operand.vmem [shape: f32[2,1,32], index: 17, kind: input, shape index: {}]   ;;  %s8114_s18 = inlined_call_operand.vmem [shape: f32[2,1,32], index: 18, kind: input, shape index: {}]   ;;  %s8115_s19 = inlined_call_operand.vmem [shape: f32[2,1,32], index: 19, kind: input, shape index: {}]   ;;  %s8116_s20 = inlined_call_operand.vmem [shape: f32[1,32], index: 20, kind: input, shape index: {}]   ;;  %s8117_s21 = inlined_call_operand.vmem [shape: f32[1,32], index: 21, kind: input, shape index: {}]   ;;  %s8118_s22 = inlined_call_operand.hbm [shape: f32[12,32], index: 22, kind: output, shape index: {}]  }
   0x1   :  { %8146 = sst [smem:[#allocation15_spill]] %s8096_s0 }
   0x2   :  { %8147 = sst [smem:[#allocation16_spill]] %s8097_s1 }
   0x3   :  { %8148 = sst [smem:[#allocation17_spill]] %s8098_s2 }
   0x4   :  { %8149 = sst [smem:[#allocation18_spill]] %s8099_s3 }
   0x5   :  { %8150 = sst [smem:[#allocation19_spill]] %s8100_s4 }
   0x6   :  { %8151 = sst [smem:[#allocation20_spill]] %s8101_s5 }
   0x7   :  { %8152 = sst [smem:[#allocation21_spill]] %s8102_s6 }
   0x8   :  { %8153 = sst [smem:[#allocation22_spill]] %s8117_s21 }
   0x9   :  { %8154 = sst [smem:[#allocation23_spill]] %s8118_s22 }
   0xa   :  { %27 = vsyncpa [#allocation3], 0 }
   0xb   :  { %28 = vsyncpa [#allocation6], 0 }
   0xc   :  { %29 = vsyncpa [#allocation9], 0 }
   0xd   :  { %30 = vsyncpa [#allocation4], 0  ;;  %s6994_s3 = smov [#allocation5]   ;;  %s6995_s29 = smov [#allocation2]  }
   0xe   :  { %s48_s28 = sshll.u32 %s6994_s3, 4  ;;  %s36_s30 = sshll.u32 %s6995_s29, 4  ;;  %s49_s28 = int_to_ptr.vmem [resolvable:$true] %s48_s28  ;;  %s7134_s30 = int_to_ptr.vmem [resolvable:$true] %s36_s30 }
   0xf   :  { %s8155_s23 = sld [smem:[#allocation16_spill]] }
  0x15   :  { %s6876_s1 = scalar_lea.hbm %s8155_s23, 256 }
  0x16   :  { %p6877_p0 = scmp.ne.s32.totalorder %s8155_s23, %s6876_s1  ;;  %p6880_p1 = scmp.lt.u32.totalorder %s6876_s1, %s8155_s23 }
  0x18   :  { %p6882_p2 = pnand %p6880_p1, %p6877_p0 }
  0x1a   :  { %6885 = shalt.err (!%p6882_p2)
}
  0x1b   :  { %s6886_s26 = scalar_lea.vmem %s49_s28, 256  ;;  %p6891_p4 = scmp.lt.s32.totalorder %s49_s28, %s49_s28 }
  0x1c   :  { %p6887_p3 = scmp.ne.s32.totalorder %s49_s28, %s6886_s26  ;;  %p6892_p5 = scmp.lt.s32.totalorder %s6886_s26, %s6886_s26 }
  0x1e   :  { %p6893_p6 = por %p6892_p5, %p6891_p4 }
  0x20   :  { %p6894_p7 = pnand %p6893_p6, %p6887_p3 }
  0x22   :  { %6897 = shalt.err (!%p6894_p7)
}
  0x23   :  { %s8127_s2 = smov 128   ;;  %s8136_s27 = smov 8  }
  0x24   :  { %54 = dma.hbm_to_vmem [thread:$0]  %s8155_s23, 256, %s49_s28, [#allocation6], %s8127_s2, %s8127_s2, %s8136_s27  }
  0x25   :  { %s8156_s1 = sld [smem:[#allocation15_spill]] }
  0x2b   :  { %s6898_s5 = scalar_lea.hbm %s8156_s1, 256 }
  0x2c   :  { %p6899_p8 = scmp.ne.s32.totalorder %s8156_s1, %s6898_s5  ;;  %p6902_p9 = scmp.lt.u32.totalorder %s6898_s5, %s8156_s1 }
  0x2e   :  { %p6904_p10 = pnand %p6902_p9, %p6899_p8 }
  0x30   :  { %6907 = shalt.err (!%p6904_p10)
}
  0x31   :  { %s6908_s22 = scalar_lea.vmem %s7134_s30, 256  ;;  %p6913_p12 = scmp.lt.s32.totalorder %s7134_s30, %s7134_s30 }
  0x32   :  { %p6909_p11 = scmp.ne.s32.totalorder %s7134_s30, %s6908_s22  ;;  %p6914_p13 = scmp.lt.s32.totalorder %s6908_s22, %s6908_s22 }
  0x34   :  { %p6915_p0 = por %p6914_p13, %p6913_p12 }
  0x36   :  { %p6916_p1 = pnand %p6915_p0, %p6909_p11 }
  0x38   :  { %6919 = shalt.err (!%p6916_p1)
}
  0x39   :  { %42 = dma.hbm_to_vmem [thread:$0]  %s8156_s1, 256, %s7134_s30, [#allocation3], %s8127_s2, %s8127_s2, %s8136_s27  }
  0x3a   :  { %s6998_s3 = smov [#allocation7]   ;;  %s6999_s4 = smov [#allocation8]  }
  0x3b   :  { %s72_s29 = sshll.u32 %s6998_s3, 4  ;;  %s86_s0 = sshll.u32 %s6999_s4, 4  ;;  %s73_s29 = int_to_ptr.vmem [resolvable:$true] %s72_s29  ;;  %s7171_s0 = int_to_ptr.vmem [resolvable:$true] %s86_s0 }
  0x3c   :  { %s6920_s24 = scalar_lea.hbm %s8104_s8, 1024 }
  0x3d   :  { %p6921_p2 = scmp.ne.s32.totalorder %s8104_s8, %s6920_s24  ;;  %p6924_p3 = scmp.lt.u32.totalorder %s6920_s24, %s8104_s8 }
  0x3f   :  { %p6926_p4 = pnand %p6924_p3, %p6921_p2 }
  0x41   :  { %6929 = shalt.err (!%p6926_p4)
}
  0x42   :  { %s6930_s30 = scalar_lea.vmem %s73_s29, 1024  ;;  %p6935_p6 = scmp.lt.s32.totalorder %s73_s29, %s73_s29 }
  0x43   :  { %p6931_p5 = scmp.ne.s32.totalorder %s73_s29, %s6930_s30  ;;  %p6936_p7 = scmp.lt.s32.totalorder %s6930_s30, %s6930_s30 }
  0x45   :  { %p6937_p8 = por %p6936_p7, %p6935_p6 }
  0x47   :  { %p6938_p9 = pnand %p6937_p8, %p6931_p5 }
  0x49   :  { %6941 = shalt.err (!%p6938_p9)
}
  0x4a   :  { %78 = dma.hbm_to_vmem [thread:$0]  %s8104_s8, 1024, %s73_s29, [#allocation6], %s8127_s2, %s8127_s2, %s8136_s27  }
  0x4b   :  { %s6942_s21 = scalar_lea.hbm %s8106_s10, 1024 }
  0x4c   :  { %p6943_p10 = scmp.ne.s32.totalorder %s8106_s10, %s6942_s21  ;;  %p6946_p11 = scmp.lt.u32.totalorder %s6942_s21, %s8106_s10 }
  0x4e   :  { %p6948_p12 = pnand %p6946_p11, %p6943_p10 }
  0x50   :  { %6951 = shalt.err (!%p6948_p12)
}
  0x51   :  { %s6952_s6 = scalar_lea.vmem %s7171_s0, 1024  ;;  %p6957_p0 = scmp.lt.s32.totalorder %s7171_s0, %s7171_s0 }
  0x52   :  { %p6953_p13 = scmp.ne.s32.totalorder %s7171_s0, %s6952_s6  ;;  %p6958_p1 = scmp.lt.s32.totalorder %s6952_s6, %s6952_s6 }
  0x54   :  { %p6959_p2 = por %p6958_p1, %p6957_p0 }
  0x56   :  { %p6960_p3 = pnand %p6959_p2, %p6953_p13 }
  0x58   :  { %6963 = shalt.err (!%p6960_p3)
}
  0x59   :  { %92 = dma.hbm_to_vmem [thread:$0]  %s8106_s10, 1024, %s7171_s0, [#allocation9], %s8127_s2, %s8127_s2, %s8136_s27  }
  0x5a   :  { %6986 = dma.done.wait [#allocation3], 256  }
  0x5b   :  { %6987 = vsyncadd [#allocation3], 4294967040 }
  0x5c   :  { %6988 = dma.done.wait [#allocation6], 1280  }
  0x5d   :  { %6989 = vsyncadd [#allocation6], 4294966016 }
  0x5e   :  { %6990 = dma.done.wait [#allocation9], 1024  }
  0x5f   :  { %6991 = vsyncadd [#allocation9], 4294966272  ;;  %vm227_vm0 = vcmask 261120   ;;  %s8157_s30 = sld [smem:[#allocation17_spill]]  ;;  %v7220_v5 = vld [vmem:[#allocation2] sm:$0xff]  ;;  %s8158_s5 = sld [smem:[#allocation18_spill]]  ;;  %v127_v25 = vlaneseq }
  0x60   :  { %5821 = vmatprep.mubr.msk.f32.mxu0 %vm227_vm0, %v7220_v5  ;;  %v7224_v7 = vld [vmem:[#allocation2 + $0x8] sm:$0xf]  ;;  %vm315_vm1 = vcmask 64512   ;;  %s8144_s22 = smov 120   ;;  %s7001_s24 = smov 96   ;;  %vm407_vm5 = vcmask 93184  }
  0x61   :  { %s8133_s6 = smov 88   ;;  %vm7251_vm2 = vmpackc.low %vm315_vm1, %vm315_vm1  ;;  %v7267_v26 = vshrl.u32 %v127_v25, 7  ;;  %v7272_v28 = vand.u32 127, %v127_v25  ;;  %v7003_v42 = vmov -1e+09   ;;  %vm403_vm6 = vcmask 97280  }
  0x62   :  { %s7004_s8 = smov 64   ;;  %vm438_vm7 = vcmask 1043456   ;;  %vm7005_vm8 = vmmov 1   ;;  %s8132_s29 = smov 80   ;;  %vm1157_vm10 = vcmask 130048   ;;  %vm1160_vm11 = vcmask 195584  }
  0x63   :  { %v7270_v27 = vadd.s32 8, %v7267_v26  ;;  %v134_v30 = vcvt.s32.f32 %v7272_v28  ;;  %v130_v31 = vcvt.s32.f32 %v7267_v26  ;;  %vm7298_vm9 = vmpackc.low %vm438_vm7, %vm7005_vm8  ;;  %s8130_s25 = smov 72   ;;  %s8131_s26 = smov 56   ;;  %vm1255_vm12 = vcmask 257024  }
  0x64   :  { %s8142_s1 = smov 112   ;;  %s8140_s28 = smov 104   ;;  %vm7016_vm13 = vmmov 0   ;;  %vm167_vm7 = vcmask 15360   ;;  %vm2426_vm8 = vcmask 254976  }
  0x65   :  { %v181_v0 = vld [vmem:[%s8157_s30] sm:$0xff]  ;;  %v182_v1 = vld [vmem:[%s8157_s30 + $0x8] sm:$0xff]  ;;  %v183_v2 = vld [vmem:[%s8157_s30 + $0x10] sm:$0xff]  ;;  %v131_v29 = vcvt.s32.f32 %v7270_v27  ;;  %v7277_v33 = vadd.f32 0.5, %v134_v30  ;;  %v135_v34 = vadd.f32 0.5, %v130_v31  ;;  %s8129_s23 = smov 48  }
  0x66   :  { %v6253_v3 = vpack.c.bf16 %v182_v1, %v181_v0  ;;  %v184_v4 = vld [vmem:[%s8157_s30 + $0x18] sm:$0xff]  ;;  %v5405_v8 = vld [vmem:[%s8158_s5] ss:$0 sm:$0xff]  ;;  %s8128_s3 = smov 40   ;;  %s8163_s21 = sld [smem:[#allocation19_spill]] }
  0x67   :  { %v6257_v6 = vpack.c.bf16 %v184_v4, %v183_v2  ;;  %v136_v32 = vadd.f32 0.5, %v131_v29  ;;  %v143_v36 = vmul.f32 0.16666667, %v7277_v33  ;;  %v138_v37 = vmul.f32 0.16666667, %v135_v34  ;;  %s8138_s10 = smov 16  }
  0x68   :  { %6254 = vmatprep.subr.bf16.mxu0 %v6253_v3  ;;  %s8134_s2 = smov 24   ;;  %s8165_s4 = sld [smem:[#allocation21_spill]] }
  0x69   :  { %6256 = vmatpush3.bf16.msra.mxu0 %v6253_v3  ;;  %v139_v35 = vmul.f32 0.16666667, %v136_v32  ;;  %v144_v39 = vfloor.f32 %v143_v36  ;;  %v140_v40 = vfloor.f32 %v138_v37  ;;  %s8175_s0 = smov 48  }
  0x6a   :  { %6258 = vmatprep.subr.bf16.mxu0 %v6257_v6 }
  0x6b   :  { %v141_v38 = vfloor.f32 %v139_v35  ;;  %vm145_vm4 = vcmp.eq.f32.partialorder %v140_v40, %v144_v39 }
  0x6c   :  { %v7286_v46 = vsel %vm145_vm4, 0.0, %v7003_v42 }
  0x6d   :  { %6260 = vmatpush3.bf16.msra.mxu0 %v6257_v6  ;;  %vm146_vm3 = vcmp.eq.f32.partialorder %v141_v38, %v144_v39  ;;  %v5550_v6 = vld [vmem:[%s8103_s7 + $0x1] ss:$0 sm:$0xff] }
  0x6e   :  { %v7283_v43 = vsel %vm146_vm3, 0.0, %v7003_v42  ;;  %vm1722_vm3 = vcmask 123904  }
  0x70   :  { %5822 = vmatmul.mubr.msk.f32.vlgmr.msra.gmra.mrb[0].mxu0 %vm227_vm0, %v7224_v7 }
 0x143   :  { %v5823_v9 = vpop.f32.mrb[0].mxu0 }
 0x144   :  { %v7231_v10 = vadd.f32 %v5823_v9, %v5405_v8  ;;  %v300_v11 = vpop.f32.mrb[1].mxu0 }
 0x145   :  { %v7233_v12 = vadd.f32 %v5405_v8, %v300_v11 }
 0x147   :  { %516 = vrot.lane.b32.xlu1 %v7233_v12, %s8144_s22  ;;  %5828 = vmatprep.mubr.msk.f32.mxu1 %vm315_vm1, %v7233_v12  ;;  %v7241_v13 = vpack.i.bf16 %v7231_v10, %v7233_v12 }
 0x149   :  { %6575 = vrot.lane.b32.xlu0 %v7241_v13, %s7001_s24 }
 0x14b   :  { %518 = vrot.lane.b32.xlu1 %v7231_v10, %s8144_s22 }
 0x14d   :  { %6580 = vrot.lane.b32.xlu0 %v7241_v13, %s8133_s6 }
 0x1b9   :  { %v517_v23 = vpop.permute.xlu1 %516 }
 0x1bb   :  { %v6576_v14 = vpop.permute.xlu0 %6575 }
 0x1bc   :  { %v6578_v15 = vunpack.i.h.bf16 %v6576_v14  ;;  %v6577_v16 = vunpack.i.l.bf16 %v6576_v14 }
 0x1bd   :  { %v519_v24 = vpop.permute.xlu1 %518 }
 0x1be   :  { %v6261_v18 = vpack.c.bf16 %v6578_v15, %v6577_v16 }
 0x1bf   :  { %v6581_v19 = vpop.permute.xlu0 %6580 }
 0x1c0   :  { %v6583_v20 = vunpack.i.h.bf16 %v6581_v19  ;;  %v6582_v21 = vunpack.i.l.bf16 %v6581_v19  ;;  %6263 = vmatprep.subr.msk.bf16.mxu1 %vm7251_vm2, %v6261_v18 }
 0x1c1   :  { %6266 = vmatpush3.bf16.xpose.msk.msra.mxu1 %vm7251_vm2, %v6261_v18 }
 0x1c2   :  { %v6273_v22 = vpack.c.bf16 %v6583_v20, %v6582_v21 }
 0x1c4   :  { %6275 = vmatprep.subr.msk.bf16.mxu1 %vm7251_vm2, %v6273_v22 }
 0x1c8   :  { %5829 = vmatmul.mubr.msk.f32.vlgmr.msra.gmra.mrb[0].mxu1 %vm315_vm1, %v7231_v10 }
 0x1c9   :  { %6278 = vmatpush3.bf16.xpose.msk.msra.mxu1 %vm7251_vm2, %v6273_v22  ;;  %5842 = vmatprep.mubr.msk.f32.mxu1 %vm315_vm1, %v517_v23 }
 0x1d0   :  { %5843 = vmatmul.mubr.msk.f32.vlgmr.msra.gmra.mrb[2].mxu1 %vm315_vm1, %v519_v24 }
 0x29b   :  { %v5830_v41 = vpop.f32.mrb[0].mxu1 }
 0x29c   :  { %v400_v44 = vmul.f32 0.35355338, %v5830_v41  ;;  %v390_v45 = vpop.f32.mrb[1].mxu1 }
 0x29d   :  { %v399_v47 = vmul.f32 0.35355338, %v390_v45 }
 0x29e   :  { %v402_v48 = vadd.f32 %v400_v44, %v7283_v43 }
 0x29f   :  { %v401_v49 = vadd.f32 %v399_v47, %v7286_v46 }
 0x2a0   :  { %v408_v50 = vsel %vm407_vm5, %v402_v48, -inf }
 0x2a1   :  { %409 = vmax.xlane.f32.xlu1 %v408_v50  ;;  %v404_v51 = vsel %vm403_vm6, %v401_v49, -inf }
 0x2a2   :  { %405 = vmax.xlane.f32.xlu0 %v404_v51 }
 0x2a3   :  { %v5844_v52 = vpop.f32.mrb[2].mxu1 }
 0x2a4   :  { %v598_v53 = vpop.f32.mrb[3].mxu1  ;;  %v608_v54 = vmul.f32 0.35355338, %v5844_v52 }
 0x2a5   :  { %v607_v55 = vmul.f32 0.35355338, %v598_v53 }
 0x2a6   :  { %v610_v58 = vadd.f32 %v608_v54, %v7283_v43 }
 0x2a7   :  { %v609_v56 = vadd.f32 %v607_v55, %v7286_v46 }
 0x2a8   :  { %v614_v59 = vsel %vm407_vm5, %v610_v58, -inf }
 0x2a9   :  { %v611_v57 = vsel %vm403_vm6, %v609_v56, -inf }
 0x2aa   :  { %612 = vmax.xlane.f32.xlu0 %v611_v57 }
 0x2ae   :  { %615 = vmax.xlane.f32.xlu0 %v614_v59 }
 0x2b2   :  { %6585 = vrot.lane.b32.xlu1 %v7241_v13, %s7004_s8 }
 0x32e   :  { %v410_v60 = vpop.xlane.xlu1 %409 }
 0x32f   :  { %v412_v61 = vsub.f32 %v402_v48, %v410_v60  ;;  %v406_v62 = vpop.xlane.xlu0 %405 }
 0x330   :  { %v411_v63 = vsub.f32 %v401_v49, %v406_v62 }
 0x331   :  { %v415_v0 = vmul.f32 1.442695, %v412_v61 }
 0x332   :  { %v413_v1 = vmul.f32 1.442695, %v411_v63  ;;  %v6586_v2 = vpop.permute.xlu1 %6585 }
 0x333   :  { %6754 = vpow2.f32 %v415_v0  ;;  %v6588_v3 = vunpack.i.h.bf16 %v6586_v2  ;;  %v6587_v4 = vunpack.i.l.bf16 %v6586_v2 }
 0x334   :  { %6756 = vpow2.f32 %v413_v1 }
 0x335   :  { %v6267_v8 = vpack.c.bf16 %v6588_v3, %v6587_v4 }
 0x337   :  { %6269 = vmatprep.subr.msk.bf16.mxu0 %vm7298_vm9, %v6267_v8  ;;  %v613_v9 = vpop.xlane.xlu0 %612 }
 0x338   :  { %6272 = vmatpush3.bf16.msk.msra.mxu0 %vm7298_vm9, %v6267_v8  ;;  %v617_v23 = vsub.f32 %v609_v56, %v613_v9 }
 0x33a   :  { %v619_v24 = vmul.f32 1.442695, %v617_v23 }
 0x33b   :  { %v616_v11 = vpop.xlane.xlu0 %615 }
 0x33c   :  { %v618_v14 = vsub.f32 %v610_v58, %v616_v11 }
 0x33d   :  { %v6755_v15 = vpop.eup %6754 }
 0x33e   :  { %v6757_v16 = vpop.eup %6756  ;;  %v621_v18 = vmul.f32 1.442695, %v618_v14  ;;  %v420_v19 = vsel %vm407_vm5, %v6755_v15, 0.0 }
 0x33f   :  { %421 = vadd.xlane.f32.xlu0 %v420_v19  ;;  %v417_v20 = vsel %vm403_vm6, %v6757_v16, 0.0 }
 0x340   :  { %6758 = vpow2.f32 %v621_v18  ;;  %418 = vadd.xlane.f32.xlu1 %v417_v20 }
 0x341   :  { %6760 = vpow2.f32 %v619_v24 }
 0x34a   :  { %v6759_v21 = vpop.eup %6758 }
 0x34b   :  { %v626_v22 = vsel %vm407_vm5, %v6759_v21, 0.0  ;;  %v6761_v25 = vpop.eup %6760 }
 0x34c   :  { %627 = vadd.xlane.f32.xlu0 %v626_v22  ;;  %v623_v29 = vsel %vm403_vm6, %v6761_v25, 0.0 }
 0x351   :  { %6595 = vrot.lane.b32.xlu1 %v7241_v13, %s8132_s29  ;;  %s8172_s29 = smov 112  }
 0x355   :  { %6600 = vrot.lane.b32.xlu1 %v7241_v13, %s8130_s25  ;;  %s8166_s25 = smov 8  }
 0x362   :  { %6590 = vrot.lane.b32.xlu0 %v7241_v13, %s8131_s26  ;;  %s8167_s26 = smov 24  }
 0x366   :  { %721 = vrot.lane.b32.xlu0 %v7233_v12, %s8142_s1 }
 0x36a   :  { %926 = vrot.lane.b32.xlu0 %v7233_v12, %s8140_s28 }
 0x379   :  { %624 = vadd.xlane.f32.xlu1 %v623_v29 }
 0x38a   :  { %723 = vrot.lane.b32.xlu1 %v7231_v10, %s8142_s1 }
 0x38e   :  { %928 = vrot.lane.b32.xlu1 %v7231_v10, %s8140_s28 }
 0x3cc   :  { %v422_v30 = vpop.xlane.xlu0 %421 }
 0x3cd   :  { %6762 = vrcp.f32 %v422_v30  ;;  %v419_v32 = vpop.xlane.xlu1 %418 }
 0x3ce   :  { %6764 = vrcp.f32 %v419_v32 }
 0x3d1   :  { %v6596_v34 = vpop.permute.xlu1 %6595 }
 0x3d2   :  { %v6598_v45 = vunpack.i.h.bf16 %v6596_v34  ;;  %v6597_v47 = vunpack.i.l.bf16 %v6596_v34 }
 0x3d4   :  { %v6285_v52 = vpack.c.bf16 %v6598_v45, %v6597_v47 }
 0x3d5   :  { %v6601_v35 = vpop.permute.xlu1 %6600 }
 0x3d6   :  { %v6603_v36 = vunpack.i.h.bf16 %v6601_v35  ;;  %v6602_v37 = vunpack.i.l.bf16 %v6601_v35 }
 0x3d7   :  { %v6763_v12 = vpop.eup %6762 }
 0x3d8   :  { %v6765_v38 = vpop.eup %6764  ;;  %v6297_v39 = vpack.c.bf16 %v6603_v36, %v6602_v37  ;;  %v426_v44 = vmul.f32 %v6763_v12, %v6755_v15 }
 0x3d9   :  { %v628_v40 = vpop.xlane.xlu0 %627  ;;  %v424_v41 = vmul.f32 %v6765_v38, %v6757_v16 }
 0x3da   :  { %6299 = vmatprep.subr.msk.bf16.mxu1 %vm7251_vm2, %v6297_v39  ;;  %6766 = vrcp.f32 %v628_v40 }
 0x3db   :  { %5835 = vmatprep.mubr.msk.f32.mxu0 %vm403_vm6, %v424_v41  ;;  %6302 = vmatpush3.bf16.xpose.msk.msra.mxu1 %vm7251_vm2, %v6297_v39 }
 0x3dc   :  { %5836 = vmatmul.mubr.msk.f32.vlgmr.msra.gmra.mrb[2].mxu0 %vm403_vm6, %v426_v44 }
 0x3dd   :  { %v6591_v10 = vpop.permute.xlu0 %6590 }
 0x3de   :  { %v6593_v48 = vunpack.i.h.bf16 %v6591_v10  ;;  %v6592_v49 = vunpack.i.l.bf16 %v6591_v10 }
 0x3e0   :  { %v6279_v50 = vpack.c.bf16 %v6593_v48, %v6592_v49 }
 0x3e1   :  { %v722_v51 = vpop.permute.xlu0 %721 }
 0x3e2   :  { %6281 = vmatprep.subr.msk.bf16.mxu0 %vm7298_vm9, %v6279_v50 }
 0x3e3   :  { %6284 = vmatpush3.bf16.msk.msra.mxu0 %vm7298_vm9, %v6279_v50 }
 0x3e4   :  { %6287 = vmatprep.subr.msk.bf16.mxu0 %vm7251_vm2, %v6285_v52  ;;  %v6767_v57 = vpop.eup %6766 }
 0x3e5   :  { %v927_v53 = vpop.permute.xlu0 %926  ;;  %v632_v60 = vmul.f32 %v6767_v57, %v6759_v21 }
 0x3e6   :  { %5870 = vmatprep.mubr.msk.f32.mxu1 %vm315_vm1, %v927_v53 }
 0x406   :  { %v625_v54 = vpop.xlane.xlu1 %624 }
 0x407   :  { %6768 = vrcp.f32 %v625_v54 }
 0x40a   :  { %v724_v55 = vpop.permute.xlu1 %723 }
 0x40e   :  { %v929_v56 = vpop.permute.xlu1 %928 }
 0x40f   :  { %5871 = vmatmul.mubr.msk.f32.vlgmr.msra.gmra.mrb[4].mxu1 %vm315_vm1, %v929_v56 }
 0x411   :  { %v6769_v58 = vpop.eup %6768 }
 0x412   :  { %v630_v59 = vmul.f32 %v6769_v58, %v6761_v25 }
 0x414   :  { %5849 = vmatprep.mubr.msk.f32.mxu0 %vm403_vm6, %v630_v59 }
 0x415   :  { %5850 = vmatmul.mubr.msk.f32.vlgmr.msra.gmra.mrb[4].mxu0 %vm403_vm6, %v632_v60 }
 0x416   :  { %6290 = vmatpush3.bf16.xpose.msk.msra.mxu0 %vm7251_vm2, %v6285_v52  ;;  %5856 = vmatprep.mubr.msk.f32.mxu0 %vm315_vm1, %v722_v51 }
 0x41d   :  { %5857 = vmatmul.mubr.msk.f32.vlgmr.msra.gmra.mrb[6].mxu0 %vm315_vm1, %v724_v55 }
 0x4af   :  { %v7344_v61 = vpop.f32.mrb[2].mxu0 }
 0x4b0   :  { %v7346_v62 = vpop.f32.mrb[3].mxu0 }
 0x4e2   :  { %v5872_v63 = vpop.f32.mrb[4].mxu1 }
 0x4e3   :  { %v1008_v0 = vpop.f32.mrb[5].mxu1  ;;  %v1018_v18 = vmul.f32 0.35355338, %v5872_v63 }
 0x4e4   :  { %v1017_v9 = vmul.f32 0.35355338, %v1008_v0 }
 0x4e5   :  { %v1020_v22 = vadd.f32 %v1018_v18, %v7283_v43  ;;  %v189_v18 = vld [vmem:[%s8163_s21 + $0x18] sm:$0xff] }
 0x4e6   :  { %v1019_v20 = vadd.f32 %v1017_v9, %v7286_v46 }
 0x4e7   :  { %v1024_v23 = vsel %vm407_vm5, %v1020_v22, -inf }
 0x4e8   :  { %v5851_v1 = vpop.f32.mrb[4].mxu0  ;;  %v1021_v21 = vsel %vm403_vm6, %v1019_v20, -inf }
 0x4e9   :  { %v712_v2 = vpop.f32.mrb[5].mxu0 }
 0x4f0   :  { %v5858_v3 = vpop.f32.mrb[6].mxu0 }
 0x4f1   :  { %v813_v4 = vmul.f32 0.35355338, %v5858_v3  ;;  %v803_v8 = vpop.f32.mrb[7].mxu0 }
 0x4f2   :  { %v812_v11 = vmul.f32 0.35355338, %v803_v8 }
 0x4f3   :  { %v815_v14 = vadd.f32 %v813_v4, %v7283_v43 }
 0x4f4   :  { %v814_v15 = vadd.f32 %v812_v11, %v7286_v46  ;;  %v186_v11 = vld [vmem:[%s8163_s21] sm:$0xff] }
 0x4f5   :  { %v819_v16 = vsel %vm407_vm5, %v815_v14, -inf }
 0x4f6   :  { %820 = vmax.xlane.f32.xlu1 %v819_v16  ;;  %v816_v19 = vsel %vm403_vm6, %v814_v15, -inf  ;;  %v188_v16 = vld [vmem:[%s8163_s21 + $0x10] sm:$0xff] }
 0x4f7   :  { %817 = vmax.xlane.f32.xlu0 %v816_v19  ;;  %v6313_v19 = vpack.c.bf16 %v189_v18, %v188_v16  ;;  %v5439_v18 = vld [vmem:[%s8110_s14] ss:$0 sm:$0xff] }
 0x4fb   :  { %1022 = vmax.xlane.f32.xlu0 %v1021_v21 }
 0x4ff   :  { %1025 = vmax.xlane.f32.xlu0 %v1024_v23 }
 0x583   :  { %v821_v29 = vpop.xlane.xlu1 %820 }
 0x584   :  { %v818_v24 = vpop.xlane.xlu0 %817  ;;  %v823_v34 = vsub.f32 %v815_v14, %v821_v29  ;;  %v187_v14 = vld [vmem:[%s8163_s21 + $0x8] sm:$0xff] }
 0x585   :  { %v822_v25 = vsub.f32 %v814_v15, %v818_v24  ;;  %v6309_v15 = vpack.c.bf16 %v187_v14, %v186_v11 }
 0x586   :  { %v826_v38 = vmul.f32 1.442695, %v823_v34 }
 0x587   :  { %v824_v35 = vmul.f32 1.442695, %v822_v25 }
 0x588   :  { %v1023_v30 = vpop.xlane.xlu0 %1022 }
 0x589   :  { %v1027_v32 = vsub.f32 %v1019_v20, %v1023_v30 }
 0x58b   :  { %v1029_v36 = vmul.f32 1.442695, %v1027_v32 }
 0x58c   :  { %v1026_v37 = vpop.xlane.xlu0 %1025 }
 0x58d   :  { %6770 = vpow2.f32 %v1029_v36  ;;  %v1028_v12 = vsub.f32 %v1020_v22, %v1026_v37 }
 0x58e   :  { %6772 = vpow2.f32 %v824_v35 }
 0x58f   :  { %v1031_v39 = vmul.f32 1.442695, %v1028_v12 }
 0x591   :  { %6774 = vpow2.f32 %v1031_v39 }
 0x592   :  { %6776 = vpow2.f32 %v826_v38 }
 0x597   :  { %v6771_v40 = vpop.eup %6770 }
 0x598   :  { %v1033_v41 = vsel %vm403_vm6, %v6771_v40, 0.0  ;;  %v6773_v44 = vpop.eup %6772 }
 0x599   :  { %1034 = vadd.xlane.f32.xlu1 %v1033_v41  ;;  %v828_v45 = vsel %vm403_vm6, %v6773_v44, 0.0 }
 0x59b   :  { %v6775_v10 = vpop.eup %6774 }
 0x59c   :  { %v1036_v47 = vsel %vm407_vm5, %v6775_v10, 0.0  ;;  %v6777_v48 = vpop.eup %6776 }
 0x59d   :  { %829 = vadd.xlane.f32.xlu1 %v828_v45  ;;  %1037 = vadd.xlane.f32.xlu0 %v1036_v47  ;;  %v831_v49 = vsel %vm407_vm5, %v6777_v48, 0.0 }
 0x5a1   :  { %832 = vadd.xlane.f32.xlu0 %v831_v49 }
 0x5ae   :  { %6605 = vrot.lane.b32.xlu1 %v7241_v13, %s8129_s23  ;;  %s8164_s23 = sld [smem:[#allocation20_spill]] }
 0x5b2   :  { %1133 = vrot.lane.b32.xlu1 %v712_v2, %s8136_s27 }
 0x5b6   :  { %1135 = vrot.lane.b32.xlu1 %v5851_v1, %s8136_s27  ;;  %s8177_s27 = smov 16  }
 0x5b7   :  { %6610 = vrot.lane.b32.xlu0 %v7241_v13, %s8128_s3  ;;  %s8174_s3 = smov 104  }
 0x626   :  { %v1035_v50 = vpop.xlane.xlu1 %1034 }
 0x62a   :  { %v830_v51 = vpop.xlane.xlu1 %829  ;;  %v1038_v52 = vpop.xlane.xlu0 %1037 }
 0x62b   :  { %6778 = vrcp.f32 %v830_v51 }
 0x62c   :  { %6780 = vrcp.f32 %v1035_v50 }
 0x62e   :  { %v6606_v53 = vpop.permute.xlu1 %6605  ;;  %v833_v54 = vpop.xlane.xlu0 %832 }
 0x62f   :  { %v6608_v55 = vunpack.i.h.bf16 %v6606_v53  ;;  %v6607_v56 = vunpack.i.l.bf16 %v6606_v53  ;;  %6782 = vrcp.f32 %v833_v54 }
 0x630   :  { %6784 = vrcp.f32 %v1038_v52 }
 0x631   :  { %v6291_v57 = vpack.c.bf16 %v6608_v55, %v6607_v56 }
 0x632   :  { %v6611_v58 = vpop.permute.xlu0 %6610  ;;  %v1134_v24 = vpop.permute.xlu1 %1133 }
 0x633   :  { %v6613_v59 = vunpack.i.h.bf16 %v6611_v58  ;;  %v6612_v60 = vunpack.i.l.bf16 %v6611_v58  ;;  %6293 = vmatprep.subr.msk.bf16.mxu0 %vm7298_vm9, %v6291_v57  ;;  %v1155_v32 = vsel %vm315_vm1, %v7346_v62, %v1134_v24  ;;  %v5436_v62 = vld [vmem:[%s8164_s23] ss:$0 sm:$0xff]  ;;  %v7017_v58 = vmov 0.0  }
 0x634   :  { %6296 = vmatpush3.bf16.msk.msra.mxu0 %vm7298_vm9, %v6291_v57  ;;  %5895 = vmatprep.mubr.msk.f32.mxu1 %vm7016_vm13, %v7017_v58  ;;  %v5440_v24 = vld [vmem:[%s8111_s15] ss:$0 sm:$0xff] }
 0x635   :  { %v6779_v13 = vpop.eup %6778  ;;  %v6303_v63 = vpack.c.bf16 %v6613_v59, %v6612_v60  ;;  %v191_v59 = vld [vmem:[%s8165_s4] sm:$0xff]  ;;  %v192_v60 = vld [vmem:[%s8165_s4 + $0x8] sm:$0xff] }
 0x636   :  { %v835_v0 = vmul.f32 %v6779_v13, %v6773_v44  ;;  %v6781_v1 = vpop.eup %6780  ;;  %v1136_v25 = vpop.permute.xlu1 %1135  ;;  %v193_v13 = vld [vmem:[%s8165_s4 + $0x10] sm:$0xff] }
 0x637   :  { %6305 = vmatprep.subr.msk.bf16.mxu0 %vm7298_vm9, %v6303_v63  ;;  %v1040_v8 = vmul.f32 %v6781_v1, %v6771_v40  ;;  %v1156_v35 = vsel %vm315_vm1, %v7344_v61, %v1136_v25  ;;  %v179_v1 = vld [vmem:[#allocation5] sm:$0xff] }
 0x638   :  { %5863 = vmatprep.mubr.msk.f32.mxu0 %vm403_vm6, %v835_v0  ;;  %v194_v0 = vld [vmem:[%s8165_s4 + $0x18] sm:$0xff] }
 0x639   :  { %v6783_v2 = vpop.eup %6782 }
 0x63a   :  { %v837_v3 = vmul.f32 %v6783_v2, %v6777_v48  ;;  %v6785_v4 = vpop.eup %6784  ;;  %v7430_v2 = vpack.i.bf16 %v194_v0, %v193_v13 }
 0x63b   :  { %v1042_v9 = vmul.f32 %v6785_v4, %v6775_v10 }
 0x63c   :  { %5864 = vmatmul.mubr.msk.f32.vlgmr.msra.gmra.mrb[8].mxu0 %vm403_vm6, %v837_v3 }
 0x63d   :  { %6308 = vmatpush3.bf16.msk.msra.mxu0 %vm7298_vm9, %v6303_v63  ;;  %5877 = vmatprep.mubr.msk.f32.mxu0 %vm403_vm6, %v1040_v8  ;;  %v7425_v63 = vpack.i.bf16 %v192_v60, %v191_v59 }
 0x63e   :  { %6310 = vmatprep.subr.bf16.mxu0 %v6309_v15 }
 0x640   :  { %5878 = vmatmul.mubr.msk.f32.vlgmr.msra.gmra.mrb[10].mxu0 %vm403_vm6, %v1042_v9 }
 0x641   :  { %6312 = vmatpush3.bf16.msra.mxu0 %v6309_v15 }
 0x642   :  { %6314 = vmatprep.subr.bf16.mxu0 %v6313_v19 }
 0x645   :  { %6316 = vmatpush3.bf16.msra.mxu0 %v6313_v19  ;;  %v162_v19 = vmul.u32 6, %v7267_v26 }
 0x647   :  { %v163_v25 = vadd.s32 5, %v162_v19 }
 0x649   :  { %vm164_vm14 = vcmp.eq.s32.totalorder %v7272_v28, %v163_v25 }
 0x70f   :  { %v5865_v20 = vpop.f32.mrb[8].mxu0 }
 0x710   :  { %1143 = vrot.lane.b32.xlu1 %v5865_v20, %s8138_s10  ;;  %v917_v21 = vpop.f32.mrb[9].mxu0 }
 0x711   :  { %1141 = vrot.lane.b32.xlu0 %v917_v21, %s8138_s10 }
 0x713   :  { %v5879_v22 = vpop.f32.mrb[10].mxu0 }
 0x714   :  { %1151 = vrot.lane.b32.xlu1 %v5879_v22, %s8134_s2  ;;  %v1122_v23 = vpop.f32.mrb[11].mxu0 }
 0x715   :  { %1149 = vrot.lane.b32.xlu0 %v1122_v23, %s8134_s2  ;;  %s8173_s2 = smov 72  }
 0x782   :  { %v1144_v29 = vpop.permute.xlu1 %1143 }
 0x783   :  { %v1142_v30 = vpop.permute.xlu0 %1141  ;;  %v1159_v12 = vsel %vm1157_vm10, %v1156_v35, %v1144_v29 }
 0x784   :  { %v1158_v36 = vsel %vm1157_vm10, %v1155_v32, %v1142_v30 }
 0x786   :  { %v1152_v34 = vpop.permute.xlu1 %1151 }
 0x787   :  { %v1150_v37 = vpop.permute.xlu0 %1149  ;;  %v1162_v39 = vsel %vm1160_vm11, %v1159_v12, %v1152_v34 }
 0x788   :  { %v1161_v38 = vsel %vm1160_vm11, %v1158_v36, %v1150_v37 }
 0x789   :  { %5888 = vmatprep.mubr.msk.f32.mxu0 %vm227_vm0, %v1161_v38 }
 0x78a   :  { %5889 = vmatmul.mubr.msk.f32.vlgmr.msra.gmra.mrb[12].mxu0 %vm227_vm0, %v1162_v39 }
 0x78b   :  { %5917 = vmatprep.mubr.msk.f32.mxu0 %vm227_vm0, %v179_v1 }
 0x85d   :  { %v5890_v40 = vpop.f32.mrb[12].mxu0 }
 0x85e   :  { %v1247_v41 = vadd.f32 %v5890_v40, %v5436_v62  ;;  %v1241_v61 = vpop.f32.mrb[13].mxu0  ;;  %v7454_v40 = vsel %vm164_vm14, 1.0, %v7017_v58 }
 0x85f   :  { %v1242_v44 = vadd.f32 %v5436_v62, %v1241_v61  ;;  %v180_v61 = vld [vmem:[#allocation5 + $0x8] sm:$0xff] }
 0x860   :  { %v1251_v10 = vadd.f32 %v1247_v41, %v7224_v7  ;;  %v6322_v41 = vpack.c.bf16 %v192_v60, %v191_v59 }
 0x861   :  { %v1250_v45 = vadd.f32 %v1242_v44, %v7220_v5  ;;  %v7015_v5 = vmov 0.0|0.0   ;;  %v6325_v44 = vpack.c.bf16 %v194_v0, %v193_v13 }
 0x862   :  { %v1256_v47 = vsel %vm1255_vm12, %v1251_v10, 0.0  ;;  %6317 = vmatprep.subr.bf16.mxu1 %v7015_v5 }
 0x863   :  { %1257 = vadd.xlane.f32.xlu1 %v1256_v47  ;;  %v1252_v48 = vsel %vm227_vm0, %v1250_v45, 0.0 }
 0x864   :  { %1253 = vadd.xlane.f32.xlu0 %v1252_v48 }
 0x874   :  { %6615 = vrot.lane.b32.xlu1 %v7425_v63, %s7001_s24 }
 0x8f0   :  { %v1258_v49 = vpop.xlane.xlu1 %1257 }
 0x8f1   :  { %v1261_v50 = vmul.f32 0.03125, %v1258_v49  ;;  %v1254_v51 = vpop.xlane.xlu0 %1253 }
 0x8f2   :  { %v1260_v52 = vmul.f32 0.03125, %v1254_v51 }
 0x8f3   :  { %v1263_v53 = vsub.f32 %v1251_v10, %v1261_v50  ;;  %v7469_v10 = vld [vmem:[%s8103_s7] ss:$0 sm:$0xff] }
 0x8f4   :  { %v1262_v54 = vsub.f32 %v1250_v45, %v1260_v52  ;;  %v6616_v23 = vpop.permute.xlu1 %6615  ;;  %1467 = vrot.lane.b32.xlu1 %v7469_v10, %s7001_s24 }
 0x8f5   :  { %v1265_v57 = vmul.f32 %v1263_v53, %v1263_v53  ;;  %v6618_v29 = vunpack.i.h.bf16 %v6616_v23  ;;  %v6617_v30 = vunpack.i.l.bf16 %v6616_v23 }
 0x8f6   :  { %v1264_v55 = vmul.f32 %v1262_v54, %v1262_v54 }
 0x8f7   :  { %v1269_v7 = vsel %vm1255_vm12, %v1265_v57, 0.0  ;;  %v6327_v37 = vpack.c.bf16 %v6618_v29, %v6617_v30 }
 0x8f8   :  { %v1266_v56 = vsel %vm227_vm0, %v1264_v55, 0.0 }
 0x8f9   :  { %1267 = vadd.xlane.f32.xlu0 %v1266_v56  ;;  %6328 = vmatprep.subr.bf16.mxu0 %v6327_v37 }
 0x8fa   :  { %6330 = vmatpush3.bf16.msra.mxu0 %v6327_v37 }
 0x8fd   :  { %1270 = vadd.xlane.f32.xlu0 %v1269_v7 }
 0x913   :  { %6620 = vrot.lane.b32.xlu0 %v7430_v2, %s7001_s24 }
 0x966   :  { %v1468_v47 = vpop.permute.xlu1 %1467 }
 0x986   :  { %v1268_v3 = vpop.xlane.xlu0 %1267 }
 0x987   :  { %v1272_v4 = vmul.f32 0.03125, %v1268_v3 }
 0x989   :  { %v1274_v8 = vadd.f32 1e-05, %v1272_v4 }
 0x98a   :  { %v1271_v9 = vpop.xlane.xlu0 %1270 }
 0x98b   :  { %6786 = vrsqrt.f32 %v1274_v8  ;;  %v1273_v11 = vmul.f32 0.03125, %v1271_v9 }
 0x98d   :  { %v1275_v14 = vadd.f32 1e-05, %v1273_v11 }
 0x98e   :  { %v6621_v32 = vpop.permute.xlu0 %6620 }
 0x98f   :  { %6788 = vrsqrt.f32 %v1275_v14  ;;  %v6623_v35 = vunpack.i.h.bf16 %v6621_v32  ;;  %v6622_v36 = vunpack.i.l.bf16 %v6621_v32 }
 0x991   :  { %v6331_v39 = vpack.c.bf16 %v6623_v35, %v6622_v36 }
 0x993   :  { %6332 = vmatprep.subr.bf16.mxu0 %v6331_v39 }
 0x994   :  { %6334 = vmatpush3.bf16.msra.mxu0 %v6331_v39 }
 0x995   :  { %v6787_v15 = vpop.eup %6786  ;;  %6343 = vmatprep.subr.bf16.mxu0 %v7015_v5 }
 0x996   :  { %v1278_v16 = vmul.f32 %v6787_v15, %v1262_v54 }
 0x997   :  { %5918 = vmatmul.mubr.msk.f32.vlgmr.msra.gmra.mrb[14].mxu0 %vm227_vm0, %v180_v61 }
 0x998   :  { %v1286_v21 = vmul.f32 %v5439_v18, %v1278_v16  ;;  %5935 = vmatprep.mubr.msk.f32.mxu0 %vm7016_vm13, %v7017_v58 }
 0x999   :  { %v6789_v20 = vpop.eup %6788 }
 0x99a   :  { %v1279_v22 = vmul.f32 %v6789_v20, %v1263_v53  ;;  %v7444_v12 = vadd.f32 %v5440_v24, %v1286_v21 }
 0x99c   :  { %v1287_v34 = vmul.f32 %v5439_v18, %v1279_v22 }
 0x99e   :  { %v7446_v38 = vadd.f32 %v5440_v24, %v1287_v34 }
 0x9a0   :  { %v6318_v62 = vpack.c.bf16 %v7446_v38, %v7444_v12 }
 0x9a2   :  { %6320 = vmatpush3.bf16.msk.msra.mxu1 %vm7298_vm9, %v6318_v62 }
 0x9a3   :  { %6321 = vmatprep.subr.bf16.mxu1 %v7015_v5 }
 0x9a5   :  { %5896 = vmatmul.mubr.msk.f32.vlgmr.msra.gmra.mrb[6].mxu1 %vm403_vm6, %v7454_v40 }
 0x9a6   :  { %6323 = vmatpush3.bf16.msra.mxu1 %v6322_v41  ;;  %5906 = vmatprep.mubr.msk.f32.mxu1 %vm7016_vm13, %v7017_v58 }
 0x9a7   :  { %6324 = vmatprep.subr.bf16.mxu1 %v7015_v5 }
 0x9aa   :  { %6326 = vmatpush3.bf16.msra.mxu1 %v6325_v44 }
 0xa6a   :  { %v5919_v49 = vpop.f32.mrb[14].mxu0 }
 0xa6b   :  { %v1548_v50 = vadd.f32 %v5919_v49, %v1468_v47  ;;  %v1542_v51 = vpop.f32.mrb[15].mxu0 }
 0xa6c   :  { %v1543_v52 = vadd.f32 %v1542_v51, %v1468_v47 }
 0xa6e   :  { %v6344_v53 = vpack.c.bf16 %v1548_v50, %v1543_v52  ;;  %v7478_v54 = vpack.i.bf16 %v1548_v50, %v1543_v52 }
 0xa70   :  { %6625 = vrot.lane.b32.xlu1 %v7478_v54, %s8144_s22  ;;  %6346 = vmatpush3.bf16.xpose.msk.msra.mxu0 %vm7251_vm2, %v6344_v53 }
 0xa71   :  { %6350 = vmatprep.subr.bf16.mxu0 %v7015_v5 }
 0xa74   :  { %6630 = vrot.lane.b32.xlu1 %v7425_v63, %s7004_s8 }
 0xa78   :  { %v7473_v45 = vpop.f32.mrb[6].mxu1 }
 0xa79   :  { %v5897_v48 = vpop.f32.mrb[7].mxu1  ;;  %5907 = vmatmul.mubr.msk.f32.vlgmr.msra.gmra.mrb[8].mxu1 %vm227_vm0, %v7473_v45 }
 0xa7a   :  { %5928 = vmatprep.mubr.msk.f32.mxu1 %vm227_vm0, %v179_v1 }
 0xae2   :  { %v6626_v55 = vpop.permute.xlu1 %6625 }
 0xae3   :  { %v6628_v56 = vunpack.i.h.bf16 %v6626_v55  ;;  %v6627_v57 = vunpack.i.l.bf16 %v6626_v55 }
 0xae5   :  { %v6351_v59 = vpack.c.bf16 %v6628_v56, %v6627_v57 }
 0xae6   :  { %v6631_v63 = vpop.permute.xlu1 %6630 }
 0xae7   :  { %v6633_v0 = vunpack.i.h.bf16 %v6631_v63  ;;  %v6632_v1 = vunpack.i.l.bf16 %v6631_v63 }
 0xae9   :  { %v6335_v3 = vpack.c.bf16 %v6633_v0, %v6632_v1 }
 0xaeb   :  { %6336 = vmatprep.subr.bf16.mxu1 %v6335_v3 }
 0xaec   :  { %6338 = vmatpush3.bf16.msra.mxu1 %v6335_v3 }
 0xb4c   :  { %v1447_v7 = vpop.f32.mrb[8].mxu1 }
 0xb4d   :  { %v7488_v60 = vadd.f32 %v7469_v10, %v1447_v7  ;;  %v5908_v13 = vpop.f32.mrb[9].mxu1 }
 0xb4f   :  { %1807 = vrot.lane.b32.xlu0 %v7488_v60, %s8144_s22  ;;  %5936 = vmatmul.mubr.msk.f32.vlgmr.msra.gmra.mrb[16].mxu0 %vm315_vm1, %v7488_v60 }
 0xb50   :  { %6353 = vmatpush3.bf16.xpose.msk.msra.mxu0 %vm7251_vm2, %v6351_v59  ;;  %5949 = vmatprep.mubr.msk.f32.mxu0 %vm7016_vm13, %v7017_v58 }
 0xb51   :  { %6361 = vmatprep.subr.bf16.mxu0 %v7015_v5 }
 0xb53   :  { %6635 = vrot.lane.b32.xlu0 %v7430_v2, %s7004_s8  ;;  %v150_v2 = vmul.f32 0.125, %v7277_v33 }
 0xb55   :  { %v151_v15 = vfloor.f32 %v150_v2 }
 0xb57   :  { %vm152_vm15 = vcmp.eq.f32.partialorder %v130_v31, %v151_v15 }
 0xb58   :  { %v7512_v18 = vsel %vm152_vm15, 0.0, %v7003_v42  ;;  %vm171_vm15 = vcmask 11264  }
 0xbc1   :  { %v1808_v4 = vpop.permute.xlu0 %1807 }
 0xbc2   :  { %5950 = vmatmul.mubr.msk.f32.vlgmr.msra.gmra.mrb[18].mxu0 %vm315_vm1, %v1808_v4 }
 0xbc3   :  { %5970 = vmatprep.mubr.msk.f32.mxu0 %vm7016_vm13, %v7017_v58 }
 0xbc5   :  { %v6636_v8 = vpop.permute.xlu0 %6635 }
 0xbc6   :  { %v6638_v9 = vunpack.i.h.bf16 %v6636_v8  ;;  %v6637_v11 = vunpack.i.l.bf16 %v6636_v8 }
 0xbc8   :  { %v6339_v14 = vpack.c.bf16 %v6638_v9, %v6637_v11 }
 0xbca   :  { %6340 = vmatprep.subr.bf16.mxu1 %v6339_v14 }
 0xbcb   :  { %6342 = vmatpush3.bf16.msra.mxu1 %v6339_v14 }
 0xbcc   :  { %6347 = vmatprep.subr.bf16.mxu1 %v7015_v5 }
 0xbce   :  { %5929 = vmatmul.mubr.msk.f32.vlgmr.msra.gmra.mrb[10].mxu1 %vm227_vm0, %v180_v61 }
 0xbcf   :  { %5942 = vmatprep.mubr.msk.f32.mxu1 %vm7016_vm13, %v7017_v58 }
 0xc22   :  { %v1716_v16 = vpop.f32.mrb[16].mxu0 }
 0xc23   :  { %v1720_v19 = vmul.f32 0.35355338, %v1716_v16  ;;  %v5937_v20 = vpop.f32.mrb[17].mxu0 }
 0xc25   :  { %v1721_v21 = vadd.f32 %v1720_v19, %v7512_v18 }
 0xc27   :  { %v1723_v22 = vsel %vm1722_vm3, %v1721_v21, -inf }
 0xc28   :  { %1724 = vmax.xlane.f32.xlu1 %v1723_v22 }
 0xc95   :  { %v1885_v23 = vpop.f32.mrb[18].mxu0 }
 0xc96   :  { %v1889_v24 = vmul.f32 0.35355338, %v1885_v23  ;;  %v5951_v25 = vpop.f32.mrb[19].mxu0 }
 0xc98   :  { %v1890_v33 = vadd.f32 %v1889_v24, %v7512_v18 }
 0xc9a   :  { %v1891_v29 = vsel %vm1722_vm3, %v1890_v33, -inf }
 0xc9b   :  { %1892 = vmax.xlane.f32.xlu0 %v1891_v29 }
 0xca1   :  { %v5930_v32 = vpop.f32.mrb[10].mxu1 }
 0xca2   :  { %v1632_v34 = vpop.f32.mrb[11].mxu1 }
 0xcb1   :  { %1563 = vrot.lane.b32.xlu0 %v7469_v10, %s7004_s8 }
 0xcb5   :  { %v1725_v31 = vpop.xlane.xlu1 %1724  ;;  %6645 = vrot.lane.b32.xlu0 %v7478_v54, %s8142_s1 }
 0xcb6   :  { %v1726_v42 = vsub.f32 %v1721_v21, %v1725_v31 }
 0xcb8   :  { %v1727_v30 = vmul.f32 1.442695, %v1726_v42 }
 0xcb9   :  { %1983 = vrot.lane.b32.xlu0 %v7488_v60, %s8142_s1 }
 0xcba   :  { %6790 = vpow2.f32 %v1727_v30 }
 0xcc4   :  { %v6791_v35 = vpop.eup %6790 }
 0xcc5   :  { %v1729_v36 = vsel %vm1722_vm3, %v6791_v35, 0.0 }
 0xcc6   :  { %1730 = vadd.xlane.f32.xlu1 %v1729_v36 }
 0xd28   :  { %v1893_v37 = vpop.xlane.xlu0 %1892 }
 0xd29   :  { %v1894_v39 = vsub.f32 %v1890_v33, %v1893_v37 }
 0xd2b   :  { %v1895_v62 = vmul.f32 1.442695, %v1894_v39 }
 0xd2c   :  { %v1564_v41 = vpop.permute.xlu0 %1563 }
 0xd2d   :  { %6792 = vpow2.f32 %v1895_v62  ;;  %v1638_v61 = vadd.f32 %v5930_v32, %v1564_v41  ;;  %v1633_v44 = vadd.f32 %v1632_v34, %v1564_v41 }
 0xd2f   :  { %v7525_v10 = vpack.i.bf16 %v1638_v61, %v1633_v44  ;;  %v6348_v47 = vpack.c.bf16 %v1638_v61, %v1633_v44 }
 0xd30   :  { %v6646_v59 = vpop.permute.xlu0 %6645 }
 0xd31   :  { %6349 = vmatpush3.bf16.msra.mxu1 %v6348_v47  ;;  %v6648_v63 = vunpack.i.h.bf16 %v6646_v59  ;;  %v6647_v0 = vunpack.i.l.bf16 %v6646_v59 }
 0xd32   :  { %6354 = vmatprep.subr.bf16.mxu1 %v7015_v5 }
 0xd33   :  { %v6358_v3 = vpack.c.bf16 %v6648_v63, %v6647_v0  ;;  %v196_v63 = vld [vmem:[#allocation7] sm:$0xff]  ;;  %v197_v0 = vld [vmem:[#allocation7 + $0x8] sm:$0xff] }
 0xd34   :  { %v1984_v4 = vpop.permute.xlu0 %1983 }
 0xd37   :  { %v6793_v48 = vpop.eup %6792 }
 0xd38   :  { %v1897_v49 = vsel %vm1722_vm3, %v6793_v48, 0.0 }
 0xd39   :  { %1898 = vadd.xlane.f32.xlu1 %v1897_v49 }
 0xd4a   :  { %6640 = vrot.lane.b32.xlu1 %v7525_v10, %s8144_s22 }
 0xd53   :  { %v1731_v50 = vpop.xlane.xlu1 %1730 }
 0xd54   :  { %6794 = vrcp.f32 %v1731_v50 }
 0xd5e   :  { %v6795_v51 = vpop.eup %6794 }
 0xd5f   :  { %v1733_v52 = vmul.f32 %v6795_v51, %v6791_v35 }
 0xd61   :  { %5943 = vmatmul.mubr.msk.f32.vlgmr.msra.gmra.mrb[12].mxu1 %vm1157_vm10, %v1733_v52 }
 0xd62   :  { %5956 = vmatprep.mubr.msk.f32.mxu1 %vm7016_vm13, %v7017_v58 }
 0xdc6   :  { %v1899_v53 = vpop.xlane.xlu1 %1898 }
 0xdc7   :  { %6796 = vrcp.f32 %v1899_v53 }
 0xdca   :  { %v6641_v55 = vpop.permute.xlu1 %6640 }
 0xdcb   :  { %v6643_v56 = vunpack.i.h.bf16 %v6641_v55  ;;  %v6642_v57 = vunpack.i.l.bf16 %v6641_v55 }
 0xdcd   :  { %v6355_v7 = vpack.c.bf16 %v6643_v56, %v6642_v57 }
 0xdcf   :  { %6356 = vmatpush3.bf16.msra.mxu1 %v6355_v7 }
 0xdd0   :  { %6357 = vmatprep.subr.bf16.mxu1 %v7015_v5 }
 0xdd1   :  { %v6797_v13 = vpop.eup %6796 }
 0xdd2   :  { %v1901_v1 = vmul.f32 %v6797_v13, %v6793_v48 }
 0xdd4   :  { %5957 = vmatmul.mubr.msk.f32.vlgmr.msra.gmra.mrb[14].mxu1 %vm1157_vm10, %v1901_v1  ;;  %v198_v1 = vld [vmem:[#allocation7 + $0x10] sm:$0xff] }
 0xdd5   :  { %5963 = vmatprep.mubr.msk.f32.mxu1 %vm7016_vm13, %v7017_v58 }
 0xdd8   :  { %6360 = vmatpush3.bf16.xpose.msk.msra.mxu1 %vm7251_vm2, %v6358_v3  ;;  %v6372_v3 = vpack.c.bf16 %v197_v0, %v196_v63 }
 0xdd9   :  { %6368 = vmatprep.subr.bf16.mxu1 %v7015_v5 }
 0xddf   :  { %5964 = vmatmul.mubr.msk.f32.vlgmr.msra.gmra.mrb[16].mxu1 %vm315_vm1, %v1984_v4  ;;  %v199_v4 = vld [vmem:[#allocation7 + $0x18] sm:$0xff] }
 0xde0   :  { %5984 = vmatprep.mubr.msk.f32.mxu1 %vm7016_vm13, %v7017_v58 }
 0xe34   :  { %v7544_v8 = vpop.f32.mrb[12].mxu1 }
 0xe35   :  { %v5944_v9 = vpop.f32.mrb[13].mxu1 }
 0xe36   :  { %v6375_v9 = vpack.c.bf16 %v199_v4, %v198_v1 }
 0xea7   :  { %v1979_v11 = vpop.f32.mrb[14].mxu1 }
 0xea8   :  { %v5958_v14 = vpop.f32.mrb[15].mxu1 }
 0xeb2   :  { %v2061_v2 = vpop.f32.mrb[16].mxu1 }
 0xeb3   :  { %v2065_v15 = vmul.f32 0.35355338, %v2061_v2  ;;  %v5965_v16 = vpop.f32.mrb[17].mxu1 }
 0xeb5   :  { %v2066_v19 = vadd.f32 %v2065_v15, %v7512_v18 }
 0xeb7   :  { %v2067_v20 = vsel %vm1722_vm3, %v2066_v19, -inf }
 0xeb8   :  { %2068 = vmax.xlane.f32.xlu1 %v2067_v20 }
 0xec9   :  { %6655 = vrot.lane.b32.xlu1 %v7478_v54, %s8140_s28 }
 0xecd   :  { %2157 = vrot.lane.b32.xlu1 %v7488_v60, %s8140_s28 }
 0xf45   :  { %v2069_v21 = vpop.xlane.xlu1 %2068 }
 0xf46   :  { %v2070_v22 = vsub.f32 %v2066_v19, %v2069_v21 }
 0xf48   :  { %v2071_v23 = vmul.f32 1.442695, %v2070_v22  ;;  %v154_v22 = vmul.u32 6, %v7272_v28 }
 0xf49   :  { %v6656_v30 = vpop.permute.xlu1 %6655 }
 0xf4a   :  { %6798 = vpow2.f32 %v2071_v23  ;;  %v6658_v32 = vunpack.i.h.bf16 %v6656_v30  ;;  %v6657_v34 = vunpack.i.l.bf16 %v6656_v30  ;;  %v155_v23 = vadd.s32 5, %v154_v22 }
 0xf4c   :  { %v6365_v36 = vpack.c.bf16 %v6658_v32, %v6657_v34  ;;  %vm156_vm4 = vcmp.eq.s32.totalorder %v7267_v26, %v155_v23  ;;  %vm157_vm14 = vcmp.eq.s32.totalorder %v7270_v27, %v155_v23 }
 0xf4d   :  { %v2158_v37 = vpop.permute.xlu1 %2157 }
 0xf54   :  { %v6799_v24 = vpop.eup %6798 }
 0xf55   :  { %v2073_v25 = vsel %vm1722_vm3, %v6799_v24, 0.0 }
 0xf56   :  { %2074 = vadd.xlane.f32.xlu0 %v2073_v25 }
 0xf6c   :  { %6650 = vrot.lane.b32.xlu0 %v7525_v10, %s8142_s1  ;;  %s8169_s1 = smov 88  }
 0xfe3   :  { %v2075_v33 = vpop.xlane.xlu0 %2074 }
 0xfe4   :  { %6800 = vrcp.f32 %v2075_v33 }
 0xfe7   :  { %v6651_v29 = vpop.permute.xlu0 %6650 }
 0xfe8   :  { %v6653_v31 = vunpack.i.h.bf16 %v6651_v29  ;;  %v6652_v42 = vunpack.i.l.bf16 %v6651_v29 }
 0xfea   :  { %v6362_v54 = vpack.c.bf16 %v6653_v31, %v6652_v42  ;;  %v7596_v42 = vsel %vm157_vm14, 1.0, %v7017_v58  ;;  %vm2638_vm14 = vcmask 523264  }
 0xfec   :  { %6363 = vmatpush3.bf16.msra.mxu0 %v6362_v54  ;;  %v172_v54 = vsel %vm171_vm15, %v7596_v42, 0.0 }
 0xfed   :  { %6364 = vmatprep.subr.bf16.mxu0 %v7015_v5 }
 0xfee   :  { %v6801_v60 = vpop.eup %6800 }
 0xfef   :  { %v2077_v35 = vmul.f32 %v6801_v60, %v6799_v24  ;;  %v7583_v24 = vsel %vm156_vm4, 1.0, %v7017_v58  ;;  %vm2462_vm4 = vcmask 1041408  }
 0xff0   :  { %v168_v26 = vsel %vm167_vm7, %v7583_v24, 0.0 }
 0xff1   :  { %5971 = vmatmul.mubr.msk.f32.vlgmr.msra.gmra.mrb[20].mxu0 %vm1157_vm10, %v2077_v35 }
 0xff2   :  { %5977 = vmatprep.mubr.msk.f32.mxu0 %vm7016_vm13, %v7017_v58 }
 0xff5   :  { %6367 = vmatpush3.bf16.xpose.msk.msra.mxu0 %vm7251_vm2, %v6365_v36 }
 0xffc   :  { %5978 = vmatmul.mubr.msk.f32.vlgmr.msra.gmra.mrb[22].mxu0 %vm315_vm1, %v2158_v37 }
 0xffd   :  { %6000 = vmatprep.mubr.msk.f32.mxu0 %vm167_vm7, %v7583_v24 }
0x10c4   :  { %v2153_v39 = vpop.f32.mrb[20].mxu0 }
0x10c5   :  { %v5972_v62 = vpop.f32.mrb[21].mxu0 }
0x10cf   :  { %v2235_v41 = vpop.f32.mrb[22].mxu0 }
0x10d0   :  { %v2239_v61 = vmul.f32 0.35355338, %v2235_v41  ;;  %v5979_v44 = vpop.f32.mrb[23].mxu0  ;;  %v5468_v41 = vld [vmem:[%s8113_s17] ss:$0 sm:$0xff] }
0x10d1   :  { %v202_v44 = vld [vmem:[#allocation8 + $0x8] sm:$0xff] }
0x10d2   :  { %v2240_v47 = vadd.f32 %v2239_v61, %v7512_v18  ;;  %v201_v61 = vld [vmem:[#allocation8] sm:$0xff] }
0x10d4   :  { %v2241_v48 = vsel %vm1722_vm3, %v2240_v47, -inf }
0x10d5   :  { %2242 = vmax.xlane.f32.xlu0 %v2241_v48 }
0x10eb   :  { %6660 = vrot.lane.b32.xlu0 %v7525_v10, %s8140_s28  ;;  %s8170_s28 = smov 80  }
0x10ef   :  { %2336 = vrot.lane.b32.xlu0 %v2153_v39, %s8138_s10  ;;  %v5467_v39 = vld [vmem:[%s8112_s16] ss:$0 sm:$0xff]  ;;  %s8171_s10 = smov 56  }
0x1162   :  { %v2243_v49 = vpop.xlane.xlu0 %2242 }
0x1163   :  { %v2244_v50 = vsub.f32 %v2240_v47, %v2243_v49  ;;  %v6377_v49 = vpack.c.bf16 %v202_v44, %v201_v61 }
0x1165   :  { %v2245_v51 = vmul.f32 1.442695, %v2244_v50  ;;  %v203_v50 = vld [vmem:[#allocation8 + $0x10] sm:$0xff] }
0x1166   :  { %v6661_v52 = vpop.permute.xlu0 %6660 }
0x1167   :  { %6802 = vpow2.f32 %v2245_v51  ;;  %v6663_v53 = vunpack.i.h.bf16 %v6661_v52  ;;  %v6662_v55 = vunpack.i.l.bf16 %v6661_v52  ;;  %v204_v51 = vld [vmem:[#allocation8 + $0x18] sm:$0xff] }
0x1168   :  { %v6381_v52 = vpack.c.bf16 %v204_v51, %v203_v50  ;;  %v5482_v50 = vld [vmem:[%s8157_s30 + $0x30] sm:$0xff]  ;;  %v5483_v51 = vld [vmem:[%s8157_s30 + $0x38] sm:$0xff] }
0x1169   :  { %v6369_v56 = vpack.c.bf16 %v6663_v53, %v6662_v55  ;;  %v206_v53 = vld [vmem:[%s8108_s12] sm:$0xff]  ;;  %v207_v55 = vld [vmem:[%s8108_s12 + $0x8] sm:$0xff] }
0x116a   :  { %v2337_v16 = vpop.permute.xlu0 %2336 }
0x116b   :  { %6370 = vmatpush3.bf16.msra.mxu1 %v6369_v56  ;;  %v208_v56 = vld [vmem:[%s8108_s12 + $0x10] sm:$0xff] }
0x116c   :  { %6371 = vmatprep.subr.bf16.mxu1 %v7015_v5 }
0x1171   :  { %v6803_v57 = vpop.eup %6802 }
0x1172   :  { %v2247_v7 = vsel %vm1722_vm3, %v6803_v57, 0.0 }
0x1173   :  { %2248 = vadd.xlane.f32.xlu1 %v2247_v7  ;;  %v209_v7 = vld [vmem:[%s8108_s12 + $0x18] sm:$0xff] }
0x1184   :  { %2332 = vrot.lane.b32.xlu1 %v1979_v11, %s8166_s25 }
0x1200   :  { %v2249_v10 = vpop.xlane.xlu1 %2248 }
0x1201   :  { %6804 = vrcp.f32 %v2249_v10  ;;  %v6389_v10 = vpack.c.bf16 %v209_v7, %v208_v56 }
0x1204   :  { %v2333_v2 = vpop.permute.xlu1 %2332 }
0x1205   :  { %v2343_v15 = vsel %vm315_vm1, %v7544_v8, %v2333_v2  ;;  %v5465_v8 = vld [vmem:[%s8105_s9] ss:$0 sm:$0xff] }
0x1206   :  { %v2344_v19 = vsel %vm1157_vm10, %v2343_v15, %v2337_v16 }
0x120b   :  { %v6805_v59 = vpop.eup %6804 }
0x120c   :  { %v2251_v13 = vmul.f32 %v6805_v59, %v6803_v57  ;;  %v6385_v57 = vpack.c.bf16 %v207_v55, %v206_v53  ;;  %v210_v59 = vld [vmem:[%s8108_s12 + $0x20] sm:$0xff] }
0x120e   :  { %5985 = vmatmul.mubr.msk.f32.vlgmr.msra.gmra.mrb[18].mxu1 %vm1157_vm10, %v2251_v13  ;;  %v211_v13 = vld [vmem:[%s8108_s12 + $0x28] sm:$0xff] }
0x120f   :  { %5995 = vmatprep.mubr.msk.f32.mxu1 %vm7016_vm13, %v7017_v58  ;;  %6373 = vmatpush3.bf16.msra.mxu1 %v6372_v3  ;;  %v6393_v63 = vpack.c.bf16 %v211_v13, %v210_v59  ;;  %v5478_v13 = vld [vmem:[%s8114_s18] ss:$0 sm:$0xff] }
0x1210   :  { %6374 = vmatprep.subr.bf16.mxu1 %v7015_v5 }
0x1213   :  { %6376 = vmatpush3.bf16.msra.mxu1 %v6375_v9 }
0x1214   :  { %6386 = vmatprep.subr.bf16.mxu1 %v6385_v57 }
0x12e1   :  { %v2327_v11 = vpop.f32.mrb[18].mxu1 }
0x12e2   :  { %2340 = vrot.lane.b32.xlu1 %v2327_v11, %s8167_s26  ;;  %v5986_v14 = vpop.f32.mrb[19].mxu1 }
0x1354   :  { %v2341_v20 = vpop.permute.xlu1 %2340 }
0x1355   :  { %v2345_v21 = vsel %vm1160_vm11, %v2344_v19, %v2341_v20  ;;  %v212_v19 = vld [vmem:[%s8108_s12 + $0x30] sm:$0xff]  ;;  %v213_v20 = vld [vmem:[%s8108_s12 + $0x38] sm:$0xff] }
0x1356   :  { %5996 = vmatmul.mubr.msk.f32.vlgmr.msra.gmra.mrb[20].mxu1 %vm227_vm0, %v2345_v21 }
0x1357   :  { %6388 = vmatpush3.bf16.msra.mxu1 %v6385_v57 }
0x1358   :  { %6390 = vmatprep.subr.bf16.mxu1 %v6389_v10 }
0x135b   :  { %6392 = vmatpush3.bf16.msra.mxu1 %v6389_v10 }
0x135c   :  { %6394 = vmatprep.subr.bf16.mxu1 %v6393_v63 }
0x135f   :  { %6396 = vmatpush3.bf16.msra.mxu1 %v6393_v63 }
0x1429   :  { %v2421_v25 = vpop.f32.mrb[20].mxu1 }
0x142a   :  { %v2422_v33 = vadd.f32 %v5465_v8, %v2421_v25  ;;  %v5997_v29 = vpop.f32.mrb[21].mxu1 }
0x142b   :  { %v5475_v29 = vld [vmem:[%s8109_s13] ss:$0 sm:$0xff] }
0x142c   :  { %v2425_v28 = vadd.f32 %v2422_v33, %v7473_v45 }
0x142e   :  { %v2427_v31 = vsel %vm2426_vm8, %v2425_v28, 0.0 }
0x142f   :  { %2428 = vadd.xlane.f32.xlu0 %v2427_v31 }
0x1433   :  { %169 = vadd.xlane.f32.xlu0 %v168_v26 }
0x1437   :  { %173 = vadd.xlane.f32.xlu0 %v172_v54 }
0x14bc   :  { %v2429_v30 = vpop.xlane.xlu0 %2428 }
0x14bd   :  { %v2430_v60 = vmul.f32 0.03125, %v2429_v30 }
0x14bf   :  { %v2431_v32 = vsub.f32 %v2425_v28, %v2430_v60 }
0x14c0   :  { %v7628_v0 = vpop.xlane.xlu0 %169 }
0x14c1   :  { %v2432_v45 = vmul.f32 %v2431_v32, %v2431_v32  ;;  %v175_v3 = vsub.f32 1.0, %v7628_v0  ;;  %v5579_v0 = vld [vmem:[%s8107_s11 + $0x1] ss:$0 sm:$0xff] }
0x14c3   :  { %v2433_v34 = vsel %vm2426_vm8, %v2432_v45, 0.0  ;;  %v2454_v11 = vmul.f32 %v7444_v12, %v175_v3  ;;  %v6397_v12 = vpack.c.bf16 %v213_v20, %v212_v19  ;;  %v5512_v20 = vld [vmem:[%s8158_s5 + $0x1] ss:$0 sm:$0xff]  ;;  %s8168_s5 = smov 120  }
0x14c4   :  { %2434 = vadd.xlane.f32.xlu1 %v2433_v34  ;;  %v7630_v1 = vpop.xlane.xlu0 %173 }
0x14c5   :  { %v176_v4 = vsub.f32 1.0, %v7630_v1  ;;  %6398 = vmatprep.subr.bf16.mxu1 %v6397_v12  ;;  %v5504_v1 = vld [vmem:[%s8108_s12 + $0x78] sm:$0xff] }
0x14c6   :  { %6400 = vmatpush3.bf16.msra.mxu1 %v6397_v12 }
0x14c7   :  { %v2455_v14 = vmul.f32 %v7446_v38, %v176_v4  ;;  %v5472_v38 = vld [vmem:[%s8107_s11] ss:$0 sm:$0xff] }
0x1551   :  { %v2435_v27 = vpop.xlane.xlu1 %2434 }
0x1552   :  { %v2436_v35 = vmul.f32 0.03125, %v2435_v27 }
0x1554   :  { %v2437_v36 = vadd.f32 1e-05, %v2436_v35 }
0x1556   :  { %6806 = vrsqrt.f32 %v2437_v36 }
0x1560   :  { %v6807_v37 = vpop.eup %6806 }
0x1561   :  { %v2439_v62 = vmul.f32 %v6807_v37, %v2431_v32 }
0x1563   :  { %v2446_v47 = vmul.f32 %v5467_v39, %v2439_v62 }
0x1565   :  { %v2453_v48 = vadd.f32 %v5468_v41, %v2446_v47  ;;  %v5480_v47 = vld [vmem:[%s8157_s30 + $0x20] sm:$0xff] }
0x1567   :  { %5998 = vmatprep.subr.msk.mxu0 %vm2462_vm4, %v2453_v48 }
0x1568   :  { %5999 = vmatpush3.msk.msra.mxu0 %vm2462_vm4, %v2453_v48  ;;  %v5481_v48 = vld [vmem:[%s8157_s30 + $0x28] sm:$0xff]  ;;  %s8176_s30 = smov 40  }
0x1569   :  { %6001 = vmatmul.mubr.msk.f32.vlgmr.msra.gmra.mrb[24].mxu0 %vm167_vm7, %v7596_v42  ;;  %6378 = vmatprep.subr.bf16.mxu0 %v6377_v49 }
0x156a   :  { %6380 = vmatpush3.bf16.msra.mxu0 %v6377_v49  ;;  %v6401_v49 = vpack.c.bf16 %v5481_v48, %v5480_v47 }
0x156b   :  { %6382 = vmatprep.subr.bf16.mxu0 %v6381_v52 }
0x156e   :  { %6384 = vmatpush3.bf16.msra.mxu0 %v6381_v52  ;;  %v6405_v52 = vpack.c.bf16 %v5483_v51, %v5482_v50 }
0x156f   :  { %6402 = vmatprep.subr.bf16.mxu0 %v6401_v49 }
0x163c   :  { %v6002_v9 = vpop.f32.mrb[24].mxu0 }
0x163d   :  { %v2532_v2 = vpop.f32.mrb[25].mxu0  ;;  %v2542_v16 = vadd.f32 %v6002_v9, %v2455_v14  ;;  %v5479_v14 = vld [vmem:[%s8115_s19] ss:$0 sm:$0xff] }
0x163e   :  { %v2541_v15 = vadd.f32 %v2532_v2, %v2454_v11 }
0x1640   :  { %6011 = vmatprep.mubr.msk.f32.mxu0 %vm227_vm0, %v2541_v15 }
0x1641   :  { %6012 = vmatmul.mubr.msk.f32.vlgmr.msra.gmra.mrb[26].mxu0 %vm227_vm0, %v2542_v16 }
0x1642   :  { %6404 = vmatpush3.bf16.msra.mxu0 %v6401_v49 }
0x1643   :  { %6406 = vmatprep.subr.bf16.mxu0 %v6405_v52 }
0x1646   :  { %6408 = vmatpush3.bf16.msra.mxu0 %v6405_v52 }
0x1714   :  { %v6013_v21 = vpop.f32.mrb[26].mxu0 }
0x1715   :  { %v2627_v22 = vadd.f32 %v6013_v21, %v5472_v38  ;;  %v2621_v23 = vpop.f32.mrb[27].mxu0 }
0x1716   :  { %v2622_v8 = vadd.f32 %v5472_v38, %v2621_v23 }
0x1717   :  { %v2631_v33 = vmax.f32 %v2627_v22, 0.0 }
0x1718   :  { %v2630_v25 = vmax.f32 %v2622_v8, 0.0 }
0x171a   :  { %6030 = vmatprep.mubr.msk.f32.mxu1 %vm2638_vm14, %v2630_v25 }
0x171b   :  { %6031 = vmatmul.mubr.msk.f32.vlgmr.msra.gmra.mrb[22].mxu1 %vm2638_vm14, %v2631_v33 }
0x17ee   :  { %v6032_v28 = vpop.f32.mrb[22].mxu1 }
0x17ef   :  { %v2717_v31 = vadd.f32 %v6032_v28, %v5475_v29  ;;  %v2711_v26 = vpop.f32.mrb[23].mxu1 }
0x17f0   :  { %v2712_v54 = vadd.f32 %v5475_v29, %v2711_v26 }
0x17f1   :  { %v2721_v30 = vadd.f32 %v2717_v31, %v2542_v16 }
0x17f2   :  { %v2720_v60 = vadd.f32 %v2712_v54, %v2541_v15 }
0x17f3   :  { %v2725_v32 = vsel %vm1255_vm12, %v2721_v30, 0.0 }
0x17f4   :  { %2726 = vadd.xlane.f32.xlu0 %v2725_v32  ;;  %v2722_v45 = vsel %vm227_vm0, %v2720_v60, 0.0 }
0x17f5   :  { %2723 = vadd.xlane.f32.xlu1 %v2722_v45 }
0x1881   :  { %v2727_v34 = vpop.xlane.xlu0 %2726 }
0x1882   :  { %v2729_v27 = vmul.f32 0.03125, %v2727_v34  ;;  %v2724_v35 = vpop.xlane.xlu1 %2723 }
0x1883   :  { %v2728_v36 = vmul.f32 0.03125, %v2724_v35 }
0x1884   :  { %v2731_v37 = vsub.f32 %v2721_v30, %v2729_v27 }
0x1885   :  { %v2730_v39 = vsub.f32 %v2720_v60, %v2728_v36 }
0x1886   :  { %v2733_v62 = vmul.f32 %v2731_v37, %v2731_v37 }
0x1887   :  { %v2732_v41 = vmul.f32 %v2730_v39, %v2730_v39 }
0x1888   :  { %v2737_v61 = vsel %vm1255_vm12, %v2733_v62, 0.0 }
0x1889   :  { %2738 = vadd.xlane.f32.xlu0 %v2737_v61  ;;  %v2734_v44 = vsel %vm227_vm0, %v2732_v41, 0.0 }
0x188a   :  { %2735 = vadd.xlane.f32.xlu1 %v2734_v44 }
0x1916   :  { %v2739_v53 = vpop.xlane.xlu0 %2738 }
0x1917   :  { %v2741_v55 = vmul.f32 0.03125, %v2739_v53  ;;  %v2736_v56 = vpop.xlane.xlu1 %2735 }
0x1918   :  { %v2740_v57 = vmul.f32 0.03125, %v2736_v56 }
0x1919   :  { %v2743_v7 = vadd.f32 1e-05, %v2741_v55 }
0x191a   :  { %v2742_v10 = vadd.f32 1e-05, %v2740_v57 }
0x191b   :  { %6808 = vrsqrt.f32 %v2743_v7 }
0x191c   :  { %6810 = vrsqrt.f32 %v2742_v10 }
0x1925   :  { %v6809_v59 = vpop.eup %6808 }
0x1926   :  { %v6811_v63 = vpop.eup %6810  ;;  %v2747_v9 = vmul.f32 %v6809_v59, %v2731_v37 }
0x1927   :  { %v2746_v11 = vmul.f32 %v6811_v63, %v2730_v39 }
0x1928   :  { %v2755_v2 = vmul.f32 %v5478_v13, %v2747_v9 }
0x1929   :  { %v2754_v15 = vmul.f32 %v5478_v13, %v2746_v11 }
0x192a   :  { %v7680_v19 = vadd.f32 %v5479_v14, %v2755_v2 }
0x192b   :  { %v7678_v16 = vadd.f32 %v5479_v14, %v2754_v15 }
0x192d   :  { %6041 = vmatprep.mubr.msk.f32.mxu0 %vm227_vm0, %v7678_v16 }
0x192e   :  { %6042 = vmatmul.mubr.msk.f32.vlgmr.msra.gmra.mrb[28].mxu0 %vm227_vm0, %v7680_v19 }
0x1a01   :  { %v6043_v12 = vpop.f32.mrb[28].mxu0 }
0x1a02   :  { %v7689_v38 = vadd.f32 %v6043_v12, %v5512_v20  ;;  %v2900_v21 = vpop.f32.mrb[29].mxu0 }
0x1a03   :  { %v7691_v22 = vadd.f32 %v5512_v20, %v2900_v21 }
0x1a05   :  { %6048 = vmatprep.mubr.msk.f32.mxu0 %vm315_vm1, %v7691_v22  ;;  %v7697_v23 = vpack.i.bf16 %v7689_v38, %v7691_v22 }
0x1a07   :  { %6665 = vrot.lane.b32.xlu1 %v7697_v23, %s7001_s24 }
0x1a0b   :  { %6670 = vrot.lane.b32.xlu1 %v7697_v23, %s7004_s8 }
0x1a0f   :  { %3112 = vrot.lane.b32.xlu1 %v7691_v22, %s8168_s5 }
0x1a13   :  { %3114 = vrot.lane.b32.xlu1 %v7689_v38, %s8168_s5 }
0x1a79   :  { %v6666_v8 = vpop.permute.xlu1 %6665 }
0x1a7a   :  { %v6668_v25 = vunpack.i.h.bf16 %v6666_v8  ;;  %v6667_v33 = vunpack.i.l.bf16 %v6666_v8 }
0x1a7c   :  { %v6409_v29 = vpack.c.bf16 %v6668_v25, %v6667_v33 }
0x1a7d   :  { %v6671_v28 = vpop.permute.xlu1 %6670 }
0x1a7e   :  { %v6673_v31 = vunpack.i.h.bf16 %v6671_v28  ;;  %v6672_v26 = vunpack.i.l.bf16 %v6671_v28  ;;  %6411 = vmatprep.subr.msk.bf16.mxu0 %vm7251_vm2, %v6409_v29 }
0x1a7f   :  { %6414 = vmatpush3.bf16.xpose.msk.msra.mxu0 %vm7251_vm2, %v6409_v29 }
0x1a80   :  { %v6415_v54 = vpack.c.bf16 %v6673_v31, %v6672_v26 }
0x1a81   :  { %v3113_v63 = vpop.permute.xlu1 %3112 }
0x1a82   :  { %6417 = vmatprep.subr.msk.bf16.mxu1 %vm7298_vm9, %v6415_v54 }
0x1a83   :  { %6420 = vmatpush3.bf16.msk.msra.mxu1 %vm7298_vm9, %v6415_v54 }
0x1a85   :  { %v3115_v9 = vpop.permute.xlu1 %3114 }
0x1a86   :  { %6049 = vmatmul.mubr.msk.f32.vlgmr.msra.gmra.mrb[30].mxu0 %vm315_vm1, %v7689_v38 }
0x1b59   :  { %v6050_v30 = vpop.f32.mrb[30].mxu0 }
0x1b5a   :  { %v2989_v60 = vpop.f32.mrb[31].mxu0  ;;  %v2999_v32 = vmul.f32 0.35355338, %v6050_v30 }
0x1b5b   :  { %v2998_v45 = vmul.f32 0.35355338, %v2989_v60 }
0x1b5c   :  { %v3001_v35 = vadd.f32 %v2999_v32, %v7283_v43 }
0x1b5d   :  { %v3000_v34 = vadd.f32 %v2998_v45, %v7286_v46 }
0x1b5e   :  { %v3005_v36 = vsel %vm407_vm5, %v3001_v35, -inf }
0x1b5f   :  { %v3002_v27 = vsel %vm403_vm6, %v3000_v34, -inf }
0x1b60   :  { %3003 = vmax.xlane.f32.xlu0 %v3002_v27 }
0x1b64   :  { %3006 = vmax.xlane.f32.xlu0 %v3005_v36 }
0x1bed   :  { %v3004_v37 = vpop.xlane.xlu0 %3003 }
0x1bee   :  { %v3008_v39 = vsub.f32 %v3000_v34, %v3004_v37 }
0x1bf0   :  { %v3010_v61 = vmul.f32 1.442695, %v3008_v39 }
0x1bf1   :  { %v3007_v62 = vpop.xlane.xlu0 %3006 }
0x1bf2   :  { %v3009_v41 = vsub.f32 %v3001_v35, %v3007_v62 }
0x1bf4   :  { %v3012_v44 = vmul.f32 1.442695, %v3009_v41 }
0x1bf6   :  { %6812 = vpow2.f32 %v3012_v44 }
0x1bf7   :  { %6814 = vpow2.f32 %v3010_v61 }
0x1c00   :  { %v6813_v47 = vpop.eup %6812 }
0x1c01   :  { %v3017_v48 = vsel %vm407_vm5, %v6813_v47, 0.0  ;;  %v6815_v49 = vpop.eup %6814 }
0x1c02   :  { %3018 = vadd.xlane.f32.xlu0 %v3017_v48  ;;  %v3014_v50 = vsel %vm403_vm6, %v6815_v49, 0.0 }
0x1c06   :  { %3015 = vadd.xlane.f32.xlu0 %v3014_v50 }
0x1c1c   :  { %6675 = vrot.lane.b32.xlu0 %v7697_v23, %s8169_s1 }
0x1c8f   :  { %v3019_v51 = vpop.xlane.xlu0 %3018 }
0x1c90   :  { %6816 = vrcp.f32 %v3019_v51 }
0x1c93   :  { %v3016_v52 = vpop.xlane.xlu0 %3015 }
0x1c94   :  { %6818 = vrcp.f32 %v3016_v52 }
0x1c97   :  { %v6676_v53 = vpop.permute.xlu0 %6675 }
0x1c98   :  { %v6678_v55 = vunpack.i.h.bf16 %v6676_v53  ;;  %v6677_v56 = vunpack.i.l.bf16 %v6676_v53 }
0x1c9a   :  { %v6421_v57 = vpack.c.bf16 %v6678_v55, %v6677_v56  ;;  %v6817_v7 = vpop.eup %6816 }
0x1c9b   :  { %v3023_v13 = vmul.f32 %v6817_v7, %v6813_v47 }
0x1c9c   :  { %6423 = vmatprep.subr.msk.bf16.mxu1 %vm7251_vm2, %v6421_v57 }
0x1c9e   :  { %v6819_v10 = vpop.eup %6818 }
0x1c9f   :  { %v3021_v59 = vmul.f32 %v6819_v10, %v6815_v49 }
0x1ca1   :  { %6055 = vmatprep.mubr.msk.f32.mxu1 %vm403_vm6, %v3021_v59 }
0x1ca2   :  { %6056 = vmatmul.mubr.msk.f32.vlgmr.msra.gmra.mrb[24].mxu1 %vm403_vm6, %v3023_v13 }
0x1ca3   :  { %6426 = vmatpush3.bf16.xpose.msk.msra.mxu1 %vm7251_vm2, %v6421_v57  ;;  %6062 = vmatprep.mubr.msk.f32.mxu1 %vm315_vm1, %v3113_v63 }
0x1caa   :  { %6063 = vmatmul.mubr.msk.f32.vlgmr.msra.gmra.mrb[26].mxu1 %vm315_vm1, %v3115_v9 }
0x1d75   :  { %v7733_v11 = vpop.f32.mrb[24].mxu1 }
0x1d76   :  { %v7735_v14 = vpop.f32.mrb[25].mxu1 }
0x1d7d   :  { %v6064_v2 = vpop.f32.mrb[26].mxu1 }
0x1d7e   :  { %v3204_v15 = vmul.f32 0.35355338, %v6064_v2  ;;  %v3194_v20 = vpop.f32.mrb[27].mxu1 }
0x1d7f   :  { %v3203_v12 = vmul.f32 0.35355338, %v3194_v20 }
0x1d80   :  { %v3206_v21 = vadd.f32 %v3204_v15, %v7283_v43 }
0x1d81   :  { %v3205_v8 = vadd.f32 %v3203_v12, %v7286_v46 }
0x1d82   :  { %v3210_v25 = vsel %vm407_vm5, %v3206_v21, -inf }
0x1d83   :  { %3211 = vmax.xlane.f32.xlu0 %v3210_v25  ;;  %v3207_v33 = vsel %vm403_vm6, %v3205_v8, -inf }
0x1d84   :  { %3208 = vmax.xlane.f32.xlu1 %v3207_v33 }
0x1d95   :  { %6685 = vrot.lane.b32.xlu1 %v7697_v23, %s8170_s28 }
0x1d99   :  { %6680 = vrot.lane.b32.xlu0 %v7697_v23, %s8171_s10 }
0x1d9d   :  { %3319 = vrot.lane.b32.xlu0 %v7689_v38, %s8172_s29 }
0x1e10   :  { %v3212_v29 = vpop.xlane.xlu0 %3211 }
0x1e11   :  { %v3214_v28 = vsub.f32 %v3206_v21, %v3212_v29  ;;  %v3209_v31 = vpop.xlane.xlu1 %3208 }
0x1e12   :  { %v3213_v26 = vsub.f32 %v3205_v8, %v3209_v31 }
0x1e13   :  { %v3217_v54 = vmul.f32 1.442695, %v3214_v28 }
0x1e14   :  { %v3215_v30 = vmul.f32 1.442695, %v3213_v26  ;;  %v6681_v60 = vpop.permute.xlu0 %6680 }
0x1e15   :  { %6820 = vpow2.f32 %v3217_v54  ;;  %v6683_v32 = vunpack.i.h.bf16 %v6681_v60  ;;  %v6682_v45 = vunpack.i.l.bf16 %v6681_v60  ;;  %v6686_v34 = vpop.permute.xlu1 %6685 }
0x1e16   :  { %v6688_v27 = vunpack.i.h.bf16 %v6686_v34  ;;  %v6687_v35 = vunpack.i.l.bf16 %v6686_v34  ;;  %6822 = vpow2.f32 %v3215_v30 }
0x1e17   :  { %v6427_v36 = vpack.c.bf16 %v6683_v32, %v6682_v45 }
0x1e18   :  { %v6433_v37 = vpack.c.bf16 %v6688_v27, %v6687_v35  ;;  %v3320_v53 = vpop.permute.xlu0 %3319 }
0x1e19   :  { %6429 = vmatprep.subr.msk.bf16.mxu0 %vm7298_vm9, %v6427_v36 }
0x1e1a   :  { %6432 = vmatpush3.bf16.msk.msra.mxu0 %vm7298_vm9, %v6427_v36 }
0x1e1b   :  { %6435 = vmatprep.subr.msk.bf16.mxu0 %vm7251_vm2, %v6433_v37 }
0x1e1f   :  { %v6821_v39 = vpop.eup %6820 }
0x1e20   :  { %v3222_v62 = vsel %vm407_vm5, %v6821_v39, 0.0  ;;  %v6823_v41 = vpop.eup %6822 }
0x1e21   :  { %3223 = vadd.xlane.f32.xlu1 %v3222_v62  ;;  %v3219_v61 = vsel %vm403_vm6, %v6823_v41, 0.0 }
0x1e25   :  { %3220 = vadd.xlane.f32.xlu1 %v3219_v61 }
0x1e36   :  { %3317 = vrot.lane.b32.xlu1 %v7691_v22, %s8172_s29 }
0x1eae   :  { %v3224_v44 = vpop.xlane.xlu1 %3223 }
0x1eaf   :  { %6824 = vrcp.f32 %v3224_v44 }
0x1eb2   :  { %v3221_v47 = vpop.xlane.xlu1 %3220 }
0x1eb3   :  { %6826 = vrcp.f32 %v3221_v47 }
0x1eb6   :  { %v3318_v52 = vpop.permute.xlu1 %3317 }
0x1eb9   :  { %v6825_v48 = vpop.eup %6824 }
0x1eba   :  { %v3228_v51 = vmul.f32 %v6825_v48, %v6821_v39 }
0x1ebd   :  { %v6827_v49 = vpop.eup %6826 }
0x1ebe   :  { %v3226_v50 = vmul.f32 %v6827_v49, %v6823_v41 }
0x1ec0   :  { %6069 = vmatprep.mubr.msk.f32.mxu0 %vm403_vm6, %v3226_v50 }
0x1ec1   :  { %6070 = vmatmul.mubr.msk.f32.vlgmr.msra.gmra.mrb[32].mxu0 %vm403_vm6, %v3228_v51 }
0x1ec2   :  { %6438 = vmatpush3.bf16.xpose.msk.msra.mxu0 %vm7251_vm2, %v6433_v37  ;;  %6076 = vmatprep.mubr.msk.f32.mxu0 %vm315_vm1, %v3318_v52 }
0x1ec9   :  { %6077 = vmatmul.mubr.msk.f32.vlgmr.msra.gmra.mrb[34].mxu0 %vm315_vm1, %v3320_v53 }
0x1f94   :  { %v7763_v55 = vpop.f32.mrb[32].mxu0 }
0x1f95   :  { %v7765_v56 = vpop.f32.mrb[33].mxu0 }
0x1f9c   :  { %v6078_v57 = vpop.f32.mrb[34].mxu0 }
0x1f9d   :  { %v3409_v7 = vmul.f32 0.35355338, %v6078_v57  ;;  %v3399_v10 = vpop.f32.mrb[35].mxu0 }
0x1f9e   :  { %v3408_v59 = vmul.f32 0.35355338, %v3399_v10 }
0x1f9f   :  { %v3411_v13 = vadd.f32 %v3409_v7, %v7283_v43 }
0x1fa0   :  { %v3410_v63 = vadd.f32 %v3408_v59, %v7286_v46 }
0x1fa1   :  { %v3415_v9 = vsel %vm407_vm5, %v3411_v13, -inf }
0x1fa2   :  { %3416 = vmax.xlane.f32.xlu0 %v3415_v9  ;;  %v3412_v2 = vsel %vm403_vm6, %v3410_v63, -inf }
0x1fa3   :  { %3413 = vmax.xlane.f32.xlu1 %v3412_v2 }
0x202f   :  { %v3417_v15 = vpop.xlane.xlu0 %3416 }
0x2030   :  { %v3419_v20 = vsub.f32 %v3411_v13, %v3417_v15  ;;  %v3414_v12 = vpop.xlane.xlu1 %3413 }
0x2031   :  { %v3418_v21 = vsub.f32 %v3410_v63, %v3414_v12 }
0x2032   :  { %v3422_v8 = vmul.f32 1.442695, %v3419_v20 }
0x2033   :  { %v3420_v25 = vmul.f32 1.442695, %v3418_v21 }
0x2034   :  { %6828 = vpow2.f32 %v3422_v8 }
0x2035   :  { %6830 = vpow2.f32 %v3420_v25 }
0x203e   :  { %v6829_v33 = vpop.eup %6828 }
0x203f   :  { %v6831_v29 = vpop.eup %6830  ;;  %v3427_v28 = vsel %vm407_vm5, %v6829_v33, 0.0 }
0x2040   :  { %3428 = vadd.xlane.f32.xlu1 %v3427_v28  ;;  %v3424_v31 = vsel %vm403_vm6, %v6831_v29, 0.0  ;;  %v5485_v28 = vld [vmem:[%s8163_s21 + $0x20] sm:$0xff] }
0x2041   :  { %3425 = vadd.xlane.f32.xlu0 %v3424_v31  ;;  %v5486_v31 = vld [vmem:[%s8163_s21 + $0x28] sm:$0xff] }
0x2051   :  { %6695 = vrot.lane.b32.xlu1 %v7697_v23, %s8173_s2 }
0x2055   :  { %3522 = vrot.lane.b32.xlu1 %v7691_v22, %s8174_s3 }
0x2057   :  { %6690 = vrot.lane.b32.xlu0 %v7697_v23, %s8175_s0 }
0x205b   :  { %3524 = vrot.lane.b32.xlu0 %v7689_v38, %s8174_s3 }
0x20cd   :  { %v3429_v26 = vpop.xlane.xlu1 %3428 }
0x20ce   :  { %6832 = vrcp.f32 %v3429_v26  ;;  %v3426_v54 = vpop.xlane.xlu0 %3425  ;;  %v5487_v26 = vld [vmem:[%s8163_s21 + $0x30] sm:$0xff] }
0x20cf   :  { %6834 = vrcp.f32 %v3426_v54  ;;  %v6457_v54 = vpack.c.bf16 %v5486_v31, %v5485_v28 }
0x20d1   :  { %v6696_v30 = vpop.permute.xlu1 %6695 }
0x20d2   :  { %v6691_v60 = vpop.permute.xlu0 %6690  ;;  %v6698_v32 = vunpack.i.h.bf16 %v6696_v30  ;;  %v6697_v45 = vunpack.i.l.bf16 %v6696_v30  ;;  %v5488_v30 = vld [vmem:[%s8163_s21 + $0x38] sm:$0xff] }
0x20d3   :  { %v6693_v34 = vunpack.i.h.bf16 %v6691_v60  ;;  %v6692_v27 = vunpack.i.l.bf16 %v6691_v60  ;;  %v6461_v60 = vpack.c.bf16 %v5488_v30, %v5487_v26  ;;  %v5546_v26 = vld [vmem:[%s8110_s14 + $0x1] ss:$0 sm:$0xff] }
0x20d4   :  { %v6445_v36 = vpack.c.bf16 %v6698_v32, %v6697_v45 }
0x20d5   :  { %v6439_v35 = vpack.c.bf16 %v6693_v34, %v6692_v27  ;;  %v3523_v62 = vpop.permute.xlu1 %3522 }
0x20d6   :  { %v3525_v41 = vpop.permute.xlu0 %3524 }
0x20d7   :  { %6441 = vmatprep.subr.msk.bf16.mxu1 %vm7298_vm9, %v6439_v35 }
0x20d8   :  { %v6833_v22 = vpop.eup %6832  ;;  %6444 = vmatpush3.bf16.msk.msra.mxu1 %vm7298_vm9, %v6439_v35 }
0x20d9   :  { %v6835_v38 = vpop.eup %6834  ;;  %6447 = vmatprep.subr.msk.bf16.mxu1 %vm7251_vm2, %v6445_v36  ;;  %v3433_v39 = vmul.f32 %v6833_v22, %v6829_v33 }
0x20da   :  { %v3431_v37 = vmul.f32 %v6835_v38, %v6831_v29 }
0x20dc   :  { %6083 = vmatprep.mubr.msk.f32.mxu1 %vm403_vm6, %v3431_v37 }
0x20dd   :  { %6084 = vmatmul.mubr.msk.f32.vlgmr.msra.gmra.mrb[28].mxu1 %vm403_vm6, %v3433_v39 }
0x20de   :  { %6090 = vmatprep.mubr.msk.f32.mxu1 %vm315_vm1, %v3523_v62 }
0x20e1   :  { %6450 = vmatpush3.bf16.xpose.msk.msra.mxu1 %vm7251_vm2, %v6445_v36 }
0x20e2   :  { %6465 = vmatprep.subr.bf16.mxu1 %v7015_v5 }
0x20e8   :  { %6091 = vmatmul.mubr.msk.f32.vlgmr.msra.gmra.mrb[30].mxu1 %vm315_vm1, %v3525_v41 }
0x20e9   :  { %6115 = vmatprep.mubr.msk.f32.mxu1 %vm7016_vm13, %v7017_v58 }
0x21b0   :  { %v6085_v61 = vpop.f32.mrb[28].mxu1 }
0x21b1   :  { %v3513_v44 = vpop.f32.mrb[29].mxu1 }
0x21bb   :  { %v6092_v47 = vpop.f32.mrb[30].mxu1 }
0x21bc   :  { %v3614_v48 = vmul.f32 0.35355338, %v6092_v47  ;;  %v3604_v49 = vpop.f32.mrb[31].mxu1  ;;  %v7840_v47 = vld [vmem:[#allocation5] sm:$0xff] }
0x21bd   :  { %v3613_v50 = vmul.f32 0.35355338, %v3604_v49 }
0x21be   :  { %v3616_v51 = vadd.f32 %v3614_v48, %v7283_v43 }
0x21bf   :  { %v3615_v52 = vadd.f32 %v3613_v50, %v7286_v46 }
0x21c0   :  { %v3620_v53 = vsel %vm407_vm5, %v3616_v51, -inf }
0x21c1   :  { %3621 = vmax.xlane.f32.xlu0 %v3620_v53  ;;  %v3617_v57 = vsel %vm403_vm6, %v3615_v52, -inf }
0x21c2   :  { %3618 = vmax.xlane.f32.xlu1 %v3617_v57 }
0x224e   :  { %v3622_v7 = vpop.xlane.xlu0 %3621 }
0x224f   :  { %v3624_v10 = vsub.f32 %v3616_v51, %v3622_v7  ;;  %v3619_v59 = vpop.xlane.xlu1 %3618 }
0x2250   :  { %v3623_v13 = vsub.f32 %v3615_v52, %v3619_v59 }
0x2251   :  { %v3627_v63 = vmul.f32 1.442695, %v3624_v10 }
0x2252   :  { %v3625_v9 = vmul.f32 1.442695, %v3623_v13 }
0x2253   :  { %6836 = vpow2.f32 %v3627_v63 }
0x2254   :  { %6838 = vpow2.f32 %v3625_v9 }
0x225d   :  { %v6837_v2 = vpop.eup %6836 }
0x225e   :  { %v6839_v15 = vpop.eup %6838  ;;  %v3632_v43 = vsel %vm407_vm5, %v6837_v2, 0.0 }
0x225f   :  { %3633 = vadd.xlane.f32.xlu1 %v3632_v43  ;;  %v3629_v46 = vsel %vm403_vm6, %v6839_v15, 0.0 }
0x2260   :  { %3630 = vadd.xlane.f32.xlu0 %v3629_v46  ;;  %v5491_v46 = vld [vmem:[%s8165_s4 + $0x28] sm:$0xff] }
0x2270   :  { %3729 = vrot.lane.b32.xlu1 %v7765_v56, %s8166_s25 }
0x2274   :  { %3731 = vrot.lane.b32.xlu1 %v7763_v55, %s8166_s25 }
0x2276   :  { %6700 = vrot.lane.b32.xlu0 %v7697_v23, %s8176_s30 }
0x2278   :  { %3739 = vrot.lane.b32.xlu1 %v6085_v61, %s8177_s27 }
0x227a   :  { %3737 = vrot.lane.b32.xlu0 %v3513_v44, %s8177_s27 }
0x22ec   :  { %v3634_v20 = vpop.xlane.xlu1 %3633 }
0x22ed   :  { %6840 = vrcp.f32 %v3634_v20  ;;  %v3631_v12 = vpop.xlane.xlu0 %3630  ;;  %v5492_v20 = vld [vmem:[%s8165_s4 + $0x30] sm:$0xff] }
0x22ee   :  { %6842 = vrcp.f32 %v3631_v12 }
0x22f0   :  { %v3730_v34 = vpop.permute.xlu1 %3729 }
0x22f1   :  { %v6701_v21 = vpop.permute.xlu0 %6700  ;;  %v3751_v22 = vsel %vm315_vm1, %v7735_v14, %v3730_v34 }
0x22f2   :  { %v6703_v8 = vunpack.i.h.bf16 %v6701_v21  ;;  %v6702_v25 = vunpack.i.l.bf16 %v6701_v21  ;;  %v5493_v21 = vld [vmem:[%s8165_s4 + $0x38] sm:$0xff] }
0x22f4   :  { %v6451_v33 = vpack.c.bf16 %v6703_v8, %v6702_v25  ;;  %v3732_v27 = vpop.permute.xlu1 %3731  ;;  %v7867_v8 = vpack.i.bf16 %v5493_v21, %v5492_v20 }
0x22f5   :  { %v3738_v36 = vpop.permute.xlu0 %3737  ;;  %v3752_v37 = vsel %vm315_vm1, %v7733_v11, %v3732_v27  ;;  %v5543_v11 = vld [vmem:[%s8164_s23 + $0x1] ss:$0 sm:$0xff] }
0x22f6   :  { %6453 = vmatprep.subr.msk.bf16.mxu0 %vm7298_vm9, %v6451_v33  ;;  %v3753_v39 = vsel %vm1157_vm10, %v3751_v22, %v3738_v36 }
0x22f7   :  { %v6841_v56 = vpop.eup %6840  ;;  %6456 = vmatpush3.bf16.msk.msra.mxu0 %vm7298_vm9, %v6451_v33 }
0x22f8   :  { %v6843_v23 = vpop.eup %6842  ;;  %v3638_v29 = vmul.f32 %v6841_v56, %v6837_v2  ;;  %6458 = vmatprep.subr.bf16.mxu0 %v6457_v54  ;;  %v3740_v35 = vpop.permute.xlu1 %3739 }
0x22f9   :  { %v3636_v55 = vmul.f32 %v6843_v23, %v6839_v15  ;;  %v3754_v41 = vsel %vm1157_vm10, %v3752_v37, %v3740_v35 }
0x22fb   :  { %6097 = vmatprep.mubr.msk.f32.mxu0 %vm403_vm6, %v3636_v55 }
0x22fc   :  { %6098 = vmatmul.mubr.msk.f32.vlgmr.msra.gmra.mrb[36].mxu0 %vm403_vm6, %v3638_v29 }
0x22fd   :  { %6460 = vmatpush3.bf16.msra.mxu0 %v6457_v54 }
0x22fe   :  { %6462 = vmatprep.subr.bf16.mxu0 %v6461_v60 }
0x2301   :  { %6464 = vmatpush3.bf16.msra.mxu0 %v6461_v60 }
0x23cf   :  { %v6099_v32 = vpop.f32.mrb[36].mxu0 }
0x23d0   :  { %3747 = vrot.lane.b32.xlu1 %v6099_v32, %s8167_s26  ;;  %v3718_v45 = vpop.f32.mrb[37].mxu0 }
0x23d1   :  { %3745 = vrot.lane.b32.xlu0 %v3718_v45, %s8167_s26  ;;  %v5547_v45 = vld [vmem:[%s8111_s15 + $0x1] ss:$0 sm:$0xff] }
0x2442   :  { %v3748_v38 = vpop.permute.xlu1 %3747 }
0x2443   :  { %v3746_v62 = vpop.permute.xlu0 %3745  ;;  %v3756_v44 = vsel %vm1160_vm11, %v3754_v41, %v3748_v38 }
0x2444   :  { %v3755_v61 = vsel %vm1160_vm11, %v3753_v39, %v3746_v62 }
0x2445   :  { %6108 = vmatprep.mubr.msk.f32.mxu0 %vm227_vm0, %v3755_v61 }
0x2446   :  { %6109 = vmatmul.mubr.msk.f32.vlgmr.msra.gmra.mrb[38].mxu0 %vm227_vm0, %v3756_v44 }
0x2447   :  { %6137 = vmatprep.mubr.msk.f32.mxu0 %vm227_vm0, %v7840_v47 }
0x2519   :  { %v6110_v14 = vpop.f32.mrb[38].mxu0 }
0x251a   :  { %v3841_v48 = vadd.f32 %v6110_v14, %v5543_v11  ;;  %v3835_v49 = vpop.f32.mrb[39].mxu0  ;;  %v6875_v14 = vld [vmem:[#allocation5 + $0x8] sm:$0xff] }
0x251b   :  { %v3836_v50 = vadd.f32 %v5543_v11, %v3835_v49  ;;  %v6473_v11 = vpack.c.bf16 %v5493_v21, %v5492_v20 }
0x251c   :  { %v3845_v51 = vadd.f32 %v3841_v48, %v7680_v19 }
0x251d   :  { %v3844_v52 = vadd.f32 %v3836_v50, %v7678_v16  ;;  %v5490_v16 = vld [vmem:[%s8165_s4 + $0x20] sm:$0xff] }
0x251e   :  { %v3849_v53 = vsel %vm1255_vm12, %v3845_v51, 0.0  ;;  %v7862_v12 = vpack.i.bf16 %v5491_v46, %v5490_v16  ;;  %v6470_v44 = vpack.c.bf16 %v5491_v46, %v5490_v16 }
0x251f   :  { %3850 = vadd.xlane.f32.xlu1 %v3849_v53  ;;  %v3846_v57 = vsel %vm227_vm0, %v3844_v52, 0.0 }
0x2520   :  { %3847 = vadd.xlane.f32.xlu0 %v3846_v57 }
0x2530   :  { %6705 = vrot.lane.b32.xlu1 %v7862_v12, %s7001_s24 }
0x2534   :  { %4056 = vrot.lane.b32.xlu1 %v5550_v6, %s7001_s24 }
0x25ac   :  { %v3851_v7 = vpop.xlane.xlu1 %3850 }
0x25ad   :  { %v3853_v10 = vmul.f32 0.03125, %v3851_v7  ;;  %v3848_v59 = vpop.xlane.xlu0 %3847 }
0x25ae   :  { %v3852_v13 = vmul.f32 0.03125, %v3848_v59 }
0x25af   :  { %v3855_v63 = vsub.f32 %v3845_v51, %v3853_v10 }
0x25b0   :  { %v3854_v9 = vsub.f32 %v3844_v52, %v3852_v13  ;;  %v6706_v32 = vpop.permute.xlu1 %6705 }
0x25b1   :  { %v3857_v43 = vmul.f32 %v3855_v63, %v3855_v63  ;;  %v6708_v34 = vunpack.i.h.bf16 %v6706_v32  ;;  %v6707_v27 = vunpack.i.l.bf16 %v6706_v32 }
0x25b2   :  { %v3856_v2 = vmul.f32 %v3854_v9, %v3854_v9 }
0x25b3   :  { %v3861_v19 = vsel %vm1255_vm12, %v3857_v43, 0.0  ;;  %v6475_v37 = vpack.c.bf16 %v6708_v34, %v6707_v27 }
0x25b4   :  { %v3858_v15 = vsel %vm227_vm0, %v3856_v2, 0.0  ;;  %v4057_v48 = vpop.permute.xlu1 %4056 }
0x25b5   :  { %3859 = vadd.xlane.f32.xlu0 %v3858_v15  ;;  %6476 = vmatprep.subr.bf16.mxu0 %v6475_v37 }
0x25b6   :  { %6478 = vmatpush3.bf16.msra.mxu0 %v6475_v37 }
0x25b9   :  { %3862 = vadd.xlane.f32.xlu0 %v3861_v19 }
0x25cf   :  { %6710 = vrot.lane.b32.xlu0 %v7867_v8, %s7001_s24 }
0x2642   :  { %v3860_v25 = vpop.xlane.xlu0 %3859 }
0x2643   :  { %v3864_v33 = vmul.f32 0.03125, %v3860_v25 }
0x2645   :  { %v3866_v56 = vadd.f32 1e-05, %v3864_v33 }
0x2646   :  { %v3863_v23 = vpop.xlane.xlu0 %3862 }
0x2647   :  { %6844 = vrsqrt.f32 %v3866_v56  ;;  %v3865_v55 = vmul.f32 0.03125, %v3863_v23 }
0x2649   :  { %v3867_v29 = vadd.f32 1e-05, %v3865_v55 }
0x264a   :  { %v6711_v35 = vpop.permute.xlu0 %6710 }
0x264b   :  { %6846 = vrsqrt.f32 %v3867_v29  ;;  %v6713_v22 = vunpack.i.h.bf16 %v6711_v35  ;;  %v6712_v38 = vunpack.i.l.bf16 %v6711_v35 }
0x264d   :  { %v6479_v41 = vpack.c.bf16 %v6713_v22, %v6712_v38 }
0x264f   :  { %6480 = vmatprep.subr.bf16.mxu0 %v6479_v41 }
0x2650   :  { %6482 = vmatpush3.bf16.msra.mxu0 %v6479_v41 }
0x2651   :  { %v6845_v28 = vpop.eup %6844  ;;  %6491 = vmatprep.subr.bf16.mxu0 %v7015_v5 }
0x2652   :  { %v3870_v31 = vmul.f32 %v6845_v28, %v3854_v9 }
0x2653   :  { %6138 = vmatmul.mubr.msk.f32.vlgmr.msra.gmra.mrb[40].mxu0 %vm227_vm0, %v6875_v14 }
0x2654   :  { %v3878_v30 = vmul.f32 %v5546_v26, %v3870_v31  ;;  %6155 = vmatprep.mubr.msk.f32.mxu0 %vm7016_vm13, %v7017_v58 }
0x2655   :  { %v6847_v54 = vpop.eup %6846 }
0x2656   :  { %v3871_v60 = vmul.f32 %v6847_v54, %v3855_v63  ;;  %v7879_v39 = vadd.f32 %v5547_v45, %v3878_v30 }
0x2658   :  { %v3879_v36 = vmul.f32 %v5546_v26, %v3871_v60 }
0x265a   :  { %v7881_v62 = vadd.f32 %v5547_v45, %v3879_v36 }
0x265c   :  { %v6466_v61 = vpack.c.bf16 %v7881_v62, %v7879_v39 }
0x265e   :  { %6468 = vmatpush3.bf16.msk.msra.mxu1 %vm7298_vm9, %v6466_v61 }
0x265f   :  { %6469 = vmatprep.subr.bf16.mxu1 %v7015_v5 }
0x2661   :  { %6116 = vmatmul.mubr.msk.f32.vlgmr.msra.gmra.mrb[32].mxu1 %vm403_vm6, %v7454_v40 }
0x2662   :  { %6471 = vmatpush3.bf16.msra.mxu1 %v6470_v44  ;;  %6126 = vmatprep.mubr.msk.f32.mxu1 %vm7016_vm13, %v7017_v58 }
0x2663   :  { %6472 = vmatprep.subr.bf16.mxu1 %v7015_v5 }
0x2666   :  { %6474 = vmatpush3.bf16.msra.mxu1 %v6473_v11 }
0x2726   :  { %v6139_v50 = vpop.f32.mrb[40].mxu0 }
0x2727   :  { %v4131_v51 = vadd.f32 %v6139_v50, %v4057_v48  ;;  %v4125_v52 = vpop.f32.mrb[41].mxu0 }
0x2728   :  { %v4126_v53 = vadd.f32 %v4125_v52, %v4057_v48 }
0x272a   :  { %v6492_v57 = vpack.c.bf16 %v4131_v51, %v4126_v53  ;;  %v7907_v7 = vpack.i.bf16 %v4131_v51, %v4126_v53 }
0x272c   :  { %6715 = vrot.lane.b32.xlu1 %v7907_v7, %s8168_s5  ;;  %6494 = vmatpush3.bf16.xpose.msk.msra.mxu0 %vm7251_vm2, %v6492_v57 }
0x272d   :  { %6498 = vmatprep.subr.bf16.mxu0 %v7015_v5 }
0x2730   :  { %6720 = vrot.lane.b32.xlu1 %v7862_v12, %s7004_s8 }
0x2734   :  { %v7901_v40 = vpop.f32.mrb[32].mxu1 }
0x2735   :  { %v6117_v49 = vpop.f32.mrb[33].mxu1  ;;  %6127 = vmatmul.mubr.msk.f32.vlgmr.msra.gmra.mrb[34].mxu1 %vm227_vm0, %v7901_v40 }
0x2736   :  { %6148 = vmatprep.mubr.msk.f32.mxu1 %vm227_vm0, %v7840_v47 }
0x279e   :  { %v6716_v10 = vpop.permute.xlu1 %6715 }
0x279f   :  { %v6718_v59 = vunpack.i.h.bf16 %v6716_v10  ;;  %v6717_v47 = vunpack.i.l.bf16 %v6716_v10 }
0x27a1   :  { %v6499_v63 = vpack.c.bf16 %v6718_v59, %v6717_v47 }
0x27a2   :  { %v6721_v15 = vpop.permute.xlu1 %6720 }
0x27a3   :  { %v6723_v43 = vunpack.i.h.bf16 %v6721_v15  ;;  %v6722_v19 = vunpack.i.l.bf16 %v6721_v15 }
0x27a5   :  { %v6483_v16 = vpack.c.bf16 %v6723_v43, %v6722_v19 }
0x27a7   :  { %6484 = vmatprep.subr.bf16.mxu1 %v6483_v16 }
0x27a8   :  { %6486 = vmatpush3.bf16.msra.mxu1 %v6483_v16 }
0x2808   :  { %v4036_v13 = vpop.f32.mrb[34].mxu1 }
0x2809   :  { %v7916_v9 = vadd.f32 %v5550_v6, %v4036_v13  ;;  %v6128_v2 = vpop.f32.mrb[35].mxu1 }
0x280b   :  { %4389 = vrot.lane.b32.xlu0 %v7916_v9, %s8168_s5  ;;  %6156 = vmatmul.mubr.msk.f32.vlgmr.msra.gmra.mrb[42].mxu0 %vm315_vm1, %v7916_v9 }
0x280c   :  { %6501 = vmatpush3.bf16.xpose.msk.msra.mxu0 %vm7251_vm2, %v6499_v63  ;;  %6169 = vmatprep.mubr.msk.f32.mxu0 %vm7016_vm13, %v7017_v58 }
0x280d   :  { %6509 = vmatprep.subr.bf16.mxu0 %v7015_v5 }
0x280f   :  { %6725 = vrot.lane.b32.xlu0 %v7867_v8, %s7004_s8 }
0x287d   :  { %v4390_v46 = vpop.permute.xlu0 %4389 }
0x287e   :  { %6170 = vmatmul.mubr.msk.f32.vlgmr.msra.gmra.mrb[44].mxu0 %vm315_vm1, %v4390_v46 }
0x287f   :  { %6190 = vmatprep.mubr.msk.f32.mxu0 %vm7016_vm13, %v7017_v58 }
0x2881   :  { %v6726_v20 = vpop.permute.xlu0 %6725 }
0x2882   :  { %v6728_v12 = vunpack.i.h.bf16 %v6726_v20  ;;  %v6727_v21 = vunpack.i.l.bf16 %v6726_v20 }
0x2884   :  { %v6487_v25 = vpack.c.bf16 %v6728_v12, %v6727_v21 }
0x2886   :  { %6488 = vmatprep.subr.bf16.mxu1 %v6487_v25 }
0x2887   :  { %6490 = vmatpush3.bf16.msra.mxu1 %v6487_v25 }
0x2888   :  { %6495 = vmatprep.subr.bf16.mxu1 %v7015_v5 }
0x288a   :  { %6149 = vmatmul.mubr.msk.f32.vlgmr.msra.gmra.mrb[36].mxu1 %vm227_vm0, %v6875_v14 }
0x288b   :  { %6162 = vmatprep.mubr.msk.f32.mxu1 %vm7016_vm13, %v7017_v58 }
0x28de   :  { %v4299_v8 = vpop.f32.mrb[42].mxu0 }
0x28df   :  { %v4303_v33 = vmul.f32 0.35355338, %v4299_v8  ;;  %v6157_v56 = vpop.f32.mrb[43].mxu0 }
0x28e1   :  { %v4304_v23 = vadd.f32 %v4303_v33, %v7512_v18 }
0x28e3   :  { %v4305_v55 = vsel %vm1722_vm3, %v4304_v23, -inf }
0x28e4   :  { %4306 = vmax.xlane.f32.xlu1 %v4305_v55 }
0x2951   :  { %v4467_v29 = vpop.f32.mrb[44].mxu0 }
0x2952   :  { %v4471_v28 = vmul.f32 0.35355338, %v4467_v29  ;;  %v6171_v31 = vpop.f32.mrb[45].mxu0 }
0x2954   :  { %v4472_v26 = vadd.f32 %v4471_v28, %v7512_v18 }
0x2956   :  { %v4473_v54 = vsel %vm1722_vm3, %v4472_v26, -inf }
0x2957   :  { %4474 = vmax.xlane.f32.xlu0 %v4473_v54 }
0x295d   :  { %v6150_v45 = vpop.f32.mrb[36].mxu1 }
0x295e   :  { %v4215_v34 = vpop.f32.mrb[37].mxu1 }
0x296d   :  { %4146 = vrot.lane.b32.xlu0 %v5550_v6, %s7004_s8 }
0x2971   :  { %v4307_v30 = vpop.xlane.xlu1 %4306  ;;  %6735 = vrot.lane.b32.xlu0 %v7907_v7, %s8172_s29 }
0x2972   :  { %v4308_v60 = vsub.f32 %v4304_v23, %v4307_v30 }
0x2974   :  { %v4309_v32 = vmul.f32 1.442695, %v4308_v60 }
0x2975   :  { %4565 = vrot.lane.b32.xlu0 %v7916_v9, %s8172_s29 }
0x2976   :  { %6848 = vpow2.f32 %v4309_v32 }
0x2980   :  { %v6849_v27 = vpop.eup %6848 }
0x2981   :  { %v4311_v35 = vsel %vm1722_vm3, %v6849_v27, 0.0 }
0x2982   :  { %4312 = vadd.xlane.f32.xlu1 %v4311_v35 }
0x29e4   :  { %v4475_v36 = vpop.xlane.xlu0 %4474 }
0x29e5   :  { %v4476_v22 = vsub.f32 %v4472_v26, %v4475_v36 }
0x29e7   :  { %v4477_v38 = vmul.f32 1.442695, %v4476_v22 }
0x29e8   :  { %v4147_v37 = vpop.permute.xlu0 %4146 }
0x29e9   :  { %6850 = vpow2.f32 %v4477_v38  ;;  %v4221_v41 = vadd.f32 %v6150_v45, %v4147_v37  ;;  %v4216_v61 = vadd.f32 %v4215_v34, %v4147_v37 }
0x29eb   :  { %v7946_v44 = vpack.i.bf16 %v4221_v41, %v4216_v61  ;;  %v6496_v11 = vpack.c.bf16 %v4221_v41, %v4216_v61 }
0x29ec   :  { %v6736_v59 = vpop.permute.xlu0 %6735 }
0x29ed   :  { %6497 = vmatpush3.bf16.msra.mxu1 %v6496_v11  ;;  %v6738_v13 = vunpack.i.h.bf16 %v6736_v59  ;;  %v6737_v63 = vunpack.i.l.bf16 %v6736_v59  ;;  %v2788_v59 = vld [vmem:[#allocation7 + $0x30] sm:$0xff] }
0x29ee   :  { %6502 = vmatprep.subr.bf16.mxu1 %v7015_v5 }
0x29ef   :  { %v6506_v15 = vpack.c.bf16 %v6738_v13, %v6737_v63  ;;  %v2789_v13 = vld [vmem:[#allocation7 + $0x38] sm:$0xff] }
0x29f0   :  { %v4566_v43 = vpop.permute.xlu0 %4565  ;;  %v6523_v63 = vpack.c.bf16 %v2789_v13, %v2788_v59 }
0x29f3   :  { %v6851_v14 = vpop.eup %6850 }
0x29f4   :  { %v4479_v6 = vsel %vm1722_vm3, %v6851_v14, 0.0 }
0x29f5   :  { %4480 = vadd.xlane.f32.xlu1 %v4479_v6 }
0x2a06   :  { %6730 = vrot.lane.b32.xlu1 %v7946_v44, %s8168_s5  ;;  %s8178_s5 = sld [smem:[#allocation22_spill]] }
0x2a0f   :  { %v4313_v48 = vpop.xlane.xlu1 %4312 }
0x2a10   :  { %6852 = vrcp.f32 %v4313_v48 }
0x2a1a   :  { %v6853_v49 = vpop.eup %6852 }
0x2a1b   :  { %v4315_v50 = vmul.f32 %v6853_v49, %v6849_v27 }
0x2a1d   :  { %6163 = vmatmul.mubr.msk.f32.vlgmr.msra.gmra.mrb[38].mxu1 %vm1157_vm10, %v4315_v50 }
0x2a1e   :  { %6176 = vmatprep.mubr.msk.f32.mxu1 %vm7016_vm13, %v7017_v58 }
0x2a82   :  { %v4481_v51 = vpop.xlane.xlu1 %4480 }
0x2a83   :  { %6854 = vrcp.f32 %v4481_v51 }
0x2a86   :  { %v6731_v52 = vpop.permute.xlu1 %6730 }
0x2a87   :  { %v6733_v53 = vunpack.i.h.bf16 %v6731_v52  ;;  %v6732_v57 = vunpack.i.l.bf16 %v6731_v52 }
0x2a89   :  { %v6503_v10 = vpack.c.bf16 %v6733_v53, %v6732_v57  ;;  %v2786_v57 = vld [vmem:[#allocation7 + $0x20] sm:$0xff] }
0x2a8b   :  { %6504 = vmatpush3.bf16.msra.mxu1 %v6503_v10  ;;  %v2787_v10 = vld [vmem:[#allocation7 + $0x28] sm:$0xff] }
0x2a8c   :  { %6505 = vmatprep.subr.bf16.mxu1 %v7015_v5 }
0x2a8d   :  { %v6855_v47 = vpop.eup %6854 }
0x2a8e   :  { %v4483_v2 = vmul.f32 %v6855_v47, %v6851_v14  ;;  %v6520_v47 = vpack.c.bf16 %v2787_v10, %v2786_v57  ;;  %v5582_v10 = vld [vmem:[%s8109_s13 + $0x1] ss:$0 sm:$0xff] }
0x2a90   :  { %6177 = vmatmul.mubr.msk.f32.vlgmr.msra.gmra.mrb[40].mxu1 %vm1157_vm10, %v4483_v2 }
0x2a91   :  { %6183 = vmatprep.mubr.msk.f32.mxu1 %vm7016_vm13, %v7017_v58 }
0x2a94   :  { %6508 = vmatpush3.bf16.xpose.msk.msra.mxu1 %vm7251_vm2, %v6506_v15 }
0x2a95   :  { %6516 = vmatprep.subr.bf16.mxu1 %v7015_v5 }
0x2a9b   :  { %6184 = vmatmul.mubr.msk.f32.vlgmr.msra.gmra.mrb[42].mxu1 %vm315_vm1, %v4566_v43 }
0x2a9c   :  { %6204 = vmatprep.mubr.msk.f32.mxu1 %vm7016_vm13, %v7017_v58 }
0x2af0   :  { %v7965_v19 = vpop.f32.mrb[38].mxu1 }
0x2af1   :  { %v6164_v16 = vpop.f32.mrb[39].mxu1 }
0x2b63   :  { %v4561_v46 = vpop.f32.mrb[40].mxu1 }
0x2b64   :  { %v6178_v20 = vpop.f32.mrb[41].mxu1 }
0x2b6e   :  { %v4643_v12 = vpop.f32.mrb[42].mxu1 }
0x2b6f   :  { %v4647_v21 = vmul.f32 0.35355338, %v4643_v12  ;;  %v6185_v25 = vpop.f32.mrb[43].mxu1 }
0x2b71   :  { %v4648_v8 = vadd.f32 %v4647_v21, %v7512_v18 }
0x2b73   :  { %v4649_v33 = vsel %vm1722_vm3, %v4648_v8, -inf }
0x2b74   :  { %4650 = vmax.xlane.f32.xlu1 %v4649_v33 }
0x2b85   :  { %6745 = vrot.lane.b32.xlu1 %v7907_v7, %s8174_s3 }
0x2b89   :  { %4739 = vrot.lane.b32.xlu1 %v7916_v9, %s8174_s3 }
0x2c01   :  { %v4651_v56 = vpop.xlane.xlu1 %4650 }
0x2c02   :  { %v4652_v23 = vsub.f32 %v4648_v8, %v4651_v56 }
0x2c04   :  { %v4653_v55 = vmul.f32 1.442695, %v4652_v23 }
0x2c05   :  { %v6746_v60 = vpop.permute.xlu1 %6745 }
0x2c06   :  { %6856 = vpow2.f32 %v4653_v55  ;;  %v6748_v32 = vunpack.i.h.bf16 %v6746_v60  ;;  %v6747_v45 = vunpack.i.l.bf16 %v6746_v60  ;;  %v5575_v60 = vld [vmem:[%s8113_s17 + $0x1] ss:$0 sm:$0xff] }
0x2c08   :  { %v6513_v27 = vpack.c.bf16 %v6748_v32, %v6747_v45  ;;  %v2794_v32 = vld [vmem:[#allocation8 + $0x28] sm:$0xff] }
0x2c09   :  { %v4740_v35 = vpop.permute.xlu1 %4739 }
0x2c10   :  { %v6857_v29 = vpop.eup %6856 }
0x2c11   :  { %v4655_v28 = vsel %vm1722_vm3, %v6857_v29, 0.0 }
0x2c12   :  { %4656 = vadd.xlane.f32.xlu0 %v4655_v28 }
0x2c28   :  { %6740 = vrot.lane.b32.xlu0 %v7946_v44, %s8172_s29 }
0x2c9f   :  { %v4657_v31 = vpop.xlane.xlu0 %4656 }
0x2ca0   :  { %6858 = vrcp.f32 %v4657_v31 }
0x2ca3   :  { %v6741_v26 = vpop.permute.xlu0 %6740 }
0x2ca4   :  { %v6743_v54 = vunpack.i.h.bf16 %v6741_v26  ;;  %v6742_v30 = vunpack.i.l.bf16 %v6741_v26 }
0x2ca6   :  { %v6510_v7 = vpack.c.bf16 %v6743_v54, %v6742_v30 }
0x2ca8   :  { %6511 = vmatpush3.bf16.msra.mxu0 %v6510_v7  ;;  %v5574_v7 = vld [vmem:[%s8112_s16 + $0x1] ss:$0 sm:$0xff]  ;;  %s7018_s16 = smov [#allocation10]  }
0x2ca9   :  { %6512 = vmatprep.subr.bf16.mxu0 %v7015_v5  ;;  %s5388_s17 = sshll.u32 %s7018_s16, 4  ;;  %s5389_s17 = int_to_ptr.vmem [resolvable:$true] %s5388_s17 }
0x2caa   :  { %v6859_v9 = vpop.eup %6858  ;;  %s6964_s29 = scalar_lea.vmem %s5389_s17, 256  ;;  %p6969_p5 = scmp.lt.s32.totalorder %s5389_s17, %s5389_s17 }
0x2cab   :  { %v4659_v34 = vmul.f32 %v6859_v9, %v6857_v29  ;;  %v2793_v9 = vld [vmem:[#allocation8 + $0x20] sm:$0xff]  ;;  %p6965_p4 = scmp.ne.s32.totalorder %s5389_s17, %s6964_s29  ;;  %p6970_p6 = scmp.lt.s32.totalorder %s6964_s29, %s6964_s29 }
0x2cad   :  { %6191 = vmatmul.mubr.msk.f32.vlgmr.msra.gmra.mrb[46].mxu0 %vm1157_vm10, %v4659_v34  ;;  %p6971_p7 = por %p6970_p6, %p6969_p5 }
0x2cae   :  { %6197 = vmatprep.mubr.msk.f32.mxu0 %vm7016_vm13, %v7017_v58 }
0x2caf   :  { %p6972_p8 = pnand %p6971_p7, %p6965_p4 }
0x2cb1   :  { %6515 = vmatpush3.bf16.xpose.msk.msra.mxu0 %vm7251_vm2, %v6513_v27  ;;  %v6525_v27 = vpack.c.bf16 %v2794_v32, %v2793_v9 }
0x2cb8   :  { %6198 = vmatmul.mubr.msk.f32.vlgmr.msra.gmra.mrb[48].mxu0 %vm315_vm1, %v4740_v35  ;;  %v2795_v35 = vld [vmem:[#allocation8 + $0x30] sm:$0xff] }
0x2cb9   :  { %6220 = vmatprep.mubr.msk.f32.mxu0 %vm167_vm7, %v7583_v24 }
0x2d80   :  { %v4735_v36 = vpop.f32.mrb[46].mxu0 }
0x2d81   :  { %v6192_v22 = vpop.f32.mrb[47].mxu0 }
0x2d8b   :  { %v4817_v38 = vpop.f32.mrb[48].mxu0 }
0x2d8c   :  { %v4821_v37 = vmul.f32 0.35355338, %v4817_v38  ;;  %v6199_v41 = vpop.f32.mrb[49].mxu0  ;;  %v5497_v38 = vld [vmem:[%s8108_s12 + $0x40] sm:$0xff] }
0x2d8d   :  { %v5499_v41 = vld [vmem:[%s8108_s12 + $0x50] sm:$0xff] }
0x2d8e   :  { %v4822_v61 = vadd.f32 %v4821_v37, %v7512_v18  ;;  %v5498_v37 = vld [vmem:[%s8108_s12 + $0x48] sm:$0xff] }
0x2d90   :  { %v4823_v11 = vsel %vm1722_vm3, %v4822_v61, -inf }
0x2d91   :  { %4824 = vmax.xlane.f32.xlu0 %v4823_v11 }
0x2da7   :  { %6750 = vrot.lane.b32.xlu0 %v7946_v44, %s8174_s3 }
0x2dab   :  { %4918 = vrot.lane.b32.xlu0 %v4735_v36, %s8177_s27  ;;  %v2796_v36 = vld [vmem:[#allocation8 + $0x38] sm:$0xff] }
0x2dac   :  { %v6529_v22 = vpack.c.bf16 %v2796_v36, %v2795_v35 }
0x2e1e   :  { %v4825_v17 = vpop.xlane.xlu0 %4824 }
0x2e1f   :  { %v4826_v14 = vsub.f32 %v4822_v61, %v4825_v17  ;;  %v5500_v61 = vld [vmem:[%s8108_s12 + $0x58] sm:$0xff]  ;;  %v5501_v17 = vld [vmem:[%s8108_s12 + $0x60] sm:$0xff] }
0x2e20   :  { %v6537_v11 = vpack.c.bf16 %v5500_v61, %v5499_v41 }
0x2e21   :  { %v4827_v6 = vmul.f32 1.442695, %v4826_v14  ;;  %v5502_v14 = vld [vmem:[%s8108_s12 + $0x68] sm:$0xff] }
0x2e22   :  { %v6751_v48 = vpop.permute.xlu0 %6750 }
0x2e23   :  { %6860 = vpow2.f32 %v4827_v6  ;;  %v6753_v24 = vunpack.i.h.bf16 %v6751_v48  ;;  %v6752_v49 = vunpack.i.l.bf16 %v6751_v48  ;;  %v6541_v6 = vpack.c.bf16 %v5502_v14, %v5501_v17 }
0x2e24   :  { %v5036_v48 = vmul.f32 %v7881_v62, %v176_v4 }
0x2e25   :  { %v6517_v50 = vpack.c.bf16 %v6753_v24, %v6752_v49  ;;  %v5035_v49 = vmul.f32 %v7879_v39, %v175_v3 }
0x2e27   :  { %6518 = vmatpush3.bf16.msra.mxu1 %v6517_v50 }
0x2e28   :  { %6519 = vmatprep.subr.bf16.mxu1 %v7015_v5 }
0x2e2d   :  { %v6861_v18 = vpop.eup %6860 }
0x2e2e   :  { %v4829_v51 = vsel %vm1722_vm3, %v6861_v18, 0.0 }
0x2e2f   :  { %4830 = vadd.xlane.f32.xlu1 %v4829_v51 }
0x2e40   :  { %4914 = vrot.lane.b32.xlu1 %v4561_v46, %s8166_s25  ;;  %v4919_v46 = vpop.permute.xlu0 %4918 }
0x2ebc   :  { %v4831_v44 = vpop.xlane.xlu1 %4830 }
0x2ebd   :  { %6862 = vrcp.f32 %v4831_v44  ;;  %v5503_v44 = vld [vmem:[%s8108_s12 + $0x70] sm:$0xff] }
0x2ebe   :  { %v6545_v4 = vpack.c.bf16 %v5504_v1, %v5503_v44  ;;  %v5587_v44 = vld [vmem:[%s8116_s20] ss:$0 sm:$0xff] }
0x2ec0   :  { %v4915_v43 = vpop.permute.xlu1 %4914 }
0x2ec1   :  { %v4925_v16 = vsel %vm315_vm1, %v7965_v19, %v4915_v43 }
0x2ec7   :  { %v6863_v52 = vpop.eup %6862 }
0x2ec8   :  { %v4833_v53 = vmul.f32 %v6863_v52, %v6861_v18 }
0x2eca   :  { %6205 = vmatmul.mubr.msk.f32.vlgmr.msra.gmra.mrb[44].mxu1 %vm1157_vm10, %v4833_v53 }
0x2ecb   :  { %6215 = vmatprep.mubr.msk.f32.mxu1 %vm7016_vm13, %v7017_v58  ;;  %6521 = vmatpush3.bf16.msra.mxu1 %v6520_v47  ;;  %v4926_v58 = vsel %vm1157_vm10, %v4925_v16, %v4919_v46 }
0x2ecc   :  { %6522 = vmatprep.subr.bf16.mxu1 %v7015_v5  ;;  %v5572_v5 = vld [vmem:[%s8105_s9 + $0x1] ss:$0 sm:$0xff] }
0x2ecf   :  { %6524 = vmatpush3.bf16.msra.mxu1 %v6523_v63 }
0x2f9d   :  { %v4909_v2 = vpop.f32.mrb[44].mxu1 }
0x2f9e   :  { %4922 = vrot.lane.b32.xlu1 %v4909_v2, %s8167_s26  ;;  %v6206_v15 = vpop.f32.mrb[45].mxu1 }
0x3010   :  { %v4923_v20 = vpop.permute.xlu1 %4922 }
0x3011   :  { %v4927_v12 = vsel %vm1160_vm11, %v4926_v58, %v4923_v20 }
0x3012   :  { %6216 = vmatmul.mubr.msk.f32.vlgmr.msra.gmra.mrb[46].mxu1 %vm227_vm0, %v4927_v12 }
0x30e5   :  { %v5003_v21 = vpop.f32.mrb[46].mxu1 }
0x30e6   :  { %v5004_v25 = vadd.f32 %v5572_v5, %v5003_v21  ;;  %v6217_v8 = vpop.f32.mrb[47].mxu1 }
0x30e8   :  { %v5007_v33 = vadd.f32 %v5004_v25, %v7901_v40 }
0x30ea   :  { %v5008_v56 = vsel %vm2426_vm8, %v5007_v33, 0.0 }
0x30eb   :  { %5009 = vadd.xlane.f32.xlu0 %v5008_v56 }
0x3178   :  { %v5010_v19 = vpop.xlane.xlu0 %5009 }
0x3179   :  { %v5011_v23 = vmul.f32 0.03125, %v5010_v19 }
0x317b   :  { %v5012_v55 = vsub.f32 %v5007_v33, %v5011_v23 }
0x317d   :  { %v5013_v29 = vmul.f32 %v5012_v55, %v5012_v55 }
0x317f   :  { %v5014_v28 = vsel %vm2426_vm8, %v5013_v29, 0.0 }
0x3180   :  { %5015 = vadd.xlane.f32.xlu1 %v5014_v28 }
0x320d   :  { %v5016_v31 = vpop.xlane.xlu1 %5015 }
0x320e   :  { %v5017_v26 = vmul.f32 0.03125, %v5016_v31 }
0x3210   :  { %v5018_v54 = vadd.f32 1e-05, %v5017_v26 }
0x3212   :  { %6864 = vrsqrt.f32 %v5018_v54  ;;  %v5585_v54 = vld [vmem:[%s8114_s18 + $0x1] ss:$0 sm:$0xff] }
0x321c   :  { %v6865_v30 = vpop.eup %6864 }
0x321d   :  { %v5020_v40 = vmul.f32 %v6865_v30, %v5012_v55 }
0x321f   :  { %v5027_v45 = vmul.f32 %v5574_v7, %v5020_v40  ;;  %v5586_v7 = vld [vmem:[%s8115_s19 + $0x1] ss:$0 sm:$0xff] }
0x3221   :  { %v5034_v34 = vadd.f32 %v5575_v60, %v5027_v45 }
0x3223   :  { %6218 = vmatprep.subr.msk.mxu0 %vm2462_vm4, %v5034_v34 }
0x3224   :  { %6219 = vmatpush3.msk.msra.mxu0 %vm2462_vm4, %v5034_v34 }
0x3225   :  { %6221 = vmatmul.mubr.msk.f32.vlgmr.msra.gmra.mrb[50].mxu0 %vm167_vm7, %v7596_v42  ;;  %6526 = vmatprep.subr.bf16.mxu0 %v6525_v27  ;;  %v6533_v42 = vpack.c.bf16 %v5498_v37, %v5497_v38 }
0x3226   :  { %6528 = vmatpush3.bf16.msra.mxu0 %v6525_v27 }
0x3227   :  { %6530 = vmatprep.subr.bf16.mxu0 %v6529_v22  ;;  %6534 = vmatprep.subr.bf16.mxu1 %v6533_v42 }
0x3228   :  { %6536 = vmatpush3.bf16.msra.mxu1 %v6533_v42 }
0x3229   :  { %6538 = vmatprep.subr.bf16.mxu1 %v6537_v11 }
0x322a   :  { %6532 = vmatpush3.bf16.msra.mxu0 %v6529_v22 }
0x322c   :  { %6540 = vmatpush3.bf16.msra.mxu1 %v6537_v11 }
0x322d   :  { %6542 = vmatprep.subr.bf16.mxu1 %v6541_v6 }
0x3230   :  { %6544 = vmatpush3.bf16.msra.mxu1 %v6541_v6 }
0x3231   :  { %6546 = vmatprep.subr.bf16.mxu1 %v6545_v4 }
0x3234   :  { %6548 = vmatpush3.bf16.msra.mxu1 %v6545_v4  ;;  %v5588_v4 = vld [vmem:[%s8178_s5] ss:$0 sm:$0xff] }
0x32f8   :  { %v6222_v24 = vpop.f32.mrb[50].mxu0 }
0x32f9   :  { %v5116_v50 = vadd.f32 %v6222_v24, %v5036_v48  ;;  %v5106_v18 = vpop.f32.mrb[51].mxu0 }
0x32fa   :  { %v5115_v51 = vadd.f32 %v5106_v18, %v5035_v49 }
0x32fc   :  { %6231 = vmatprep.mubr.msk.f32.mxu0 %vm227_vm0, %v5115_v51 }
0x32fd   :  { %6232 = vmatmul.mubr.msk.f32.vlgmr.msra.gmra.mrb[52].mxu0 %vm227_vm0, %v5116_v50 }
0x33d0   :  { %v6233_v3 = vpop.f32.mrb[52].mxu0 }
0x33d1   :  { %v5201_v39 = vadd.f32 %v6233_v3, %v5579_v0  ;;  %v5195_v62 = vpop.f32.mrb[53].mxu0 }
0x33d2   :  { %v5196_v52 = vadd.f32 %v5579_v0, %v5195_v62 }
0x33d3   :  { %v5205_v57 = vmax.f32 %v5201_v39, 0.0 }
0x33d4   :  { %v5204_v53 = vmax.f32 %v5196_v52, 0.0 }
0x33d6   :  { %6250 = vmatprep.mubr.msk.f32.mxu1 %vm2638_vm14, %v5204_v53 }
0x33d7   :  { %6251 = vmatmul.mubr.msk.f32.vlgmr.msra.gmra.mrb[48].mxu1 %vm2638_vm14, %v5205_v57 }
0x34aa   :  { %v6252_v59 = vpop.f32.mrb[48].mxu1 }
0x34ab   :  { %v5284_v47 = vpop.f32.mrb[49].mxu1  ;;  %v5290_v13 = vadd.f32 %v6252_v59, %v5582_v10 }
0x34ac   :  { %v5285_v63 = vadd.f32 %v5582_v10, %v5284_v47 }
0x34ad   :  { %v5294_v15 = vadd.f32 %v5290_v13, %v5116_v50 }
0x34ae   :  { %v5293_v2 = vadd.f32 %v5285_v63, %v5115_v51 }
0x34af   :  { %v5298_v16 = vsel %vm1255_vm12, %v5294_v15, 0.0 }
0x34b0   :  { %v5295_v43 = vsel %vm227_vm0, %v5293_v2, 0.0 }
0x34b1   :  { %5296 = vadd.xlane.f32.xlu0 %v5295_v43 }
0x34b5   :  { %5299 = vadd.xlane.f32.xlu0 %v5298_v16 }
0x353e   :  { %v5297_v46 = vpop.xlane.xlu0 %5296 }
0x353f   :  { %v5301_v58 = vmul.f32 0.03125, %v5297_v46 }
0x3541   :  { %v5303_v20 = vsub.f32 %v5293_v2, %v5301_v58 }
0x3542   :  { %v5300_v12 = vpop.xlane.xlu0 %5299 }
0x3543   :  { %v5302_v5 = vmul.f32 0.03125, %v5300_v12  ;;  %v5305_v21 = vmul.f32 %v5303_v20, %v5303_v20 }
0x3545   :  { %v5304_v25 = vsub.f32 %v5294_v15, %v5302_v5  ;;  %v5307_v8 = vsel %vm227_vm0, %v5305_v21, 0.0 }
0x3546   :  { %5308 = vadd.xlane.f32.xlu1 %v5307_v8 }
0x3547   :  { %v5306_v33 = vmul.f32 %v5304_v25, %v5304_v25 }
0x3549   :  { %v5310_v56 = vsel %vm1255_vm12, %v5306_v33, 0.0 }
0x354a   :  { %5311 = vadd.xlane.f32.xlu0 %v5310_v56 }
0x35d3   :  { %v5309_v19 = vpop.xlane.xlu1 %5308 }
0x35d4   :  { %v5313_v23 = vmul.f32 0.03125, %v5309_v19 }
0x35d6   :  { %v5315_v55 = vadd.f32 1e-05, %v5313_v23 }
0x35d7   :  { %v5312_v29 = vpop.xlane.xlu0 %5311 }
0x35d8   :  { %6866 = vrsqrt.f32 %v5315_v55  ;;  %v5314_v28 = vmul.f32 0.03125, %v5312_v29 }
0x35da   :  { %v5316_v31 = vadd.f32 1e-05, %v5314_v28 }
0x35dc   :  { %6868 = vrsqrt.f32 %v5316_v31 }
0x35e2   :  { %v6867_v26 = vpop.eup %6866 }
0x35e3   :  { %v5319_v30 = vmul.f32 %v6867_v26, %v5303_v20 }
0x35e5   :  { %v5327_v40 = vmul.f32 %v5585_v54, %v5319_v30 }
0x35e6   :  { %v6869_v60 = vpop.eup %6868 }
0x35e7   :  { %v5335_v9 = vadd.f32 %v5586_v7, %v5327_v40  ;;  %v5320_v32 = vmul.f32 %v6869_v60, %v5304_v25 }
0x35e9   :  { %v5339_v45 = vsel %vm227_vm0, %v5335_v9, 0.0  ;;  %v5328_v34 = vmul.f32 %v5585_v54, %v5320_v32 }
0x35ea   :  { %5340 = vadd.xlane.f32.xlu1 %v5339_v45 }
0x35eb   :  { %v5336_v27 = vadd.f32 %v5586_v7, %v5328_v34 }
0x35ed   :  { %v5342_v35 = vsel %vm1255_vm12, %v5336_v27, 0.0 }
0x35ee   :  { %5343 = vadd.xlane.f32.xlu0 %v5342_v35 }
0x3677   :  { %v5341_v36 = vpop.xlane.xlu1 %5340 }
0x3678   :  { %v5345_v22 = vmul.f32 0.03125, %v5341_v36 }
0x367a   :  { %v5347_v38 = vsub.f32 %v5335_v9, %v5345_v22 }
0x367b   :  { %v5344_v37 = vpop.xlane.xlu0 %5343 }
0x367c   :  { %v5346_v41 = vmul.f32 0.03125, %v5344_v37  ;;  %v5349_v42 = vmul.f32 %v5347_v38, %v5347_v38 }
0x367e   :  { %v5348_v61 = vsub.f32 %v5336_v27, %v5346_v41  ;;  %v5351_v11 = vsel %vm227_vm0, %v5349_v42, 0.0 }
0x367f   :  { %5352 = vadd.xlane.f32.xlu1 %v5351_v11 }
0x3680   :  { %v5350_v17 = vmul.f32 %v5348_v61, %v5348_v61 }
0x3682   :  { %v5354_v14 = vsel %vm1255_vm12, %v5350_v17, 0.0 }
0x3683   :  { %5355 = vadd.xlane.f32.xlu0 %v5354_v14 }
0x370c   :  { %v5353_v6 = vpop.xlane.xlu1 %5352 }
0x370d   :  { %v5357_v48 = vmul.f32 0.03125, %v5353_v6 }
0x370f   :  { %v5359_v24 = vadd.f32 1e-05, %v5357_v48 }
0x3710   :  { %v5356_v49 = vpop.xlane.xlu0 %5355 }
0x3711   :  { %6870 = vrsqrt.f32 %v5359_v24  ;;  %v5358_v50 = vmul.f32 0.03125, %v5356_v49 }
0x3713   :  { %v5360_v18 = vadd.f32 1e-05, %v5358_v50 }
0x3715   :  { %6872 = vrsqrt.f32 %v5360_v18 }
0x371b   :  { %v6871_v51 = vpop.eup %6870 }
0x371c   :  { %v5363_v1 = vmul.f32 %v6871_v51, %v5347_v38 }
0x371e   :  { %v5371_v0 = vmul.f32 %v5587_v44, %v5363_v1 }
0x371f   :  { %v6873_v3 = vpop.eup %6872 }
0x3720   :  { %v5364_v39 = vmul.f32 %v6873_v3, %v5348_v61  ;;  %v5379_v62 = vadd.f32 %v5588_v4, %v5371_v0 }
0x3722   :  { %v5372_v52 = vmul.f32 %v5587_v44, %v5364_v39  ;;  %5381 = vst.msk [vmem:[#allocation10] sm:$0xff] %vm227_vm0, %v5379_v62 }
0x3724   :  { %v5380_v53 = vadd.f32 %v5588_v4, %v5372_v52 }
0x3726   :  { %5382 = vst.msk [vmem:[#allocation10 + $0x8] sm:$0xf] %vm1255_vm12, %v5380_v53 }
0x3727   :  { %6975 = shalt.err (!%p6972_p8)
}
0x3728   :  { %s8179_s27 = sld [smem:[#allocation23_spill]] }
0x372e   :  { %s6976_s22 = scalar_lea.hbm %s8179_s27, 256 }
0x372f   :  { %p6977_p9 = scmp.ne.s32.totalorder %s8179_s27, %s6976_s22  ;;  %p6980_p10 = scmp.lt.u32.totalorder %s6976_s22, %s8179_s27 }
0x3731   :  { %p6982_p11 = pnand %p6980_p10, %p6977_p9 }
0x3733   :  { %6985 = shalt.err (!%p6982_p11)
}
0x3734   :  { %s8180_s0 = smov 128  }
0x3735   :  { %5394 = dma.vmem_to_hbm [thread:$0]  %s5389_s17, 256, %s8179_s27, [#allocation4], %s8180_s0, %s8180_s0, %s8166_s25  }
0x3736   :  { %6992 = dma.done.wait [#allocation4], 256  }
0x3737   :  { %6993 = vsyncadd [#allocation4], 4294967040 }
0x3738   :  { %5398 = vsyncpa [#allocation3], 1 }
0x3739   :  { %5399 = vsyncpa [#allocation6], 1 }
0x373a   :  { %5400 = vsyncpa [#allocation9], 1 }
0x373b   :  { %5401 = vsyncpa [#allocation4], 1 }

</bundles_post_ra>
